<compile_context>
chip_gen: v7x
topology: tpu7x:2x2x1
jax: 0.10.0
libtpu: 0.0.40
codegen_flags: <defaults>
</compile_context>

<pallas_src>
import numpy as np
import jax
import jax.numpy as jnp
from jax import lax
from jax.experimental import pallas as pl
from jax.experimental.pallas import tpu as pltpu

ALPHA = 0.1  # strength of the tanh nonlinearity in f
SUB = 8      # sublanes per vreg


def _tri(i, j, m):
    """Index into the packed upper triangle of an m x m symmetric matrix."""
    if i > j:
        i, j = j, i
    return i * m - (i * (i - 1)) // 2 + (j - i)


def _build_kernel(Tt, m, n, Bp):
    """Build the EKF kernel for a (Tt time steps) x (8 x Bp batch tile) block."""
    ntri = m * (m + 1) // 2
    f32 = jnp.float32

    def tri(i, j):
        return _tri(i, j, m)

    def kernel(y_ref, m1x0_ref, m2x0_ref, f_ref, h_ref, q_ref, r_ref,
               x_out_ref, sig_out_ref, kg_out_ref, xc_ref, pc_ref):
        # ---- tiny model matrices: flattened SMEM scalars, read once per invocation ----
        Fs = [[f_ref[i * m + j] for j in range(m)] for i in range(m)]
        Hs = [[h_ref[i * m + j] for j in range(m)] for i in range(n)]
        Qs = [[q_ref[i * m + j] for j in range(m)] for i in range(m)]
        Rs = [[r_ref[i * n + j] for j in range(n)] for i in range(n)]
        # NOTE: we deliberately do NOT pre-broadcast all 44 scalars into [8,Bp] vregs
        # (vreg budget is 64); hoist selectively only if a bundle dump shows re-splats.

        # ---- (re)initialize the cross-chunk posterior carry at the first time chunk ----
        @pl.when(pl.program_id(1) == 0)
        def _():
            for i in range(m):
                xc_ref[i] = jnp.full((SUB, Bp), m1x0_ref[i], dtype=f32)
            for i in range(m):
                for j in range(i, m):
                    pc_ref[tri(i, j)] = jnp.full((SUB, Bp), m2x0_ref[i * m + j], dtype=f32)

        x0 = tuple(xc_ref[i] for i in range(m))
        p0 = tuple(pc_ref[k] for k in range(ntri))

        def step(t, carry):
            x, pu = carry                                    # x: m tiles, P: ntri tiles, each [8, Bp]
            P = [[pu[tri(i, j)] for j in range(m)] for i in range(m)]

            # ---------------- Predict ----------------
            th = [jnp.tanh(x[i]) for i in range(m)]
            # f(x) = F x + ALPHA tanh(x)
            x_prior = [sum(Fs[i][j] * x[j] for j in range(m)) + ALPHA * th[i]
                       for i in range(m)]
            # Jacobian of f at m1x_posterior: off-diagonals are plain scalars, diagonals
            # are batched [8, Bp] tiles.
            A = [[(Fs[i][j] + ALPHA * (1.0 - th[i] * th[i])) if i == j else Fs[i][j]
                  for j in range(m)] for i in range(m)]

            # m2x_prior = A P A^T + Q  (symmetric: only the upper triangle is computed)
            AP = [[sum(A[i][k] * P[k][j] for k in range(m)) for j in range(m)]
                  for i in range(m)]
            Pp_u = [None] * ntri
            for i in range(m):
                for j in range(i, m):
                    Pp_u[tri(i, j)] = sum(AP[i][k] * A[j][k] for k in range(m)) + Qs[i][j]
            Pp = [[Pp_u[tri(i, j)] for j in range(m)] for i in range(m)]

            # m1y = H x_prior ; m2y = H P_prior H^T + R  (Jacobian of h is the constant H)
            m1y = [sum(Hs[i][j] * x_prior[j] for j in range(m)) for i in range(n)]
            PHt = [[sum(Pp[i][k] * Hs[j][k] for k in range(m)) for j in range(n)]
                   for i in range(m)]                        # [m][n]
            # S is symmetric (n == 2): three unique entries
            S00 = sum(Hs[0][k] * PHt[k][0] for k in range(m)) + Rs[0][0]
            S01 = sum(Hs[0][k] * PHt[k][1] for k in range(m)) + Rs[0][1]
            S11 = sum(Hs[1][k] * PHt[k][1] for k in range(m)) + Rs[1][1]
            S = [[S00, S01], [S01, S11]]

            # -------- Kalman gain: analytic symmetric 2x2 inverse --------
            # Divide goes to the (otherwise idle) EUP; one Newton step restores ~fp32
            # accuracy.  R = 0.1*I keeps S well conditioned (no det guard, matching
            # torch.inverse semantics).
            det = S00 * S11 - S01 * S01
            r0 = pl.reciprocal(det, approx=True)
            inv_det = r0 * (2.0 - det * r0)
            Sinv = [[S11 * inv_det, -S01 * inv_det],
                    [-S01 * inv_det, S00 * inv_det]]
            KG = [[sum(PHt[i][k] * Sinv[k][j] for k in range(n)) for j in range(n)]
                  for i in range(m)]                         # [m][n]

            # ---------------- Innovation + Correct ----------------
            dy = [y_ref[t, j] - m1y[j] for j in range(n)]    # direct row loads, no slicing
            x_new = [x_prior[i] + sum(KG[i][j] * dy[j] for j in range(n))
                     for i in range(m)]
            # m2x_posterior = m2x_prior - KG (m2y KG^T)  (same ordering as the reference)
            SKt = [[sum(S[i][k] * KG[j][k] for k in range(n)) for j in range(m)]
                   for i in range(n)]                        # [n][m]
            Pn_u = [None] * ntri
            for i in range(m):
                for j in range(i, m):
                    Pn_u[tri(i, j)] = Pp_u[tri(i, j)] - sum(KG[i][k] * SKt[k][j]
                                                            for k in range(n))

            # ---------------- direct full-tile row stores (no concatenates) ----------
            for i in range(m):
                x_out_ref[t, i] = x_new[i]
            for i in range(m):
                for j in range(m):
                    sig_out_ref[t, i * m + j] = Pn_u[tri(i, j)]
            for i in range(m):
                for j in range(n):
                    kg_out_ref[t, i * n + j] = KG[i][j]

            return (tuple(x_new), tuple(Pn_u))

        xf, pf = lax.fori_loop(0, Tt, step, (x0, p0))

        # Persist the posterior carry for the next time chunk.
        for i in range(m):
            xc_ref[i] = xf[i]
        for k in range(ntri):
            pc_ref[k] = pf[k]

    return kernel


def ekf_forward(y, m1x_0, m2x_0, F, H, Q, R, *, num_batch_tiles=1, time_chunk=None):
    """EKF forward pass.

    Args:
      y:      [B, T, n] observation sequences (same as torch forward's `y`)
      m1x_0:  [m]       initial state mean   (repeated over batch, like torch `.repeat`)
      m2x_0:  [m, m]    initial state covariance
      num_batch_tiles: batch-tile split (marked "parallel" so v7x's two TensorCores can
                       each take tiles).  Each tile's lane width must then be a multiple
                       of 128.
      time_chunk: time steps per grid chunk (bounds VMEM independent of T and enables
                  DMA/compute overlap).  Must divide T; auto-picked if None.
    Returns:
      x:        [B, T, m]      posterior means       (torch self.x)
      sigma:    [B, T, m, m]   posterior covariances (torch self.sigma)
      kg_array: [B, T, m, n]   Kalman gains          (torch self.KG_array)
    """
    B, T, n = y.shape
    m = F.shape[0]
    assert n == 2  # analytic in-kernel 2x2 inverse; TODO(synk): general n needs an in-kernel solver
    f32 = jnp.float32

    # Pad the batch so it packs exactly onto the 8 sublanes (padded lanes run the same
    # filter on zero observations and are sliced away afterwards).
    Bpad = ((B + SUB - 1) // SUB) * SUB
    if Bpad != B:
        y = jnp.concatenate([y, jnp.zeros((Bpad - B, T, n), y.dtype)], axis=0)
    Bp = Bpad // SUB                                          # lane width after packing

    assert Bp % num_batch_tiles == 0
    Bpt = Bp // num_batch_tiles
    # (8,128) rule on the lane axis when the batch is actually tiled.
    assert num_batch_tiles == 1 or Bpt % 128 == 0, \
        "with num_batch_tiles > 1 each tile's lane width must be a multiple of 128"

    if time_chunk is None:
        time_chunk = next(c for c in range(min(T, 32), 0, -1) if T % c == 0)
    assert T % time_chunk == 0
    Tt = time_chunk
    n_chunks = T // Tt

    # Batch packed as [sublane=8, lane=Bp]:  b = s * Bp + l.
    # (At production sizes prefer producing/consuming this lane-major layout natively
    #  instead of paying the wrapper transposes below.)
    y_k = jnp.transpose(y, (1, 2, 0)).reshape(T, n, SUB, Bp).astype(f32)

    ntri = m * (m + 1) // 2
    kernel = _build_kernel(Tt, m, n, Bpt)
    smem = pl.BlockSpec(memory_space=pltpu.MemorySpace.SMEM)

    # VMEM budget (generation-aware: keep well under v7x's 64 MiB per TensorCore).
    lanes = max(Bpt, 128)
    block_rows = n + m + m * m + m * n                        # y + x + sigma + kg rows/step
    resident = 2 * 4 * Tt * block_rows * SUB * lanes          # double-buffered blocks
    scratch_bytes = 4 * (m + ntri) * SUB * lanes
    assert resident + scratch_bytes < (44 << 20), \
        "reduce time_chunk or increase num_batch_tiles to fit v7x VMEM"
    vmem_limit = int(min(max(3 * (resident + scratch_bytes), 16 << 20), 48 << 20))

    grid_spec = pltpu.PrefetchScalarGridSpec(
        num_scalar_prefetch=0,
        grid=(num_batch_tiles, n_chunks),
        in_specs=[
            pl.BlockSpec((Tt, n, SUB, Bpt), lambda b, c: (c, 0, 0, b)),  # y (VMEM, pipelined)
            smem,                                            # m1x_0  [m]
            smem,                                            # m2x_0  [m*m]
            smem,                                            # F      [m*m]
            smem,                                            # H      [n*m]
            smem,                                            # Q      [m*m]
            smem,                                            # R      [n*n]
        ],
        out_specs=[
            pl.BlockSpec((Tt, m, SUB, Bpt), lambda b, c: (c, 0, 0, b)),
            pl.BlockSpec((Tt, m * m, SUB, Bpt), lambda b, c: (c, 0, 0, b)),
            pl.BlockSpec((Tt, m * n, SUB, Bpt), lambda b, c: (c, 0, 0, b)),
        ],
        scratch_shapes=[
            pltpu.VMEM((m, SUB, Bpt), f32),        # x posterior carry across time chunks
            pltpu.VMEM((ntri, SUB, Bpt), f32),     # symmetric P posterior carry (upper tri)
        ],
    )

    x_k, sig_k, kg_k = pl.pallas_call(
        kernel,
        out_shape=(
            jax.ShapeDtypeStruct((T, m, SUB, Bp), f32),
            jax.ShapeDtypeStruct((T, m * m, SUB, Bp), f32),
            jax.ShapeDtypeStruct((T, m * n, SUB, Bp), f32),
        ),
        grid_spec=grid_spec,
        compiler_params=pltpu.CompilerParams(
            dimension_semantics=("parallel", "arbitrary"),
            vmem_limit_bytes=vmem_limit),
    )(y_k,
      m1x_0.reshape(-1).astype(f32), m2x_0.reshape(-1).astype(f32),
      F.reshape(-1).astype(f32), H.reshape(-1).astype(f32),
      Q.reshape(-1).astype(f32), R.reshape(-1).astype(f32))

    # Back to the PyTorch layout conventions (cheap at test sizes).
    x = jnp.transpose(x_k.reshape(T, m, Bpad), (2, 0, 1))[:B]                      # [B,T,m]
    sigma = jnp.transpose(sig_k.reshape(T, m, m, Bpad), (3, 0, 1, 2))[:B]          # [B,T,m,m]
    kg = jnp.transpose(kg_k.reshape(T, m, n, Bpad), (3, 0, 1, 2))[:B]              # [B,T,m,n]
    return x, sigma, kg


def ekf_reference(y, m1x_0, m2x_0, F, H, Q, R, alpha):
    """Pure NumPy reference mirroring the torch EKF step-for-step."""
    y = np.asarray(y, np.float32)
    F = np.asarray(F, np.float32)
    H = np.asarray(H, np.float32)
    Q = np.asarray(Q, np.float32)
    R = np.asarray(R, np.float32)
    B, T, n = y.shape
    m = F.shape[0]
    x_post = np.tile(np.asarray(m1x_0, np.float32)[None, :], (B, 1))
    p_post = np.tile(np.asarray(m2x_0, np.float32)[None, :, :], (B, 1, 1))
    xs = np.zeros((B, T, m), np.float32)
    sg = np.zeros((B, T, m, m), np.float32)
    kg = np.zeros((B, T, m, n), np.float32)
    I = np.eye(m, dtype=np.float32)
    for t in range(T):
        th = np.tanh(x_post)
        x_prior = x_post @ F.T + alpha * th
        A = F[None] + alpha * (1.0 - th * th)[:, :, None] * I[None]
        p_prior = A @ p_post @ np.transpose(A, (0, 2, 1)) + Q
        m1y = x_prior @ H.T
        PHt = p_prior @ H.T
        m2y = np.matmul(H, PHt) + R
        KG = PHt @ np.linalg.inv(m2y)
        dy = y[:, t, :] - m1y
        x_post = x_prior + (KG @ dy[:, :, None])[:, :, 0]
        p_post = p_prior - KG @ (m2y @ np.transpose(KG, (0, 2, 1)))
        xs[:, t] = x_post
        sg[:, t] = p_post
        kg[:, t] = KG
    return xs, sg, kg


if __name__ == "__main__":
    m, n = 4, 2

    # Deterministic synthetic SystemModel parameters
    F = 0.9 * jnp.eye(m) + 0.05 * jnp.eye(m, k=1)
    H = jnp.eye(n, m) + 0.05
    Q = 0.01 * jnp.eye(m)
    R = 0.1 * jnp.eye(n)
    m1x_0 = 0.1 * jnp.arange(m, dtype=jnp.float32)
    m2x_0 = jnp.eye(m)

    k0, k1 = jax.random.split(jax.random.PRNGKey(0))

    # Test 1: small odd batch (exercises batch padding) + multi-chunk time carry.
    B1, T1 = 12, 16
    y1 = jax.random.normal(k0, (B1, T1, n), dtype=jnp.float32)
    x1, s1, kg1 = jax.block_until_ready(
        ekf_forward(y1, m1x_0, m2x_0, F, H, Q, R, num_batch_tiles=1, time_chunk=8))
    xr1, sr1, kr1 = ekf_reference(np.asarray(y1), np.asarray(m1x_0), np.asarray(m2x_0),
                                  np.asarray(F), np.asarray(H), np.asarray(Q),
                                  np.asarray(R), ALPHA)
    np.testing.assert_allclose(np.asarray(x1), xr1, rtol=2e-3, atol=2e-3)
    np.testing.assert_allclose(np.asarray(s1), sr1, rtol=2e-3, atol=2e-3)
    np.testing.assert_allclose(np.asarray(kg1), kr1, rtol=2e-3, atol=2e-3)

    # Test 2: lane-dense batch sharded across 2 batch tiles (v7x megacore path).
    B2, T2 = 2048, 8
    y2 = jax.random.normal(k1, (B2, T2, n), dtype=jnp.float32)
    x2, s2, kg2 = jax.block_until_ready(
        ekf_forward(y2, m1x_0, m2x_0, F, H, Q, R, num_batch_tiles=2, time_chunk=4))
    xr2, sr2, kr2 = ekf_reference(np.asarray(y2), np.asarray(m1x_0), np.asarray(m2x_0),
                                  np.asarray(F), np.asarray(H), np.asarray(Q),
                                  np.asarray(R), ALPHA)
    np.testing.assert_allclose(np.asarray(x2), xr2, rtol=2e-3, atol=2e-3)
    np.testing.assert_allclose(np.asarray(s2), sr2, rtol=2e-3, atol=2e-3)
    np.testing.assert_allclose(np.asarray(kg2), kr2, rtol=2e-3, atol=2e-3)

    # NOTE: torch forward() also appends m1x_prior[0,0]/m1x_posterior[0,0] to CPU lists
    # and calls plt.plot(...) — pure host-side side effects, intentionally not reproduced.
    print("KERNEL_OK")
</pallas_src>

<mosaic_0001>
module attributes {stable_mosaic.version = 11 : i64} {
  func.func @kernel(%arg0: i32, %arg1: i32, %arg2: memref<8x2x8x2xf32, #tpu.memory_space<vmem>>, %arg3: memref<4xf32, #tpu.memory_space<smem>>, %arg4: memref<16xf32, #tpu.memory_space<smem>>, %arg5: memref<16xf32, #tpu.memory_space<smem>>, %arg6: memref<8xf32, #tpu.memory_space<smem>>, %arg7: memref<16xf32, #tpu.memory_space<smem>>, %arg8: memref<4xf32, #tpu.memory_space<smem>>, %arg9: memref<8x4x8x2xf32, #tpu.memory_space<vmem>>, %arg10: memref<8x16x8x2xf32, #tpu.memory_space<vmem>>, %arg11: memref<8x8x8x2xf32, #tpu.memory_space<vmem>>, %arg12: memref<4x8x2xf32, #tpu.memory_space<vmem>>, %arg13: memref<10x8x2xf32, #tpu.memory_space<vmem>>) attributes {dimension_semantics = [#tpu.dimension_semantics<parallel>, #tpu.dimension_semantics<arbitrary>], iteration_bounds = array<i64: 1, 2>, scalar_prefetch = 0 : i64, scratch_operands = 2 : i64, tpu.core_type = #tpu.core_type<tc>, window_params = [{transform_indices = @transform_0, window_bounds = array<i64: 8, 2, 8, 2>}, {transform_indices = @transform_1, window_bounds = array<i64: 4>}, {transform_indices = @transform_2, window_bounds = array<i64: 16>}, {transform_indices = @transform_3, window_bounds = array<i64: 16>}, {transform_indices = @transform_4, window_bounds = array<i64: 8>}, {transform_indices = @transform_5, window_bounds = array<i64: 16>}, {transform_indices = @transform_6, window_bounds = array<i64: 4>}, {transform_indices = @transform_7, window_bounds = array<i64: 8, 4, 8, 2>}, {transform_indices = @transform_8, window_bounds = array<i64: 8, 16, 8, 2>}, {transform_indices = @transform_9, window_bounds = array<i64: 8, 8, 8, 2>}]} {
    %c0 = arith.constant 0 : index
    %0 = memref.load %arg5[%c0] : memref<16xf32, #tpu.memory_space<smem>>
    %c1 = arith.constant 1 : index
    %1 = memref.load %arg5[%c1] : memref<16xf32, #tpu.memory_space<smem>>
    %c2 = arith.constant 2 : index
    %2 = memref.load %arg5[%c2] : memref<16xf32, #tpu.memory_space<smem>>
    %c3 = arith.constant 3 : index
    %3 = memref.load %arg5[%c3] : memref<16xf32, #tpu.memory_space<smem>>
    %c4 = arith.constant 4 : index
    %4 = memref.load %arg5[%c4] : memref<16xf32, #tpu.memory_space<smem>>
    %c5 = arith.constant 5 : index
    %5 = memref.load %arg5[%c5] : memref<16xf32, #tpu.memory_space<smem>>
    %c6 = arith.constant 6 : index
    %6 = memref.load %arg5[%c6] : memref<16xf32, #tpu.memory_space<smem>>
    %c7 = arith.constant 7 : index
    %7 = memref.load %arg5[%c7] : memref<16xf32, #tpu.memory_space<smem>>
    %c8 = arith.constant 8 : index
    %8 = memref.load %arg5[%c8] : memref<16xf32, #tpu.memory_space<smem>>
    %c9 = arith.constant 9 : index
    %9 = memref.load %arg5[%c9] : memref<16xf32, #tpu.memory_space<smem>>
    %c10 = arith.constant 10 : index
    %10 = memref.load %arg5[%c10] : memref<16xf32, #tpu.memory_space<smem>>
    %c11 = arith.constant 11 : index
    %11 = memref.load %arg5[%c11] : memref<16xf32, #tpu.memory_space<smem>>
    %c12 = arith.constant 12 : index
    %12 = memref.load %arg5[%c12] : memref<16xf32, #tpu.memory_space<smem>>
    %c13 = arith.constant 13 : index
    %13 = memref.load %arg5[%c13] : memref<16xf32, #tpu.memory_space<smem>>
    %c14 = arith.constant 14 : index
    %14 = memref.load %arg5[%c14] : memref<16xf32, #tpu.memory_space<smem>>
    %c15 = arith.constant 15 : index
    %15 = memref.load %arg5[%c15] : memref<16xf32, #tpu.memory_space<smem>>
    %c0_0 = arith.constant 0 : index
    %16 = memref.load %arg6[%c0_0] : memref<8xf32, #tpu.memory_space<smem>>
    %c1_1 = arith.constant 1 : index
    %17 = memref.load %arg6[%c1_1] : memref<8xf32, #tpu.memory_space<smem>>
    %c2_2 = arith.constant 2 : index
    %18 = memref.load %arg6[%c2_2] : memref<8xf32, #tpu.memory_space<smem>>
    %c3_3 = arith.constant 3 : index
    %19 = memref.load %arg6[%c3_3] : memref<8xf32, #tpu.memory_space<smem>>
    %c4_4 = arith.constant 4 : index
    %20 = memref.load %arg6[%c4_4] : memref<8xf32, #tpu.memory_space<smem>>
    %c5_5 = arith.constant 5 : index
    %21 = memref.load %arg6[%c5_5] : memref<8xf32, #tpu.memory_space<smem>>
    %c6_6 = arith.constant 6 : index
    %22 = memref.load %arg6[%c6_6] : memref<8xf32, #tpu.memory_space<smem>>
    %c7_7 = arith.constant 7 : index
    %23 = memref.load %arg6[%c7_7] : memref<8xf32, #tpu.memory_space<smem>>
    %c0_8 = arith.constant 0 : index
    %24 = memref.load %arg7[%c0_8] : memref<16xf32, #tpu.memory_space<smem>>
    %c1_9 = arith.constant 1 : index
    %25 = memref.load %arg7[%c1_9] : memref<16xf32, #tpu.memory_space<smem>>
    %c2_10 = arith.constant 2 : index
    %26 = memref.load %arg7[%c2_10] : memref<16xf32, #tpu.memory_space<smem>>
    %c3_11 = arith.constant 3 : index
    %27 = memref.load %arg7[%c3_11] : memref<16xf32, #tpu.memory_space<smem>>
    %c5_12 = arith.constant 5 : index
    %28 = memref.load %arg7[%c5_12] : memref<16xf32, #tpu.memory_space<smem>>
    %c6_13 = arith.constant 6 : index
    %29 = memref.load %arg7[%c6_13] : memref<16xf32, #tpu.memory_space<smem>>
    %c7_14 = arith.constant 7 : index
    %30 = memref.load %arg7[%c7_14] : memref<16xf32, #tpu.memory_space<smem>>
    %c10_15 = arith.constant 10 : index
    %31 = memref.load %arg7[%c10_15] : memref<16xf32, #tpu.memory_space<smem>>
    %c11_16 = arith.constant 11 : index
    %32 = memref.load %arg7[%c11_16] : memref<16xf32, #tpu.memory_space<smem>>
    %c15_17 = arith.constant 15 : index
    %33 = memref.load %arg7[%c15_17] : memref<16xf32, #tpu.memory_space<smem>>
    %c0_18 = arith.constant 0 : index
    %34 = memref.load %arg8[%c0_18] : memref<4xf32, #tpu.memory_space<smem>>
    %c1_19 = arith.constant 1 : index
    %35 = memref.load %arg8[%c1_19] : memref<4xf32, #tpu.memory_space<smem>>
    %c3_20 = arith.constant 3 : index
    %36 = memref.load %arg8[%c3_20] : memref<4xf32, #tpu.memory_space<smem>>
    %c0_i32 = arith.constant 0 : i32
    %37 = arith.cmpi eq, %arg1, %c0_i32 : i32
    %38 = arith.extui %37 : i1 to i32
    %c0_i32_21 = arith.constant 0 : i32
    %39 = arith.cmpi ne, %38, %c0_i32_21 : i32
    scf.if %39 {
      %c0_108 = arith.constant 0 : index
      %112 = memref.load %arg3[%c0_108] : memref<4xf32, #tpu.memory_space<smem>>
      %113 = vector.broadcast %112 : f32 to vector<8x2xf32>
      %c0_109 = arith.constant 0 : index
      %c0_110 = arith.constant 0 : index
      %c0_111 = arith.constant 0 : index
      %114 = vector.load %arg12[%c0_109, %c0_110, %c0_111] : memref<4x8x2xf32, #tpu.memory_space<vmem>>, vector<1x8x2xf32>
      %115 = vector.shape_cast %114 : vector<1x8x2xf32> to vector<8x2xf32>
      %116 = vector.shape_cast %113 : vector<8x2xf32> to vector<1x8x2xf32>
      tpu.vector_store %arg12[%c0_109, %c0_110, %c0_111], %116 {strides = array<i32>} : memref<4x8x2xf32, #tpu.memory_space<vmem>>, vector<1x8x2xf32>,
      %c1_112 = arith.constant 1 : index
      %117 = memref.load %arg3[%c1_112] : memref<4xf32, #tpu.memory_space<smem>>
      %118 = vector.broadcast %117 : f32 to vector<8x2xf32>
      %c1_113 = arith.constant 1 : index
      %c0_114 = arith.constant 0 : index
      %c0_115 = arith.constant 0 : index
      %119 = vector.load %arg12[%c1_113, %c0_114, %c0_115] : memref<4x8x2xf32, #tpu.memory_space<vmem>>, vector<1x8x2xf32>
      %120 = vector.shape_cast %119 : vector<1x8x2xf32> to vector<8x2xf32>
      %121 = vector.shape_cast %118 : vector<8x2xf32> to vector<1x8x2xf32>
      tpu.vector_store %arg12[%c1_113, %c0_114, %c0_115], %121 {strides = array<i32>} : memref<4x8x2xf32, #tpu.memory_space<vmem>>, vector<1x8x2xf32>,
      %c2_116 = arith.constant 2 : index
      %122 = memref.load %arg3[%c2_116] : memref<4xf32, #tpu.memory_space<smem>>
      %123 = vector.broadcast %122 : f32 to vector<8x2xf32>
      %c2_117 = arith.constant 2 : index
      %c0_118 = arith.constant 0 : index
      %c0_119 = arith.constant 0 : index
      %124 = vector.load %arg12[%c2_117, %c0_118, %c0_119] : memref<4x8x2xf32, #tpu.memory_space<vmem>>, vector<1x8x2xf32>
      %125 = vector.shape_cast %124 : vector<1x8x2xf32> to vector<8x2xf32>
      %126 = vector.shape_cast %123 : vector<8x2xf32> to vector<1x8x2xf32>
      tpu.vector_store %arg12[%c2_117, %c0_118, %c0_119], %126 {strides = array<i32>} : memref<4x8x2xf32, #tpu.memory_space<vmem>>, vector<1x8x2xf32>,
      %c3_120 = arith.constant 3 : index
      %127 = memref.load %arg3[%c3_120] : memref<4xf32, #tpu.memory_space<smem>>
      %128 = vector.broadcast %127 : f32 to vector<8x2xf32>
      %c3_121 = arith.constant 3 : index
      %c0_122 = arith.constant 0 : index
      %c0_123 = arith.constant 0 : index
      %129 = vector.load %arg12[%c3_121, %c0_122, %c0_123] : memref<4x8x2xf32, #tpu.memory_space<vmem>>, vector<1x8x2xf32>
      %130 = vector.shape_cast %129 : vector<1x8x2xf32> to vector<8x2xf32>
      %131 = vector.shape_cast %128 : vector<8x2xf32> to vector<1x8x2xf32>
      tpu.vector_store %arg12[%c3_121, %c0_122, %c0_123], %131 {strides = array<i32>} : memref<4x8x2xf32, #tpu.memory_space<vmem>>, vector<1x8x2xf32>,
      %c0_124 = arith.constant 0 : index
      %132 = memref.load %arg4[%c0_124] : memref<16xf32, #tpu.memory_space<smem>>
      %133 = vector.broadcast %132 : f32 to vector<8x2xf32>
      %c0_125 = arith.constant 0 : index
      %c0_126 = arith.constant 0 : index
      %c0_127 = arith.constant 0 : index
      %134 = vector.load %arg13[%c0_125, %c0_126, %c0_127] : memref<10x8x2xf32, #tpu.memory_space<vmem>>, vector<1x8x2xf32>
      %135 = vector.shape_cast %134 : vector<1x8x2xf32> to vector<8x2xf32>
      %136 = vector.shape_cast %133 : vector<8x2xf32> to vector<1x8x2xf32>
      tpu.vector_store %arg13[%c0_125, %c0_126, %c0_127], %136 {strides = array<i32>} : memref<10x8x2xf32, #tpu.memory_space<vmem>>, vector<1x8x2xf32>,
      %c1_128 = arith.constant 1 : index
      %137 = memref.load %arg4[%c1_128] : memref<16xf32, #tpu.memory_space<smem>>
      %138 = vector.broadcast %137 : f32 to vector<8x2xf32>
      %c1_129 = arith.constant 1 : index
      %c0_130 = arith.constant 0 : index
      %c0_131 = arith.constant 0 : index
      %139 = vector.load %arg13[%c1_129, %c0_130, %c0_131] : memref<10x8x2xf32, #tpu.memory_space<vmem>>, vector<1x8x2xf32>
      %140 = vector.shape_cast %139 : vector<1x8x2xf32> to vector<8x2xf32>
      %141 = vector.shape_cast %138 : vector<8x2xf32> to vector<1x8x2xf32>
      tpu.vector_store %arg13[%c1_129, %c0_130, %c0_131], %141 {strides = array<i32>} : memref<10x8x2xf32, #tpu.memory_space<vmem>>, vector<1x8x2xf32>,
      %c2_132 = arith.constant 2 : index
      %142 = memref.load %arg4[%c2_132] : memref<16xf32, #tpu.memory_space<smem>>
      %143 = vector.broadcast %142 : f32 to vector<8x2xf32>
      %c2_133 = arith.constant 2 : index
      %c0_134 = arith.constant 0 : index
      %c0_135 = arith.constant 0 : index
      %144 = vector.load %arg13[%c2_133, %c0_134, %c0_135] : memref<10x8x2xf32, #tpu.memory_space<vmem>>, vector<1x8x2xf32>
      %145 = vector.shape_cast %144 : vector<1x8x2xf32> to vector<8x2xf32>
      %146 = vector.shape_cast %143 : vector<8x2xf32> to vector<1x8x2xf32>
      tpu.vector_store %arg13[%c2_133, %c0_134, %c0_135], %146 {strides = array<i32>} : memref<10x8x2xf32, #tpu.memory_space<vmem>>, vector<1x8x2xf32>,
      %c3_136 = arith.constant 3 : index
      %147 = memref.load %arg4[%c3_136] : memref<16xf32, #tpu.memory_space<smem>>
      %148 = vector.broadcast %147 : f32 to vector<8x2xf32>
      %c3_137 = arith.constant 3 : index
      %c0_138 = arith.constant 0 : index
      %c0_139 = arith.constant 0 : index
      %149 = vector.load %arg13[%c3_137, %c0_138, %c0_139] : memref<10x8x2xf32, #tpu.memory_space<vmem>>, vector<1x8x2xf32>
      %150 = vector.shape_cast %149 : vector<1x8x2xf32> to vector<8x2xf32>
      %151 = vector.shape_cast %148 : vector<8x2xf32> to vector<1x8x2xf32>
      tpu.vector_store %arg13[%c3_137, %c0_138, %c0_139], %151 {strides = array<i32>} : memref<10x8x2xf32, #tpu.memory_space<vmem>>, vector<1x8x2xf32>,
      %c5_140 = arith.constant 5 : index
      %152 = memref.load %arg4[%c5_140] : memref<16xf32, #tpu.memory_space<smem>>
      %153 = vector.broadcast %152 : f32 to vector<8x2xf32>
      %c4_141 = arith.constant 4 : index
      %c0_142 = arith.constant 0 : index
      %c0_143 = arith.constant 0 : index
      %154 = vector.load %arg13[%c4_141, %c0_142, %c0_143] : memref<10x8x2xf32, #tpu.memory_space<vmem>>, vector<1x8x2xf32>
      %155 = vector.shape_cast %154 : vector<1x8x2xf32> to vector<8x2xf32>
      %156 = vector.shape_cast %153 : vector<8x2xf32> to vector<1x8x2xf32>
      tpu.vector_store %arg13[%c4_141, %c0_142, %c0_143], %156 {strides = array<i32>} : memref<10x8x2xf32, #tpu.memory_space<vmem>>, vector<1x8x2xf32>,
      %c6_144 = arith.constant 6 : index
      %157 = memref.load %arg4[%c6_144] : memref<16xf32, #tpu.memory_space<smem>>
      %158 = vector.broadcast %157 : f32 to vector<8x2xf32>
      %c5_145 = arith.constant 5 : index
      %c0_146 = arith.constant 0 : index
      %c0_147 = arith.constant 0 : index
      %159 = vector.load %arg13[%c5_145, %c0_146, %c0_147] : memref<10x8x2xf32, #tpu.memory_space<vmem>>, vector<1x8x2xf32>
      %160 = vector.shape_cast %159 : vector<1x8x2xf32> to vector<8x2xf32>
      %161 = vector.shape_cast %158 : vector<8x2xf32> to vector<1x8x2xf32>
      tpu.vector_store %arg13[%c5_145, %c0_146, %c0_147], %161 {strides = array<i32>} : memref<10x8x2xf32, #tpu.memory_space<vmem>>, vector<1x8x2xf32>,
      %c7_148 = arith.constant 7 : index
      %162 = memref.load %arg4[%c7_148] : memref<16xf32, #tpu.memory_space<smem>>
      %163 = vector.broadcast %162 : f32 to vector<8x2xf32>
      %c6_149 = arith.constant 6 : index
      %c0_150 = arith.constant 0 : index
      %c0_151 = arith.constant 0 : index
      %164 = vector.load %arg13[%c6_149, %c0_150, %c0_151] : memref<10x8x2xf32, #tpu.memory_space<vmem>>, vector<1x8x2xf32>
      %165 = vector.shape_cast %164 : vector<1x8x2xf32> to vector<8x2xf32>
      %166 = vector.shape_cast %163 : vector<8x2xf32> to vector<1x8x2xf32>
      tpu.vector_store %arg13[%c6_149, %c0_150, %c0_151], %166 {strides = array<i32>} : memref<10x8x2xf32, #tpu.memory_space<vmem>>, vector<1x8x2xf32>,
      %c10_152 = arith.constant 10 : index
      %167 = memref.load %arg4[%c10_152] : memref<16xf32, #tpu.memory_space<smem>>
      %168 = vector.broadcast %167 : f32 to vector<8x2xf32>
      %c7_153 = arith.constant 7 : index
      %c0_154 = arith.constant 0 : index
      %c0_155 = arith.constant 0 : index
      %169 = vector.load %arg13[%c7_153, %c0_154, %c0_155] : memref<10x8x2xf32, #tpu.memory_space<vmem>>, vector<1x8x2xf32>
      %170 = vector.shape_cast %169 : vector<1x8x2xf32> to vector<8x2xf32>
      %171 = vector.shape_cast %168 : vector<8x2xf32> to vector<1x8x2xf32>
      tpu.vector_store %arg13[%c7_153, %c0_154, %c0_155], %171 {strides = array<i32>} : memref<10x8x2xf32, #tpu.memory_space<vmem>>, vector<1x8x2xf32>,
      %c11_156 = arith.constant 11 : index
      %172 = memref.load %arg4[%c11_156] : memref<16xf32, #tpu.memory_space<smem>>
      %173 = vector.broadcast %172 : f32 to vector<8x2xf32>
      %c8_157 = arith.constant 8 : index
      %c0_158 = arith.constant 0 : index
      %c0_159 = arith.constant 0 : index
      %174 = vector.load %arg13[%c8_157, %c0_158, %c0_159] : memref<10x8x2xf32, #tpu.memory_space<vmem>>, vector<1x8x2xf32>
      %175 = vector.shape_cast %174 : vector<1x8x2xf32> to vector<8x2xf32>
      %176 = vector.shape_cast %173 : vector<8x2xf32> to vector<1x8x2xf32>
      tpu.vector_store %arg13[%c8_157, %c0_158, %c0_159], %176 {strides = array<i32>} : memref<10x8x2xf32, #tpu.memory_space<vmem>>, vector<1x8x2xf32>,
      %c15_160 = arith.constant 15 : index
      %177 = memref.load %arg4[%c15_160] : memref<16xf32, #tpu.memory_space<smem>>
      %178 = vector.broadcast %177 : f32 to vector<8x2xf32>
      %c9_161 = arith.constant 9 : index
      %c0_162 = arith.constant 0 : index
      %c0_163 = arith.constant 0 : index
      %179 = vector.load %arg13[%c9_161, %c0_162, %c0_163] : memref<10x8x2xf32, #tpu.memory_space<vmem>>, vector<1x8x2xf32>
      %180 = vector.shape_cast %179 : vector<1x8x2xf32> to vector<8x2xf32>
      %181 = vector.shape_cast %178 : vector<8x2xf32> to vector<1x8x2xf32>
      tpu.vector_store %arg13[%c9_161, %c0_162, %c0_163], %181 {strides = array<i32>} : memref<10x8x2xf32, #tpu.memory_space<vmem>>, vector<1x8x2xf32>,
    } else {
    }
    %c0_22 = arith.constant 0 : index
    %c0_23 = arith.constant 0 : index
    %c0_24 = arith.constant 0 : index
    %40 = vector.load %arg12[%c0_22, %c0_23, %c0_24] : memref<4x8x2xf32, #tpu.memory_space<vmem>>, vector<1x8x2xf32>
    %41 = vector.shape_cast %40 : vector<1x8x2xf32> to vector<8x2xf32>
    %c1_25 = arith.constant 1 : index
    %c0_26 = arith.constant 0 : index
    %c0_27 = arith.constant 0 : index
    %42 = vector.load %arg12[%c1_25, %c0_26, %c0_27] : memref<4x8x2xf32, #tpu.memory_space<vmem>>, vector<1x8x2xf32>
    %43 = vector.shape_cast %42 : vector<1x8x2xf32> to vector<8x2xf32>
    %c2_28 = arith.constant 2 : index
    %c0_29 = arith.constant 0 : index
    %c0_30 = arith.constant 0 : index
    %44 = vector.load %arg12[%c2_28, %c0_29, %c0_30] : memref<4x8x2xf32, #tpu.memory_space<vmem>>, vector<1x8x2xf32>
    %45 = vector.shape_cast %44 : vector<1x8x2xf32> to vector<8x2xf32>
    %c3_31 = arith.constant 3 : index
    %c0_32 = arith.constant 0 : index
    %c0_33 = arith.constant 0 : index
    %46 = vector.load %arg12[%c3_31, %c0_32, %c0_33] : memref<4x8x2xf32, #tpu.memory_space<vmem>>, vector<1x8x2xf32>
    %47 = vector.shape_cast %46 : vector<1x8x2xf32> to vector<8x2xf32>
    %c0_34 = arith.constant 0 : index
    %c0_35 = arith.constant 0 : index
    %c0_36 = arith.constant 0 : index
    %48 = vector.load %arg13[%c0_34, %c0_35, %c0_36] : memref<10x8x2xf32, #tpu.memory_space<vmem>>, vector<1x8x2xf32>
    %49 = vector.shape_cast %48 : vector<1x8x2xf32> to vector<8x2xf32>
    %c1_37 = arith.constant 1 : index
    %c0_38 = arith.constant 0 : index
    %c0_39 = arith.constant 0 : index
    %50 = vector.load %arg13[%c1_37, %c0_38, %c0_39] : memref<10x8x2xf32, #tpu.memory_space<vmem>>, vector<1x8x2xf32>
    %51 = vector.shape_cast %50 : vector<1x8x2xf32> to vector<8x2xf32>
    %c2_40 = arith.constant 2 : index
    %c0_41 = arith.constant 0 : index
    %c0_42 = arith.constant 0 : index
    %52 = vector.load %arg13[%c2_40, %c0_41, %c0_42] : memref<10x8x2xf32, #tpu.memory_space<vmem>>, vector<1x8x2xf32>
    %53 = vector.shape_cast %52 : vector<1x8x2xf32> to vector<8x2xf32>
    %c3_43 = arith.constant 3 : index
    %c0_44 = arith.constant 0 : index
    %c0_45 = arith.constant 0 : index
    %54 = vector.load %arg13[%c3_43, %c0_44, %c0_45] : memref<10x8x2xf32, #tpu.memory_space<vmem>>, vector<1x8x2xf32>
    %55 = vector.shape_cast %54 : vector<1x8x2xf32> to vector<8x2xf32>
    %c4_46 = arith.constant 4 : index
    %c0_47 = arith.constant 0 : index
    %c0_48 = arith.constant 0 : index
    %56 = vector.load %arg13[%c4_46, %c0_47, %c0_48] : memref<10x8x2xf32, #tpu.memory_space<vmem>>, vector<1x8x2xf32>
    %57 = vector.shape_cast %56 : vector<1x8x2xf32> to vector<8x2xf32>
    %c5_49 = arith.constant 5 : index
    %c0_50 = arith.constant 0 : index
    %c0_51 = arith.constant 0 : index
    %58 = vector.load %arg13[%c5_49, %c0_50, %c0_51] : memref<10x8x2xf32, #tpu.memory_space<vmem>>, vector<1x8x2xf32>
    %59 = vector.shape_cast %58 : vector<1x8x2xf32> to vector<8x2xf32>
    %c6_52 = arith.constant 6 : index
    %c0_53 = arith.constant 0 : index
    %c0_54 = arith.constant 0 : index
    %60 = vector.load %arg13[%c6_52, %c0_53, %c0_54] : memref<10x8x2xf32, #tpu.memory_space<vmem>>, vector<1x8x2xf32>
    %61 = vector.shape_cast %60 : vector<1x8x2xf32> to vector<8x2xf32>
    %c7_55 = arith.constant 7 : index
    %c0_56 = arith.constant 0 : index
    %c0_57 = arith.constant 0 : index
    %62 = vector.load %arg13[%c7_55, %c0_56, %c0_57] : memref<10x8x2xf32, #tpu.memory_space<vmem>>, vector<1x8x2xf32>
    %63 = vector.shape_cast %62 : vector<1x8x2xf32> to vector<8x2xf32>
    %c8_58 = arith.constant 8 : index
    %c0_59 = arith.constant 0 : index
    %c0_60 = arith.constant 0 : index
    %64 = vector.load %arg13[%c8_58, %c0_59, %c0_60] : memref<10x8x2xf32, #tpu.memory_space<vmem>>, vector<1x8x2xf32>
    %65 = vector.shape_cast %64 : vector<1x8x2xf32> to vector<8x2xf32>
    %c9_61 = arith.constant 9 : index
    %c0_62 = arith.constant 0 : index
    %c0_63 = arith.constant 0 : index
    %66 = vector.load %arg13[%c9_61, %c0_62, %c0_63] : memref<10x8x2xf32, #tpu.memory_space<vmem>>, vector<1x8x2xf32>
    %67 = vector.shape_cast %66 : vector<1x8x2xf32> to vector<8x2xf32>
    %c0_i32_64 = arith.constant 0 : i32
    %c8_i32 = arith.constant 8 : i32
    %68 = arith.addi %c0_i32_64, %c8_i32 : i32
    %c1_i32 = arith.constant 1 : i32
    %69:14 = scf.for %arg14 = %c0_i32_64 to %68 step %c1_i32 iter_args(%arg15 = %41, %arg16 = %43, %arg17 = %45, %arg18 = %47, %arg19 = %49, %arg20 = %51, %arg21 = %53, %arg22 = %55, %arg23 = %57, %arg24 = %59, %arg25 = %61, %arg26 = %63, %arg27 = %65, %arg28 = %67) -> (vector<8x2xf32>, vector<8x2xf32>, vector<8x2xf32>, vector<8x2xf32>, vector<8x2xf32>, vector<8x2xf32>, vector<8x2xf32>, vector<8x2xf32>, vector<8x2xf32>, vector<8x2xf32>, vector<8x2xf32>, vector<8x2xf32>, vector<8x2xf32>, vector<8x2xf32>)  : i32 {
      %112 = math.tanh %arg15 : vector<8x2xf32>
      %113 = math.tanh %arg16 : vector<8x2xf32>
      %114 = math.tanh %arg17 : vector<8x2xf32>
      %115 = math.tanh %arg18 : vector<8x2xf32>
      %116 = vector.broadcast %0 : f32 to vector<8x2xf32>
      %117 = arith.mulf %116, %arg15 : vector<8x2xf32>
      %cst = arith.constant 0.000000e+00 : f32
      %118 = vector.broadcast %cst : f32 to vector<8x2xf32>
      %119 = arith.addf %118, %117 : vector<8x2xf32>
      %120 = vector.broadcast %1 : f32 to vector<8x2xf32>
      %121 = arith.mulf %120, %arg16 : vector<8x2xf32>
      %122 = arith.addf %119, %121 : vector<8x2xf32>
      %123 = vector.broadcast %2 : f32 to vector<8x2xf32>
      %124 = arith.mulf %123, %arg17 : vector<8x2xf32>
      %125 = arith.addf %122, %124 : vector<8x2xf32>
      %126 = vector.broadcast %3 : f32 to vector<8x2xf32>
      %127 = arith.mulf %126, %arg18 : vector<8x2xf32>
      %128 = arith.addf %125, %127 : vector<8x2xf32>
      %cst_108 = arith.constant 1.000000e-01 : f32
      %129 = vector.broadcast %cst_108 : f32 to vector<8x2xf32>
      %130 = arith.mulf %129, %112 : vector<8x2xf32>
      %131 = arith.addf %128, %130 : vector<8x2xf32>
      %132 = vector.broadcast %4 : f32 to vector<8x2xf32>
      %133 = arith.mulf %132, %arg15 : vector<8x2xf32>
      %cst_109 = arith.constant 0.000000e+00 : f32
      %134 = vector.broadcast %cst_109 : f32 to vector<8x2xf32>
      %135 = arith.addf %134, %133 : vector<8x2xf32>
      %136 = vector.broadcast %5 : f32 to vector<8x2xf32>
      %137 = arith.mulf %136, %arg16 : vector<8x2xf32>
      %138 = arith.addf %135, %137 : vector<8x2xf32>
      %139 = vector.broadcast %6 : f32 to vector<8x2xf32>
      %140 = arith.mulf %139, %arg17 : vector<8x2xf32>
      %141 = arith.addf %138, %140 : vector<8x2xf32>
      %142 = vector.broadcast %7 : f32 to vector<8x2xf32>
      %143 = arith.mulf %142, %arg18 : vector<8x2xf32>
      %144 = arith.addf %141, %143 : vector<8x2xf32>
      %cst_110 = arith.constant 1.000000e-01 : f32
      %145 = vector.broadcast %cst_110 : f32 to vector<8x2xf32>
      %146 = arith.mulf %145, %113 : vector<8x2xf32>
      %147 = arith.addf %144, %146 : vector<8x2xf32>
      %148 = vector.broadcast %8 : f32 to vector<8x2xf32>
      %149 = arith.mulf %148, %arg15 : vector<8x2xf32>
      %cst_111 = arith.constant 0.000000e+00 : f32
      %150 = vector.broadcast %cst_111 : f32 to vector<8x2xf32>
      %151 = arith.addf %150, %149 : vector<8x2xf32>
      %152 = vector.broadcast %9 : f32 to vector<8x2xf32>
      %153 = arith.mulf %152, %arg16 : vector<8x2xf32>
      %154 = arith.addf %151, %153 : vector<8x2xf32>
      %155 = vector.broadcast %10 : f32 to vector<8x2xf32>
      %156 = arith.mulf %155, %arg17 : vector<8x2xf32>
      %157 = arith.addf %154, %156 : vector<8x2xf32>
      %158 = vector.broadcast %11 : f32 to vector<8x2xf32>
      %159 = arith.mulf %158, %arg18 : vector<8x2xf32>
      %160 = arith.addf %157, %159 : vector<8x2xf32>
      %cst_112 = arith.constant 1.000000e-01 : f32
      %161 = vector.broadcast %cst_112 : f32 to vector<8x2xf32>
      %162 = arith.mulf %161, %114 : vector<8x2xf32>
      %163 = arith.addf %160, %162 : vector<8x2xf32>
      %164 = vector.broadcast %12 : f32 to vector<8x2xf32>
      %165 = arith.mulf %164, %arg15 : vector<8x2xf32>
      %cst_113 = arith.constant 0.000000e+00 : f32
      %166 = vector.broadcast %cst_113 : f32 to vector<8x2xf32>
      %167 = arith.addf %166, %165 : vector<8x2xf32>
      %168 = vector.broadcast %13 : f32 to vector<8x2xf32>
      %169 = arith.mulf %168, %arg16 : vector<8x2xf32>
      %170 = arith.addf %167, %169 : vector<8x2xf32>
      %171 = vector.broadcast %14 : f32 to vector<8x2xf32>
      %172 = arith.mulf %171, %arg17 : vector<8x2xf32>
      %173 = arith.addf %170, %172 : vector<8x2xf32>
      %174 = vector.broadcast %15 : f32 to vector<8x2xf32>
      %175 = arith.mulf %174, %arg18 : vector<8x2xf32>
      %176 = arith.addf %173, %175 : vector<8x2xf32>
      %cst_114 = arith.constant 1.000000e-01 : f32
      %177 = vector.broadcast %cst_114 : f32 to vector<8x2xf32>
      %178 = arith.mulf %177, %115 : vector<8x2xf32>
      %179 = arith.addf %176, %178 : vector<8x2xf32>
      %180 = arith.mulf %112, %112 : vector<8x2xf32>
      %cst_115 = arith.constant 1.000000e+00 : f32
      %181 = vector.broadcast %cst_115 : f32 to vector<8x2xf32>
      %182 = arith.subf %181, %180 : vector<8x2xf32>
      %cst_116 = arith.constant 1.000000e-01 : f32
      %183 = vector.broadcast %cst_116 : f32 to vector<8x2xf32>
      %184 = arith.mulf %183, %182 : vector<8x2xf32>
      %185 = vector.broadcast %0 : f32 to vector<8x2xf32>
      %186 = arith.addf %185, %184 : vector<8x2xf32>
      %187 = arith.mulf %113, %113 : vector<8x2xf32>
      %cst_117 = arith.constant 1.000000e+00 : f32
      %188 = vector.broadcast %cst_117 : f32 to vector<8x2xf32>
      %189 = arith.subf %188, %187 : vector<8x2xf32>
      %cst_118 = arith.constant 1.000000e-01 : f32
      %190 = vector.broadcast %cst_118 : f32 to vector<8x2xf32>
      %191 = arith.mulf %190, %189 : vector<8x2xf32>
      %192 = vector.broadcast %5 : f32 to vector<8x2xf32>
      %193 = arith.addf %192, %191 : vector<8x2xf32>
      %194 = arith.mulf %114, %114 : vector<8x2xf32>
      %cst_119 = arith.constant 1.000000e+00 : f32
      %195 = vector.broadcast %cst_119 : f32 to vector<8x2xf32>
      %196 = arith.subf %195, %194 : vector<8x2xf32>
      %cst_120 = arith.constant 1.000000e-01 : f32
      %197 = vector.broadcast %cst_120 : f32 to vector<8x2xf32>
      %198 = arith.mulf %197, %196 : vector<8x2xf32>
      %199 = vector.broadcast %10 : f32 to vector<8x2xf32>
      %200 = arith.addf %199, %198 : vector<8x2xf32>
      %201 = arith.mulf %115, %115 : vector<8x2xf32>
      %cst_121 = arith.constant 1.000000e+00 : f32
      %202 = vector.broadcast %cst_121 : f32 to vector<8x2xf32>
      %203 = arith.subf %202, %201 : vector<8x2xf32>
      %cst_122 = arith.constant 1.000000e-01 : f32
      %204 = vector.broadcast %cst_122 : f32 to vector<8x2xf32>
      %205 = arith.mulf %204, %203 : vector<8x2xf32>
      %206 = vector.broadcast %15 : f32 to vector<8x2xf32>
      %207 = arith.addf %206, %205 : vector<8x2xf32>
      %208 = arith.mulf %186, %arg19 : vector<8x2xf32>
      %cst_123 = arith.constant 0.000000e+00 : f32
      %209 = vector.broadcast %cst_123 : f32 to vector<8x2xf32>
      %210 = arith.addf %209, %208 : vector<8x2xf32>
      %211 = vector.broadcast %1 : f32 to vector<8x2xf32>
      %212 = arith.mulf %211, %arg20 : vector<8x2xf32>
      %213 = arith.addf %210, %212 : vector<8x2xf32>
      %214 = vector.broadcast %2 : f32 to vector<8x2xf32>
      %215 = arith.mulf %214, %arg21 : vector<8x2xf32>
      %216 = arith.addf %213, %215 : vector<8x2xf32>
      %217 = vector.broadcast %3 : f32 to vector<8x2xf32>
      %218 = arith.mulf %217, %arg22 : vector<8x2xf32>
      %219 = arith.addf %216, %218 : vector<8x2xf32>
      %220 = arith.mulf %186, %arg20 : vector<8x2xf32>
      %cst_124 = arith.constant 0.000000e+00 : f32
      %221 = vector.broadcast %cst_124 : f32 to vector<8x2xf32>
      %222 = arith.addf %221, %220 : vector<8x2xf32>
      %223 = vector.broadcast %1 : f32 to vector<8x2xf32>
      %224 = arith.mulf %223, %arg23 : vector<8x2xf32>
      %225 = arith.addf %222, %224 : vector<8x2xf32>
      %226 = vector.broadcast %2 : f32 to vector<8x2xf32>
      %227 = arith.mulf %226, %arg24 : vector<8x2xf32>
      %228 = arith.addf %225, %227 : vector<8x2xf32>
      %229 = vector.broadcast %3 : f32 to vector<8x2xf32>
      %230 = arith.mulf %229, %arg25 : vector<8x2xf32>
      %231 = arith.addf %228, %230 : vector<8x2xf32>
      %232 = arith.mulf %186, %arg21 : vector<8x2xf32>
      %cst_125 = arith.constant 0.000000e+00 : f32
      %233 = vector.broadcast %cst_125 : f32 to vector<8x2xf32>
      %234 = arith.addf %233, %232 : vector<8x2xf32>
      %235 = vector.broadcast %1 : f32 to vector<8x2xf32>
      %236 = arith.mulf %235, %arg24 : vector<8x2xf32>
      %237 = arith.addf %234, %236 : vector<8x2xf32>
      %238 = vector.broadcast %2 : f32 to vector<8x2xf32>
      %239 = arith.mulf %238, %arg26 : vector<8x2xf32>
      %240 = arith.addf %237, %239 : vector<8x2xf32>
      %241 = vector.broadcast %3 : f32 to vector<8x2xf32>
      %242 = arith.mulf %241, %arg27 : vector<8x2xf32>
      %243 = arith.addf %240, %242 : vector<8x2xf32>
      %244 = arith.mulf %186, %arg22 : vector<8x2xf32>
      %cst_126 = arith.constant 0.000000e+00 : f32
      %245 = vector.broadcast %cst_126 : f32 to vector<8x2xf32>
      %246 = arith.addf %245, %244 : vector<8x2xf32>
      %247 = vector.broadcast %1 : f32 to vector<8x2xf32>
      %248 = arith.mulf %247, %arg25 : vector<8x2xf32>
      %249 = arith.addf %246, %248 : vector<8x2xf32>
      %250 = vector.broadcast %2 : f32 to vector<8x2xf32>
      %251 = arith.mulf %250, %arg27 : vector<8x2xf32>
      %252 = arith.addf %249, %251 : vector<8x2xf32>
      %253 = vector.broadcast %3 : f32 to vector<8x2xf32>
      %254 = arith.mulf %253, %arg28 : vector<8x2xf32>
      %255 = arith.addf %252, %254 : vector<8x2xf32>
      %256 = vector.broadcast %4 : f32 to vector<8x2xf32>
      %257 = arith.mulf %256, %arg19 : vector<8x2xf32>
      %cst_127 = arith.constant 0.000000e+00 : f32
      %258 = vector.broadcast %cst_127 : f32 to vector<8x2xf32>
      %259 = arith.addf %258, %257 : vector<8x2xf32>
      %260 = arith.mulf %193, %arg20 : vector<8x2xf32>
      %261 = arith.addf %259, %260 : vector<8x2xf32>
      %262 = vector.broadcast %6 : f32 to vector<8x2xf32>
      %263 = arith.mulf %262, %arg21 : vector<8x2xf32>
      %264 = arith.addf %261, %263 : vector<8x2xf32>
      %265 = vector.broadcast %7 : f32 to vector<8x2xf32>
      %266 = arith.mulf %265, %arg22 : vector<8x2xf32>
      %267 = arith.addf %264, %266 : vector<8x2xf32>
      %268 = vector.broadcast %4 : f32 to vector<8x2xf32>
      %269 = arith.mulf %268, %arg20 : vector<8x2xf32>
      %cst_128 = arith.constant 0.000000e+00 : f32
      %270 = vector.broadcast %cst_128 : f32 to vector<8x2xf32>
      %271 = arith.addf %270, %269 : vector<8x2xf32>
      %272 = arith.mulf %193, %arg23 : vector<8x2xf32>
      %273 = arith.addf %271, %272 : vector<8x2xf32>
      %274 = vector.broadcast %6 : f32 to vector<8x2xf32>
      %275 = arith.mulf %274, %arg24 : vector<8x2xf32>
      %276 = arith.addf %273, %275 : vector<8x2xf32>
      %277 = vector.broadcast %7 : f32 to vector<8x2xf32>
      %278 = arith.mulf %277, %arg25 : vector<8x2xf32>
      %279 = arith.addf %276, %278 : vector<8x2xf32>
      %280 = vector.broadcast %4 : f32 to vector<8x2xf32>
      %281 = arith.mulf %280, %arg21 : vector<8x2xf32>
      %cst_129 = arith.constant 0.000000e+00 : f32
      %282 = vector.broadcast %cst_129 : f32 to vector<8x2xf32>
      %283 = arith.addf %282, %281 : vector<8x2xf32>
      %284 = arith.mulf %193, %arg24 : vector<8x2xf32>
      %285 = arith.addf %283, %284 : vector<8x2xf32>
      %286 = vector.broadcast %6 : f32 to vector<8x2xf32>
      %287 = arith.mulf %286, %arg26 : vector<8x2xf32>
      %288 = arith.addf %285, %287 : vector<8x2xf32>
      %289 = vector.broadcast %7 : f32 to vector<8x2xf32>
      %290 = arith.mulf %289, %arg27 : vector<8x2xf32>
      %291 = arith.addf %288, %290 : vector<8x2xf32>
      %292 = vector.broadcast %4 : f32 to vector<8x2xf32>
      %293 = arith.mulf %292, %arg22 : vector<8x2xf32>
      %cst_130 = arith.constant 0.000000e+00 : f32
      %294 = vector.broadcast %cst_130 : f32 to vector<8x2xf32>
      %295 = arith.addf %294, %293 : vector<8x2xf32>
      %296 = arith.mulf %193, %arg25 : vector<8x2xf32>
      %297 = arith.addf %295, %296 : vector<8x2xf32>
      %298 = vector.broadcast %6 : f32 to vector<8x2xf32>
      %299 = arith.mulf %298, %arg27 : vector<8x2xf32>
      %300 = arith.addf %297, %299 : vector<8x2xf32>
      %301 = vector.broadcast %7 : f32 to vector<8x2xf32>
      %302 = arith.mulf %301, %arg28 : vector<8x2xf32>
      %303 = arith.addf %300, %302 : vector<8x2xf32>
      %304 = vector.broadcast %8 : f32 to vector<8x2xf32>
      %305 = arith.mulf %304, %arg19 : vector<8x2xf32>
      %cst_131 = arith.constant 0.000000e+00 : f32
      %306 = vector.broadcast %cst_131 : f32 to vector<8x2xf32>
      %307 = arith.addf %306, %305 : vector<8x2xf32>
      %308 = vector.broadcast %9 : f32 to vector<8x2xf32>
      %309 = arith.mulf %308, %arg20 : vector<8x2xf32>
      %310 = arith.addf %307, %309 : vector<8x2xf32>
      %311 = arith.mulf %200, %arg21 : vector<8x2xf32>
      %312 = arith.addf %310, %311 : vector<8x2xf32>
      %313 = vector.broadcast %11 : f32 to vector<8x2xf32>
      %314 = arith.mulf %313, %arg22 : vector<8x2xf32>
      %315 = arith.addf %312, %314 : vector<8x2xf32>
      %316 = vector.broadcast %8 : f32 to vector<8x2xf32>
      %317 = arith.mulf %316, %arg20 : vector<8x2xf32>
      %cst_132 = arith.constant 0.000000e+00 : f32
      %318 = vector.broadcast %cst_132 : f32 to vector<8x2xf32>
      %319 = arith.addf %318, %317 : vector<8x2xf32>
      %320 = vector.broadcast %9 : f32 to vector<8x2xf32>
      %321 = arith.mulf %320, %arg23 : vector<8x2xf32>
      %322 = arith.addf %319, %321 : vector<8x2xf32>
      %323 = arith.mulf %200, %arg24 : vector<8x2xf32>
      %324 = arith.addf %322, %323 : vector<8x2xf32>
      %325 = vector.broadcast %11 : f32 to vector<8x2xf32>
      %326 = arith.mulf %325, %arg25 : vector<8x2xf32>
      %327 = arith.addf %324, %326 : vector<8x2xf32>
      %328 = vector.broadcast %8 : f32 to vector<8x2xf32>
      %329 = arith.mulf %328, %arg21 : vector<8x2xf32>
      %cst_133 = arith.constant 0.000000e+00 : f32
      %330 = vector.broadcast %cst_133 : f32 to vector<8x2xf32>
      %331 = arith.addf %330, %329 : vector<8x2xf32>
      %332 = vector.broadcast %9 : f32 to vector<8x2xf32>
      %333 = arith.mulf %332, %arg24 : vector<8x2xf32>
      %334 = arith.addf %331, %333 : vector<8x2xf32>
      %335 = arith.mulf %200, %arg26 : vector<8x2xf32>
      %336 = arith.addf %334, %335 : vector<8x2xf32>
      %337 = vector.broadcast %11 : f32 to vector<8x2xf32>
      %338 = arith.mulf %337, %arg27 : vector<8x2xf32>
      %339 = arith.addf %336, %338 : vector<8x2xf32>
      %340 = vector.broadcast %8 : f32 to vector<8x2xf32>
      %341 = arith.mulf %340, %arg22 : vector<8x2xf32>
      %cst_134 = arith.constant 0.000000e+00 : f32
      %342 = vector.broadcast %cst_134 : f32 to vector<8x2xf32>
      %343 = arith.addf %342, %341 : vector<8x2xf32>
      %344 = vector.broadcast %9 : f32 to vector<8x2xf32>
      %345 = arith.mulf %344, %arg25 : vector<8x2xf32>
      %346 = arith.addf %343, %345 : vector<8x2xf32>
      %347 = arith.mulf %200, %arg27 : vector<8x2xf32>
      %348 = arith.addf %346, %347 : vector<8x2xf32>
      %349 = vector.broadcast %11 : f32 to vector<8x2xf32>
      %350 = arith.mulf %349, %arg28 : vector<8x2xf32>
      %351 = arith.addf %348, %350 : vector<8x2xf32>
      %352 = vector.broadcast %12 : f32 to vector<8x2xf32>
      %353 = arith.mulf %352, %arg19 : vector<8x2xf32>
      %cst_135 = arith.constant 0.000000e+00 : f32
      %354 = vector.broadcast %cst_135 : f32 to vector<8x2xf32>
      %355 = arith.addf %354, %353 : vector<8x2xf32>
      %356 = vector.broadcast %13 : f32 to vector<8x2xf32>
      %357 = arith.mulf %356, %arg20 : vector<8x2xf32>
      %358 = arith.addf %355, %357 : vector<8x2xf32>
      %359 = vector.broadcast %14 : f32 to vector<8x2xf32>
      %360 = arith.mulf %359, %arg21 : vector<8x2xf32>
      %361 = arith.addf %358, %360 : vector<8x2xf32>
      %362 = arith.mulf %207, %arg22 : vector<8x2xf32>
      %363 = arith.addf %361, %362 : vector<8x2xf32>
      %364 = vector.broadcast %12 : f32 to vector<8x2xf32>
      %365 = arith.mulf %364, %arg20 : vector<8x2xf32>
      %cst_136 = arith.constant 0.000000e+00 : f32
      %366 = vector.broadcast %cst_136 : f32 to vector<8x2xf32>
      %367 = arith.addf %366, %365 : vector<8x2xf32>
      %368 = vector.broadcast %13 : f32 to vector<8x2xf32>
      %369 = arith.mulf %368, %arg23 : vector<8x2xf32>
      %370 = arith.addf %367, %369 : vector<8x2xf32>
      %371 = vector.broadcast %14 : f32 to vector<8x2xf32>
      %372 = arith.mulf %371, %arg24 : vector<8x2xf32>
      %373 = arith.addf %370, %372 : vector<8x2xf32>
      %374 = arith.mulf %207, %arg25 : vector<8x2xf32>
      %375 = arith.addf %373, %374 : vector<8x2xf32>
      %376 = vector.broadcast %12 : f32 to vector<8x2xf32>
      %377 = arith.mulf %376, %arg21 : vector<8x2xf32>
      %cst_137 = arith.constant 0.000000e+00 : f32
      %378 = vector.broadcast %cst_137 : f32 to vector<8x2xf32>
      %379 = arith.addf %378, %377 : vector<8x2xf32>
      %380 = vector.broadcast %13 : f32 to vector<8x2xf32>
      %381 = arith.mulf %380, %arg24 : vector<8x2xf32>
      %382 = arith.addf %379, %381 : vector<8x2xf32>
      %383 = vector.broadcast %14 : f32 to vector<8x2xf32>
      %384 = arith.mulf %383, %arg26 : vector<8x2xf32>
      %385 = arith.addf %382, %384 : vector<8x2xf32>
      %386 = arith.mulf %207, %arg27 : vector<8x2xf32>
      %387 = arith.addf %385, %386 : vector<8x2xf32>
      %388 = vector.broadcast %12 : f32 to vector<8x2xf32>
      %389 = arith.mulf %388, %arg22 : vector<8x2xf32>
      %cst_138 = arith.constant 0.000000e+00 : f32
      %390 = vector.broadcast %cst_138 : f32 to vector<8x2xf32>
      %391 = arith.addf %390, %389 : vector<8x2xf32>
      %392 = vector.broadcast %13 : f32 to vector<8x2xf32>
      %393 = arith.mulf %392, %arg25 : vector<8x2xf32>
      %394 = arith.addf %391, %393 : vector<8x2xf32>
      %395 = vector.broadcast %14 : f32 to vector<8x2xf32>
      %396 = arith.mulf %395, %arg27 : vector<8x2xf32>
      %397 = arith.addf %394, %396 : vector<8x2xf32>
      %398 = arith.mulf %207, %arg28 : vector<8x2xf32>
      %399 = arith.addf %397, %398 : vector<8x2xf32>
      %400 = arith.mulf %219, %186 : vector<8x2xf32>
      %cst_139 = arith.constant 0.000000e+00 : f32
      %401 = vector.broadcast %cst_139 : f32 to vector<8x2xf32>
      %402 = arith.addf %401, %400 : vector<8x2xf32>
      %403 = vector.broadcast %1 : f32 to vector<8x2xf32>
      %404 = arith.mulf %231, %403 : vector<8x2xf32>
      %405 = arith.addf %402, %404 : vector<8x2xf32>
      %406 = vector.broadcast %2 : f32 to vector<8x2xf32>
      %407 = arith.mulf %243, %406 : vector<8x2xf32>
      %408 = arith.addf %405, %407 : vector<8x2xf32>
      %409 = vector.broadcast %3 : f32 to vector<8x2xf32>
      %410 = arith.mulf %255, %409 : vector<8x2xf32>
      %411 = arith.addf %408, %410 : vector<8x2xf32>
      %412 = vector.broadcast %24 : f32 to vector<8x2xf32>
      %413 = arith.addf %411, %412 : vector<8x2xf32>
      %414 = vector.broadcast %4 : f32 to vector<8x2xf32>
      %415 = arith.mulf %219, %414 : vector<8x2xf32>
      %cst_140 = arith.constant 0.000000e+00 : f32
      %416 = vector.broadcast %cst_140 : f32 to vector<8x2xf32>
      %417 = arith.addf %416, %415 : vector<8x2xf32>
      %418 = arith.mulf %231, %193 : vector<8x2xf32>
      %419 = arith.addf %417, %418 : vector<8x2xf32>
      %420 = vector.broadcast %6 : f32 to vector<8x2xf32>
      %421 = arith.mulf %243, %420 : vector<8x2xf32>
      %422 = arith.addf %419, %421 : vector<8x2xf32>
      %423 = vector.broadcast %7 : f32 to vector<8x2xf32>
      %424 = arith.mulf %255, %423 : vector<8x2xf32>
      %425 = arith.addf %422, %424 : vector<8x2xf32>
      %426 = vector.broadcast %25 : f32 to vector<8x2xf32>
      %427 = arith.addf %425, %426 : vector<8x2xf32>
      %428 = vector.broadcast %8 : f32 to vector<8x2xf32>
      %429 = arith.mulf %219, %428 : vector<8x2xf32>
      %cst_141 = arith.constant 0.000000e+00 : f32
      %430 = vector.broadcast %cst_141 : f32 to vector<8x2xf32>
      %431 = arith.addf %430, %429 : vector<8x2xf32>
      %432 = vector.broadcast %9 : f32 to vector<8x2xf32>
      %433 = arith.mulf %231, %432 : vector<8x2xf32>
      %434 = arith.addf %431, %433 : vector<8x2xf32>
      %435 = arith.mulf %243, %200 : vector<8x2xf32>
      %436 = arith.addf %434, %435 : vector<8x2xf32>
      %437 = vector.broadcast %11 : f32 to vector<8x2xf32>
      %438 = arith.mulf %255, %437 : vector<8x2xf32>
      %439 = arith.addf %436, %438 : vector<8x2xf32>
      %440 = vector.broadcast %26 : f32 to vector<8x2xf32>
      %441 = arith.addf %439, %440 : vector<8x2xf32>
      %442 = vector.broadcast %12 : f32 to vector<8x2xf32>
      %443 = arith.mulf %219, %442 : vector<8x2xf32>
      %cst_142 = arith.constant 0.000000e+00 : f32
      %444 = vector.broadcast %cst_142 : f32 to vector<8x2xf32>
      %445 = arith.addf %444, %443 : vector<8x2xf32>
      %446 = vector.broadcast %13 : f32 to vector<8x2xf32>
      %447 = arith.mulf %231, %446 : vector<8x2xf32>
      %448 = arith.addf %445, %447 : vector<8x2xf32>
      %449 = vector.broadcast %14 : f32 to vector<8x2xf32>
      %450 = arith.mulf %243, %449 : vector<8x2xf32>
      %451 = arith.addf %448, %450 : vector<8x2xf32>
      %452 = arith.mulf %255, %207 : vector<8x2xf32>
      %453 = arith.addf %451, %452 : vector<8x2xf32>
      %454 = vector.broadcast %27 : f32 to vector<8x2xf32>
      %455 = arith.addf %453, %454 : vector<8x2xf32>
      %456 = vector.broadcast %4 : f32 to vector<8x2xf32>
      %457 = arith.mulf %267, %456 : vector<8x2xf32>
      %cst_143 = arith.constant 0.000000e+00 : f32
      %458 = vector.broadcast %cst_143 : f32 to vector<8x2xf32>
      %459 = arith.addf %458, %457 : vector<8x2xf32>
      %460 = arith.mulf %279, %193 : vector<8x2xf32>
      %461 = arith.addf %459, %460 : vector<8x2xf32>
      %462 = vector.broadcast %6 : f32 to vector<8x2xf32>
      %463 = arith.mulf %291, %462 : vector<8x2xf32>
      %464 = arith.addf %461, %463 : vector<8x2xf32>
      %465 = vector.broadcast %7 : f32 to vector<8x2xf32>
      %466 = arith.mulf %303, %465 : vector<8x2xf32>
      %467 = arith.addf %464, %466 : vector<8x2xf32>
      %468 = vector.broadcast %28 : f32 to vector<8x2xf32>
      %469 = arith.addf %467, %468 : vector<8x2xf32>
      %470 = vector.broadcast %8 : f32 to vector<8x2xf32>
      %471 = arith.mulf %267, %470 : vector<8x2xf32>
      %cst_144 = arith.constant 0.000000e+00 : f32
      %472 = vector.broadcast %cst_144 : f32 to vector<8x2xf32>
      %473 = arith.addf %472, %471 : vector<8x2xf32>
      %474 = vector.broadcast %9 : f32 to vector<8x2xf32>
      %475 = arith.mulf %279, %474 : vector<8x2xf32>
      %476 = arith.addf %473, %475 : vector<8x2xf32>
      %477 = arith.mulf %291, %200 : vector<8x2xf32>
      %478 = arith.addf %476, %477 : vector<8x2xf32>
      %479 = vector.broadcast %11 : f32 to vector<8x2xf32>
      %480 = arith.mulf %303, %479 : vector<8x2xf32>
      %481 = arith.addf %478, %480 : vector<8x2xf32>
      %482 = vector.broadcast %29 : f32 to vector<8x2xf32>
      %483 = arith.addf %481, %482 : vector<8x2xf32>
      %484 = vector.broadcast %12 : f32 to vector<8x2xf32>
      %485 = arith.mulf %267, %484 : vector<8x2xf32>
      %cst_145 = arith.constant 0.000000e+00 : f32
      %486 = vector.broadcast %cst_145 : f32 to vector<8x2xf32>
      %487 = arith.addf %486, %485 : vector<8x2xf32>
      %488 = vector.broadcast %13 : f32 to vector<8x2xf32>
      %489 = arith.mulf %279, %488 : vector<8x2xf32>
      %490 = arith.addf %487, %489 : vector<8x2xf32>
      %491 = vector.broadcast %14 : f32 to vector<8x2xf32>
      %492 = arith.mulf %291, %491 : vector<8x2xf32>
      %493 = arith.addf %490, %492 : vector<8x2xf32>
      %494 = arith.mulf %303, %207 : vector<8x2xf32>
      %495 = arith.addf %493, %494 : vector<8x2xf32>
      %496 = vector.broadcast %30 : f32 to vector<8x2xf32>
      %497 = arith.addf %495, %496 : vector<8x2xf32>
      %498 = vector.broadcast %8 : f32 to vector<8x2xf32>
      %499 = arith.mulf %315, %498 : vector<8x2xf32>
      %cst_146 = arith.constant 0.000000e+00 : f32
      %500 = vector.broadcast %cst_146 : f32 to vector<8x2xf32>
      %501 = arith.addf %500, %499 : vector<8x2xf32>
      %502 = vector.broadcast %9 : f32 to vector<8x2xf32>
      %503 = arith.mulf %327, %502 : vector<8x2xf32>
      %504 = arith.addf %501, %503 : vector<8x2xf32>
      %505 = arith.mulf %339, %200 : vector<8x2xf32>
      %506 = arith.addf %504, %505 : vector<8x2xf32>
      %507 = vector.broadcast %11 : f32 to vector<8x2xf32>
      %508 = arith.mulf %351, %507 : vector<8x2xf32>
      %509 = arith.addf %506, %508 : vector<8x2xf32>
      %510 = vector.broadcast %31 : f32 to vector<8x2xf32>
      %511 = arith.addf %509, %510 : vector<8x2xf32>
      %512 = vector.broadcast %12 : f32 to vector<8x2xf32>
      %513 = arith.mulf %315, %512 : vector<8x2xf32>
      %cst_147 = arith.constant 0.000000e+00 : f32
      %514 = vector.broadcast %cst_147 : f32 to vector<8x2xf32>
      %515 = arith.addf %514, %513 : vector<8x2xf32>
      %516 = vector.broadcast %13 : f32 to vector<8x2xf32>
      %517 = arith.mulf %327, %516 : vector<8x2xf32>
      %518 = arith.addf %515, %517 : vector<8x2xf32>
      %519 = vector.broadcast %14 : f32 to vector<8x2xf32>
      %520 = arith.mulf %339, %519 : vector<8x2xf32>
      %521 = arith.addf %518, %520 : vector<8x2xf32>
      %522 = arith.mulf %351, %207 : vector<8x2xf32>
      %523 = arith.addf %521, %522 : vector<8x2xf32>
      %524 = vector.broadcast %32 : f32 to vector<8x2xf32>
      %525 = arith.addf %523, %524 : vector<8x2xf32>
      %526 = vector.broadcast %12 : f32 to vector<8x2xf32>
      %527 = arith.mulf %363, %526 : vector<8x2xf32>
      %cst_148 = arith.constant 0.000000e+00 : f32
      %528 = vector.broadcast %cst_148 : f32 to vector<8x2xf32>
      %529 = arith.addf %528, %527 : vector<8x2xf32>
      %530 = vector.broadcast %13 : f32 to vector<8x2xf32>
      %531 = arith.mulf %375, %530 : vector<8x2xf32>
      %532 = arith.addf %529, %531 : vector<8x2xf32>
      %533 = vector.broadcast %14 : f32 to vector<8x2xf32>
      %534 = arith.mulf %387, %533 : vector<8x2xf32>
      %535 = arith.addf %532, %534 : vector<8x2xf32>
      %536 = arith.mulf %399, %207 : vector<8x2xf32>
      %537 = arith.addf %535, %536 : vector<8x2xf32>
      %538 = vector.broadcast %33 : f32 to vector<8x2xf32>
      %539 = arith.addf %537, %538 : vector<8x2xf32>
      %540 = vector.broadcast %16 : f32 to vector<8x2xf32>
      %541 = arith.mulf %540, %131 : vector<8x2xf32>
      %cst_149 = arith.constant 0.000000e+00 : f32
      %542 = vector.broadcast %cst_149 : f32 to vector<8x2xf32>
      %543 = arith.addf %542, %541 : vector<8x2xf32>
      %544 = vector.broadcast %17 : f32 to vector<8x2xf32>
      %545 = arith.mulf %544, %147 : vector<8x2xf32>
      %546 = arith.addf %543, %545 : vector<8x2xf32>
      %547 = vector.broadcast %18 : f32 to vector<8x2xf32>
      %548 = arith.mulf %547, %163 : vector<8x2xf32>
      %549 = arith.addf %546, %548 : vector<8x2xf32>
      %550 = vector.broadcast %19 : f32 to vector<8x2xf32>
      %551 = arith.mulf %550, %179 : vector<8x2xf32>
      %552 = arith.addf %549, %551 : vector<8x2xf32>
      %553 = vector.broadcast %20 : f32 to vector<8x2xf32>
      %554 = arith.mulf %553, %131 : vector<8x2xf32>
      %cst_150 = arith.constant 0.000000e+00 : f32
      %555 = vector.broadcast %cst_150 : f32 to vector<8x2xf32>
      %556 = arith.addf %555, %554 : vector<8x2xf32>
      %557 = vector.broadcast %21 : f32 to vector<8x2xf32>
      %558 = arith.mulf %557, %147 : vector<8x2xf32>
      %559 = arith.addf %556, %558 : vector<8x2xf32>
      %560 = vector.broadcast %22 : f32 to vector<8x2xf32>
      %561 = arith.mulf %560, %163 : vector<8x2xf32>
      %562 = arith.addf %559, %561 : vector<8x2xf32>
      %563 = vector.broadcast %23 : f32 to vector<8x2xf32>
      %564 = arith.mulf %563, %179 : vector<8x2xf32>
      %565 = arith.addf %562, %564 : vector<8x2xf32>
      %566 = vector.broadcast %16 : f32 to vector<8x2xf32>
      %567 = arith.mulf %413, %566 : vector<8x2xf32>
      %cst_151 = arith.constant 0.000000e+00 : f32
      %568 = vector.broadcast %cst_151 : f32 to vector<8x2xf32>
      %569 = arith.addf %568, %567 : vector<8x2xf32>
      %570 = vector.broadcast %17 : f32 to vector<8x2xf32>
      %571 = arith.mulf %427, %570 : vector<8x2xf32>
      %572 = arith.addf %569, %571 : vector<8x2xf32>
      %573 = vector.broadcast %18 : f32 to vector<8x2xf32>
      %574 = arith.mulf %441, %573 : vector<8x2xf32>
      %575 = arith.addf %572, %574 : vector<8x2xf32>
      %576 = vector.broadcast %19 : f32 to vector<8x2xf32>
      %577 = arith.mulf %455, %576 : vector<8x2xf32>
      %578 = arith.addf %575, %577 : vector<8x2xf32>
      %579 = vector.broadcast %20 : f32 to vector<8x2xf32>
      %580 = arith.mulf %413, %579 : vector<8x2xf32>
      %cst_152 = arith.constant 0.000000e+00 : f32
      %581 = vector.broadcast %cst_152 : f32 to vector<8x2xf32>
      %582 = arith.addf %581, %580 : vector<8x2xf32>
      %583 = vector.broadcast %21 : f32 to vector<8x2xf32>
      %584 = arith.mulf %427, %583 : vector<8x2xf32>
      %585 = arith.addf %582, %584 : vector<8x2xf32>
      %586 = vector.broadcast %22 : f32 to vector<8x2xf32>
      %587 = arith.mulf %441, %586 : vector<8x2xf32>
      %588 = arith.addf %585, %587 : vector<8x2xf32>
      %589 = vector.broadcast %23 : f32 to vector<8x2xf32>
      %590 = arith.mulf %455, %589 : vector<8x2xf32>
      %591 = arith.addf %588, %590 : vector<8x2xf32>
      %592 = vector.broadcast %16 : f32 to vector<8x2xf32>
      %593 = arith.mulf %427, %592 : vector<8x2xf32>
      %cst_153 = arith.constant 0.000000e+00 : f32
      %594 = vector.broadcast %cst_153 : f32 to vector<8x2xf32>
      %595 = arith.addf %594, %593 : vector<8x2xf32>
      %596 = vector.broadcast %17 : f32 to vector<8x2xf32>
      %597 = arith.mulf %469, %596 : vector<8x2xf32>
      %598 = arith.addf %595, %597 : vector<8x2xf32>
      %599 = vector.broadcast %18 : f32 to vector<8x2xf32>
      %600 = arith.mulf %483, %599 : vector<8x2xf32>
      %601 = arith.addf %598, %600 : vector<8x2xf32>
      %602 = vector.broadcast %19 : f32 to vector<8x2xf32>
      %603 = arith.mulf %497, %602 : vector<8x2xf32>
      %604 = arith.addf %601, %603 : vector<8x2xf32>
      %605 = vector.broadcast %20 : f32 to vector<8x2xf32>
      %606 = arith.mulf %427, %605 : vector<8x2xf32>
      %cst_154 = arith.constant 0.000000e+00 : f32
      %607 = vector.broadcast %cst_154 : f32 to vector<8x2xf32>
      %608 = arith.addf %607, %606 : vector<8x2xf32>
      %609 = vector.broadcast %21 : f32 to vector<8x2xf32>
      %610 = arith.mulf %469, %609 : vector<8x2xf32>
      %611 = arith.addf %608, %610 : vector<8x2xf32>
      %612 = vector.broadcast %22 : f32 to vector<8x2xf32>
      %613 = arith.mulf %483, %612 : vector<8x2xf32>
      %614 = arith.addf %611, %613 : vector<8x2xf32>
      %615 = vector.broadcast %23 : f32 to vector<8x2xf32>
      %616 = arith.mulf %497, %615 : vector<8x2xf32>
      %617 = arith.addf %614, %616 : vector<8x2xf32>
      %618 = vector.broadcast %16 : f32 to vector<8x2xf32>
      %619 = arith.mulf %441, %618 : vector<8x2xf32>
      %cst_155 = arith.constant 0.000000e+00 : f32
      %620 = vector.broadcast %cst_155 : f32 to vector<8x2xf32>
      %621 = arith.addf %620, %619 : vector<8x2xf32>
      %622 = vector.broadcast %17 : f32 to vector<8x2xf32>
      %623 = arith.mulf %483, %622 : vector<8x2xf32>
      %624 = arith.addf %621, %623 : vector<8x2xf32>
      %625 = vector.broadcast %18 : f32 to vector<8x2xf32>
      %626 = arith.mulf %511, %625 : vector<8x2xf32>
      %627 = arith.addf %624, %626 : vector<8x2xf32>
      %628 = vector.broadcast %19 : f32 to vector<8x2xf32>
      %629 = arith.mulf %525, %628 : vector<8x2xf32>
      %630 = arith.addf %627, %629 : vector<8x2xf32>
      %631 = vector.broadcast %20 : f32 to vector<8x2xf32>
      %632 = arith.mulf %441, %631 : vector<8x2xf32>
      %cst_156 = arith.constant 0.000000e+00 : f32
      %633 = vector.broadcast %cst_156 : f32 to vector<8x2xf32>
      %634 = arith.addf %633, %632 : vector<8x2xf32>
      %635 = vector.broadcast %21 : f32 to vector<8x2xf32>
      %636 = arith.mulf %483, %635 : vector<8x2xf32>
      %637 = arith.addf %634, %636 : vector<8x2xf32>
      %638 = vector.broadcast %22 : f32 to vector<8x2xf32>
      %639 = arith.mulf %511, %638 : vector<8x2xf32>
      %640 = arith.addf %637, %639 : vector<8x2xf32>
      %641 = vector.broadcast %23 : f32 to vector<8x2xf32>
      %642 = arith.mulf %525, %641 : vector<8x2xf32>
      %643 = arith.addf %640, %642 : vector<8x2xf32>
      %644 = vector.broadcast %16 : f32 to vector<8x2xf32>
      %645 = arith.mulf %455, %644 : vector<8x2xf32>
      %cst_157 = arith.constant 0.000000e+00 : f32
      %646 = vector.broadcast %cst_157 : f32 to vector<8x2xf32>
      %647 = arith.addf %646, %645 : vector<8x2xf32>
      %648 = vector.broadcast %17 : f32 to vector<8x2xf32>
      %649 = arith.mulf %497, %648 : vector<8x2xf32>
      %650 = arith.addf %647, %649 : vector<8x2xf32>
      %651 = vector.broadcast %18 : f32 to vector<8x2xf32>
      %652 = arith.mulf %525, %651 : vector<8x2xf32>
      %653 = arith.addf %650, %652 : vector<8x2xf32>
      %654 = vector.broadcast %19 : f32 to vector<8x2xf32>
      %655 = arith.mulf %539, %654 : vector<8x2xf32>
      %656 = arith.addf %653, %655 : vector<8x2xf32>
      %657 = vector.broadcast %20 : f32 to vector<8x2xf32>
      %658 = arith.mulf %455, %657 : vector<8x2xf32>
      %cst_158 = arith.constant 0.000000e+00 : f32
      %659 = vector.broadcast %cst_158 : f32 to vector<8x2xf32>
      %660 = arith.addf %659, %658 : vector<8x2xf32>
      %661 = vector.broadcast %21 : f32 to vector<8x2xf32>
      %662 = arith.mulf %497, %661 : vector<8x2xf32>
      %663 = arith.addf %660, %662 : vector<8x2xf32>
      %664 = vector.broadcast %22 : f32 to vector<8x2xf32>
      %665 = arith.mulf %525, %664 : vector<8x2xf32>
      %666 = arith.addf %663, %665 : vector<8x2xf32>
      %667 = vector.broadcast %23 : f32 to vector<8x2xf32>
      %668 = arith.mulf %539, %667 : vector<8x2xf32>
      %669 = arith.addf %666, %668 : vector<8x2xf32>
      %670 = vector.broadcast %16 : f32 to vector<8x2xf32>
      %671 = arith.mulf %670, %578 : vector<8x2xf32>
      %cst_159 = arith.constant 0.000000e+00 : f32
      %672 = vector.broadcast %cst_159 : f32 to vector<8x2xf32>
      %673 = arith.addf %672, %671 : vector<8x2xf32>
      %674 = vector.broadcast %17 : f32 to vector<8x2xf32>
      %675 = arith.mulf %674, %604 : vector<8x2xf32>
      %676 = arith.addf %673, %675 : vector<8x2xf32>
      %677 = vector.broadcast %18 : f32 to vector<8x2xf32>
      %678 = arith.mulf %677, %630 : vector<8x2xf32>
      %679 = arith.addf %676, %678 : vector<8x2xf32>
      %680 = vector.broadcast %19 : f32 to vector<8x2xf32>
      %681 = arith.mulf %680, %656 : vector<8x2xf32>
      %682 = arith.addf %679, %681 : vector<8x2xf32>
      %683 = vector.broadcast %34 : f32 to vector<8x2xf32>
      %684 = arith.addf %682, %683 : vector<8x2xf32>
      %685 = vector.broadcast %16 : f32 to vector<8x2xf32>
      %686 = arith.mulf %685, %591 : vector<8x2xf32>
      %cst_160 = arith.constant 0.000000e+00 : f32
      %687 = vector.broadcast %cst_160 : f32 to vector<8x2xf32>
      %688 = arith.addf %687, %686 : vector<8x2xf32>
      %689 = vector.broadcast %17 : f32 to vector<8x2xf32>
      %690 = arith.mulf %689, %617 : vector<8x2xf32>
      %691 = arith.addf %688, %690 : vector<8x2xf32>
      %692 = vector.broadcast %18 : f32 to vector<8x2xf32>
      %693 = arith.mulf %692, %643 : vector<8x2xf32>
      %694 = arith.addf %691, %693 : vector<8x2xf32>
      %695 = vector.broadcast %19 : f32 to vector<8x2xf32>
      %696 = arith.mulf %695, %669 : vector<8x2xf32>
      %697 = arith.addf %694, %696 : vector<8x2xf32>
      %698 = vector.broadcast %35 : f32 to vector<8x2xf32>
      %699 = arith.addf %697, %698 : vector<8x2xf32>
      %700 = vector.broadcast %20 : f32 to vector<8x2xf32>
      %701 = arith.mulf %700, %591 : vector<8x2xf32>
      %cst_161 = arith.constant 0.000000e+00 : f32
      %702 = vector.broadcast %cst_161 : f32 to vector<8x2xf32>
      %703 = arith.addf %702, %701 : vector<8x2xf32>
      %704 = vector.broadcast %21 : f32 to vector<8x2xf32>
      %705 = arith.mulf %704, %617 : vector<8x2xf32>
      %706 = arith.addf %703, %705 : vector<8x2xf32>
      %707 = vector.broadcast %22 : f32 to vector<8x2xf32>
      %708 = arith.mulf %707, %643 : vector<8x2xf32>
      %709 = arith.addf %706, %708 : vector<8x2xf32>
      %710 = vector.broadcast %23 : f32 to vector<8x2xf32>
      %711 = arith.mulf %710, %669 : vector<8x2xf32>
      %712 = arith.addf %709, %711 : vector<8x2xf32>
      %713 = vector.broadcast %36 : f32 to vector<8x2xf32>
      %714 = arith.addf %712, %713 : vector<8x2xf32>
      %715 = arith.mulf %684, %714 : vector<8x2xf32>
      %716 = arith.mulf %699, %699 : vector<8x2xf32>
      %717 = arith.subf %715, %716 : vector<8x2xf32>
      %718 = tpu.reciprocal %717 {approx = true} : vector<8x2xf32> -> vector<8x2xf32>
      %719 = arith.mulf %717, %718 : vector<8x2xf32>
      %cst_162 = arith.constant 2.000000e+00 : f32
      %720 = vector.broadcast %cst_162 : f32 to vector<8x2xf32>
      %721 = arith.subf %720, %719 : vector<8x2xf32>
      %722 = arith.mulf %718, %721 : vector<8x2xf32>
      %723 = arith.mulf %714, %722 : vector<8x2xf32>
      %cst_163 = arith.constant 0.000000e+00 : f32
      %724 = vector.broadcast %cst_163 : f32 to vector<8x2xf32>
      %725 = arith.subf %724, %699 : vector<8x2xf32>
      %726 = arith.mulf %725, %722 : vector<8x2xf32>
      %cst_164 = arith.constant 0.000000e+00 : f32
      %727 = vector.broadcast %cst_164 : f32 to vector<8x2xf32>
      %728 = arith.subf %727, %699 : vector<8x2xf32>
      %729 = arith.mulf %728, %722 : vector<8x2xf32>
      %730 = arith.mulf %684, %722 : vector<8x2xf32>
      %731 = arith.mulf %578, %723 : vector<8x2xf32>
      %cst_165 = arith.constant 0.000000e+00 : f32
      %732 = vector.broadcast %cst_165 : f32 to vector<8x2xf32>
      %733 = arith.addf %732, %731 : vector<8x2xf32>
      %734 = arith.mulf %591, %729 : vector<8x2xf32>
      %735 = arith.addf %733, %734 : vector<8x2xf32>
      %736 = arith.mulf %578, %726 : vector<8x2xf32>
      %cst_166 = arith.constant 0.000000e+00 : f32
      %737 = vector.broadcast %cst_166 : f32 to vector<8x2xf32>
      %738 = arith.addf %737, %736 : vector<8x2xf32>
      %739 = arith.mulf %591, %730 : vector<8x2xf32>
      %740 = arith.addf %738, %739 : vector<8x2xf32>
      %741 = arith.mulf %604, %723 : vector<8x2xf32>
      %cst_167 = arith.constant 0.000000e+00 : f32
      %742 = vector.broadcast %cst_167 : f32 to vector<8x2xf32>
      %743 = arith.addf %742, %741 : vector<8x2xf32>
      %744 = arith.mulf %617, %729 : vector<8x2xf32>
      %745 = arith.addf %743, %744 : vector<8x2xf32>
      %746 = arith.mulf %604, %726 : vector<8x2xf32>
      %cst_168 = arith.constant 0.000000e+00 : f32
      %747 = vector.broadcast %cst_168 : f32 to vector<8x2xf32>
      %748 = arith.addf %747, %746 : vector<8x2xf32>
      %749 = arith.mulf %617, %730 : vector<8x2xf32>
      %750 = arith.addf %748, %749 : vector<8x2xf32>
      %751 = arith.mulf %630, %723 : vector<8x2xf32>
      %cst_169 = arith.constant 0.000000e+00 : f32
      %752 = vector.broadcast %cst_169 : f32 to vector<8x2xf32>
      %753 = arith.addf %752, %751 : vector<8x2xf32>
      %754 = arith.mulf %643, %729 : vector<8x2xf32>
      %755 = arith.addf %753, %754 : vector<8x2xf32>
      %756 = arith.mulf %630, %726 : vector<8x2xf32>
      %cst_170 = arith.constant 0.000000e+00 : f32
      %757 = vector.broadcast %cst_170 : f32 to vector<8x2xf32>
      %758 = arith.addf %757, %756 : vector<8x2xf32>
      %759 = arith.mulf %643, %730 : vector<8x2xf32>
      %760 = arith.addf %758, %759 : vector<8x2xf32>
      %761 = arith.mulf %656, %723 : vector<8x2xf32>
      %cst_171 = arith.constant 0.000000e+00 : f32
      %762 = vector.broadcast %cst_171 : f32 to vector<8x2xf32>
      %763 = arith.addf %762, %761 : vector<8x2xf32>
      %764 = arith.mulf %669, %729 : vector<8x2xf32>
      %765 = arith.addf %763, %764 : vector<8x2xf32>
      %766 = arith.mulf %656, %726 : vector<8x2xf32>
      %cst_172 = arith.constant 0.000000e+00 : f32
      %767 = vector.broadcast %cst_172 : f32 to vector<8x2xf32>
      %768 = arith.addf %767, %766 : vector<8x2xf32>
      %769 = arith.mulf %669, %730 : vector<8x2xf32>
      %770 = arith.addf %768, %769 : vector<8x2xf32>
      %771 = arith.index_cast %arg14 : i32 to index
      %c0_173 = arith.constant 0 : index
      %c0_174 = arith.constant 0 : index
      %c0_175 = arith.constant 0 : index
      %772 = vector.load %arg2[%771, %c0_173, %c0_174, %c0_175] : memref<8x2x8x2xf32, #tpu.memory_space<vmem>>, vector<1x1x8x2xf32>
      %773 = vector.shape_cast %772 : vector<1x1x8x2xf32> to vector<8x2xf32>
      %774 = arith.subf %773, %552 : vector<8x2xf32>
      %775 = arith.index_cast %arg14 : i32 to index
      %c1_176 = arith.constant 1 : index
      %c0_177 = arith.constant 0 : index
      %c0_178 = arith.constant 0 : index
      %776 = vector.load %arg2[%775, %c1_176, %c0_177, %c0_178] : memref<8x2x8x2xf32, #tpu.memory_space<vmem>>, vector<1x1x8x2xf32>
      %777 = vector.shape_cast %776 : vector<1x1x8x2xf32> to vector<8x2xf32>
      %778 = arith.subf %777, %565 : vector<8x2xf32>
      %779 = arith.mulf %735, %774 : vector<8x2xf32>
      %cst_179 = arith.constant 0.000000e+00 : f32
      %780 = vector.broadcast %cst_179 : f32 to vector<8x2xf32>
      %781 = arith.addf %780, %779 : vector<8x2xf32>
      %782 = arith.mulf %740, %778 : vector<8x2xf32>
      %783 = arith.addf %781, %782 : vector<8x2xf32>
      %784 = arith.addf %131, %783 : vector<8x2xf32>
      %785 = arith.mulf %745, %774 : vector<8x2xf32>
      %cst_180 = arith.constant 0.000000e+00 : f32
      %786 = vector.broadcast %cst_180 : f32 to vector<8x2xf32>
      %787 = arith.addf %786, %785 : vector<8x2xf32>
      %788 = arith.mulf %750, %778 : vector<8x2xf32>
      %789 = arith.addf %787, %788 : vector<8x2xf32>
      %790 = arith.addf %147, %789 : vector<8x2xf32>
      %791 = arith.mulf %755, %774 : vector<8x2xf32>
      %cst_181 = arith.constant 0.000000e+00 : f32
      %792 = vector.broadcast %cst_181 : f32 to vector<8x2xf32>
      %793 = arith.addf %792, %791 : vector<8x2xf32>
      %794 = arith.mulf %760, %778 : vector<8x2xf32>
      %795 = arith.addf %793, %794 : vector<8x2xf32>
      %796 = arith.addf %163, %795 : vector<8x2xf32>
      %797 = arith.mulf %765, %774 : vector<8x2xf32>
      %cst_182 = arith.constant 0.000000e+00 : f32
      %798 = vector.broadcast %cst_182 : f32 to vector<8x2xf32>
      %799 = arith.addf %798, %797 : vector<8x2xf32>
      %800 = arith.mulf %770, %778 : vector<8x2xf32>
      %801 = arith.addf %799, %800 : vector<8x2xf32>
      %802 = arith.addf %179, %801 : vector<8x2xf32>
      %803 = arith.mulf %684, %735 : vector<8x2xf32>
      %cst_183 = arith.constant 0.000000e+00 : f32
      %804 = vector.broadcast %cst_183 : f32 to vector<8x2xf32>
      %805 = arith.addf %804, %803 : vector<8x2xf32>
      %806 = arith.mulf %699, %740 : vector<8x2xf32>
      %807 = arith.addf %805, %806 : vector<8x2xf32>
      %808 = arith.mulf %684, %745 : vector<8x2xf32>
      %cst_184 = arith.constant 0.000000e+00 : f32
      %809 = vector.broadcast %cst_184 : f32 to vector<8x2xf32>
      %810 = arith.addf %809, %808 : vector<8x2xf32>
      %811 = arith.mulf %699, %750 : vector<8x2xf32>
      %812 = arith.addf %810, %811 : vector<8x2xf32>
      %813 = arith.mulf %684, %755 : vector<8x2xf32>
      %cst_185 = arith.constant 0.000000e+00 : f32
      %814 = vector.broadcast %cst_185 : f32 to vector<8x2xf32>
      %815 = arith.addf %814, %813 : vector<8x2xf32>
      %816 = arith.mulf %699, %760 : vector<8x2xf32>
      %817 = arith.addf %815, %816 : vector<8x2xf32>
      %818 = arith.mulf %684, %765 : vector<8x2xf32>
      %cst_186 = arith.constant 0.000000e+00 : f32
      %819 = vector.broadcast %cst_186 : f32 to vector<8x2xf32>
      %820 = arith.addf %819, %818 : vector<8x2xf32>
      %821 = arith.mulf %699, %770 : vector<8x2xf32>
      %822 = arith.addf %820, %821 : vector<8x2xf32>
      %823 = arith.mulf %699, %735 : vector<8x2xf32>
      %cst_187 = arith.constant 0.000000e+00 : f32
      %824 = vector.broadcast %cst_187 : f32 to vector<8x2xf32>
      %825 = arith.addf %824, %823 : vector<8x2xf32>
      %826 = arith.mulf %714, %740 : vector<8x2xf32>
      %827 = arith.addf %825, %826 : vector<8x2xf32>
      %828 = arith.mulf %699, %745 : vector<8x2xf32>
      %cst_188 = arith.constant 0.000000e+00 : f32
      %829 = vector.broadcast %cst_188 : f32 to vector<8x2xf32>
      %830 = arith.addf %829, %828 : vector<8x2xf32>
      %831 = arith.mulf %714, %750 : vector<8x2xf32>
      %832 = arith.addf %830, %831 : vector<8x2xf32>
      %833 = arith.mulf %699, %755 : vector<8x2xf32>
      %cst_189 = arith.constant 0.000000e+00 : f32
      %834 = vector.broadcast %cst_189 : f32 to vector<8x2xf32>
      %835 = arith.addf %834, %833 : vector<8x2xf32>
      %836 = arith.mulf %714, %760 : vector<8x2xf32>
      %837 = arith.addf %835, %836 : vector<8x2xf32>
      %838 = arith.mulf %699, %765 : vector<8x2xf32>
      %cst_190 = arith.constant 0.000000e+00 : f32
      %839 = vector.broadcast %cst_190 : f32 to vector<8x2xf32>
      %840 = arith.addf %839, %838 : vector<8x2xf32>
      %841 = arith.mulf %714, %770 : vector<8x2xf32>
      %842 = arith.addf %840, %841 : vector<8x2xf32>
      %843 = arith.mulf %735, %807 : vector<8x2xf32>
      %cst_191 = arith.constant 0.000000e+00 : f32
      %844 = vector.broadcast %cst_191 : f32 to vector<8x2xf32>
      %845 = arith.addf %844, %843 : vector<8x2xf32>
      %846 = arith.mulf %740, %827 : vector<8x2xf32>
      %847 = arith.addf %845, %846 : vector<8x2xf32>
      %848 = arith.subf %413, %847 : vector<8x2xf32>
      %849 = arith.mulf %735, %812 : vector<8x2xf32>
      %cst_192 = arith.constant 0.000000e+00 : f32
      %850 = vector.broadcast %cst_192 : f32 to vector<8x2xf32>
      %851 = arith.addf %850, %849 : vector<8x2xf32>
      %852 = arith.mulf %740, %832 : vector<8x2xf32>
      %853 = arith.addf %851, %852 : vector<8x2xf32>
      %854 = arith.subf %427, %853 : vector<8x2xf32>
      %855 = arith.mulf %735, %817 : vector<8x2xf32>
      %cst_193 = arith.constant 0.000000e+00 : f32
      %856 = vector.broadcast %cst_193 : f32 to vector<8x2xf32>
      %857 = arith.addf %856, %855 : vector<8x2xf32>
      %858 = arith.mulf %740, %837 : vector<8x2xf32>
      %859 = arith.addf %857, %858 : vector<8x2xf32>
      %860 = arith.subf %441, %859 : vector<8x2xf32>
      %861 = arith.mulf %735, %822 : vector<8x2xf32>
      %cst_194 = arith.constant 0.000000e+00 : f32
      %862 = vector.broadcast %cst_194 : f32 to vector<8x2xf32>
      %863 = arith.addf %862, %861 : vector<8x2xf32>
      %864 = arith.mulf %740, %842 : vector<8x2xf32>
      %865 = arith.addf %863, %864 : vector<8x2xf32>
      %866 = arith.subf %455, %865 : vector<8x2xf32>
      %867 = arith.mulf %745, %812 : vector<8x2xf32>
      %cst_195 = arith.constant 0.000000e+00 : f32
      %868 = vector.broadcast %cst_195 : f32 to vector<8x2xf32>
      %869 = arith.addf %868, %867 : vector<8x2xf32>
      %870 = arith.mulf %750, %832 : vector<8x2xf32>
      %871 = arith.addf %869, %870 : vector<8x2xf32>
      %872 = arith.subf %469, %871 : vector<8x2xf32>
      %873 = arith.mulf %745, %817 : vector<8x2xf32>
      %cst_196 = arith.constant 0.000000e+00 : f32
      %874 = vector.broadcast %cst_196 : f32 to vector<8x2xf32>
      %875 = arith.addf %874, %873 : vector<8x2xf32>
      %876 = arith.mulf %750, %837 : vector<8x2xf32>
      %877 = arith.addf %875, %876 : vector<8x2xf32>
      %878 = arith.subf %483, %877 : vector<8x2xf32>
      %879 = arith.mulf %745, %822 : vector<8x2xf32>
      %cst_197 = arith.constant 0.000000e+00 : f32
      %880 = vector.broadcast %cst_197 : f32 to vector<8x2xf32>
      %881 = arith.addf %880, %879 : vector<8x2xf32>
      %882 = arith.mulf %750, %842 : vector<8x2xf32>
      %883 = arith.addf %881, %882 : vector<8x2xf32>
      %884 = arith.subf %497, %883 : vector<8x2xf32>
      %885 = arith.mulf %755, %817 : vector<8x2xf32>
      %cst_198 = arith.constant 0.000000e+00 : f32
      %886 = vector.broadcast %cst_198 : f32 to vector<8x2xf32>
      %887 = arith.addf %886, %885 : vector<8x2xf32>
      %888 = arith.mulf %760, %837 : vector<8x2xf32>
      %889 = arith.addf %887, %888 : vector<8x2xf32>
      %890 = arith.subf %511, %889 : vector<8x2xf32>
      %891 = arith.mulf %755, %822 : vector<8x2xf32>
      %cst_199 = arith.constant 0.000000e+00 : f32
      %892 = vector.broadcast %cst_199 : f32 to vector<8x2xf32>
      %893 = arith.addf %892, %891 : vector<8x2xf32>
      %894 = arith.mulf %760, %842 : vector<8x2xf32>
      %895 = arith.addf %893, %894 : vector<8x2xf32>
      %896 = arith.subf %525, %895 : vector<8x2xf32>
      %897 = arith.mulf %765, %822 : vector<8x2xf32>
      %cst_200 = arith.constant 0.000000e+00 : f32
      %898 = vector.broadcast %cst_200 : f32 to vector<8x2xf32>
      %899 = arith.addf %898, %897 : vector<8x2xf32>
      %900 = arith.mulf %770, %842 : vector<8x2xf32>
      %901 = arith.addf %899, %900 : vector<8x2xf32>
      %902 = arith.subf %539, %901 : vector<8x2xf32>
      %903 = arith.index_cast %arg14 : i32 to index
      %c0_201 = arith.constant 0 : index
      %c0_202 = arith.constant 0 : index
      %c0_203 = arith.constant 0 : index
      %904 = vector.load %arg9[%903, %c0_201, %c0_202, %c0_203] : memref<8x4x8x2xf32, #tpu.memory_space<vmem>>, vector<1x1x8x2xf32>
      %905 = vector.shape_cast %904 : vector<1x1x8x2xf32> to vector<8x2xf32>
      %906 = vector.shape_cast %784 : vector<8x2xf32> to vector<1x1x8x2xf32>
      tpu.vector_store %arg9[%903, %c0_201, %c0_202, %c0_203], %906 {strides = array<i32>} : memref<8x4x8x2xf32, #tpu.memory_space<vmem>>, vector<1x1x8x2xf32>,
      %907 = arith.index_cast %arg14 : i32 to index
      %c1_204 = arith.constant 1 : index
      %c0_205 = arith.constant 0 : index
      %c0_206 = arith.constant 0 : index
      %908 = vector.load %arg9[%907, %c1_204, %c0_205, %c0_206] : memref<8x4x8x2xf32, #tpu.memory_space<vmem>>, vector<1x1x8x2xf32>
      %909 = vector.shape_cast %908 : vector<1x1x8x2xf32> to vector<8x2xf32>
      %910 = vector.shape_cast %790 : vector<8x2xf32> to vector<1x1x8x2xf32>
      tpu.vector_store %arg9[%907, %c1_204, %c0_205, %c0_206], %910 {strides = array<i32>} : memref<8x4x8x2xf32, #tpu.memory_space<vmem>>, vector<1x1x8x2xf32>,
      %911 = arith.index_cast %arg14 : i32 to index
      %c2_207 = arith.constant 2 : index
      %c0_208 = arith.constant 0 : index
      %c0_209 = arith.constant 0 : index
      %912 = vector.load %arg9[%911, %c2_207, %c0_208, %c0_209] : memref<8x4x8x2xf32, #tpu.memory_space<vmem>>, vector<1x1x8x2xf32>
      %913 = vector.shape_cast %912 : vector<1x1x8x2xf32> to vector<8x2xf32>
      %914 = vector.shape_cast %796 : vector<8x2xf32> to vector<1x1x8x2xf32>
      tpu.vector_store %arg9[%911, %c2_207, %c0_208, %c0_209], %914 {strides = array<i32>} : memref<8x4x8x2xf32, #tpu.memory_space<vmem>>, vector<1x1x8x2xf32>,
      %915 = arith.index_cast %arg14 : i32 to index
      %c3_210 = arith.constant 3 : index
      %c0_211 = arith.constant 0 : index
      %c0_212 = arith.constant 0 : index
      %916 = vector.load %arg9[%915, %c3_210, %c0_211, %c0_212] : memref<8x4x8x2xf32, #tpu.memory_space<vmem>>, vector<1x1x8x2xf32>
      %917 = vector.shape_cast %916 : vector<1x1x8x2xf32> to vector<8x2xf32>
      %918 = vector.shape_cast %802 : vector<8x2xf32> to vector<1x1x8x2xf32>
      tpu.vector_store %arg9[%915, %c3_210, %c0_211, %c0_212], %918 {strides = array<i32>} : memref<8x4x8x2xf32, #tpu.memory_space<vmem>>, vector<1x1x8x2xf32>,
      %919 = arith.index_cast %arg14 : i32 to index
      %c0_213 = arith.constant 0 : index
      %c0_214 = arith.constant 0 : index
      %c0_215 = arith.constant 0 : index
      %920 = vector.load %arg10[%919, %c0_213, %c0_214, %c0_215] : memref<8x16x8x2xf32, #tpu.memory_space<vmem>>, vector<1x1x8x2xf32>
      %921 = vector.shape_cast %920 : vector<1x1x8x2xf32> to vector<8x2xf32>
      %922 = vector.shape_cast %848 : vector<8x2xf32> to vector<1x1x8x2xf32>
      tpu.vector_store %arg10[%919, %c0_213, %c0_214, %c0_215], %922 {strides = array<i32>} : memref<8x16x8x2xf32, #tpu.memory_space<vmem>>, vector<1x1x8x2xf32>,
      %923 = arith.index_cast %arg14 : i32 to index
      %c1_216 = arith.constant 1 : index
      %c0_217 = arith.constant 0 : index
      %c0_218 = arith.constant 0 : index
      %924 = vector.load %arg10[%923, %c1_216, %c0_217, %c0_218] : memref<8x16x8x2xf32, #tpu.memory_space<vmem>>, vector<1x1x8x2xf32>
      %925 = vector.shape_cast %924 : vector<1x1x8x2xf32> to vector<8x2xf32>
      %926 = vector.shape_cast %854 : vector<8x2xf32> to vector<1x1x8x2xf32>
      tpu.vector_store %arg10[%923, %c1_216, %c0_217, %c0_218], %926 {strides = array<i32>} : memref<8x16x8x2xf32, #tpu.memory_space<vmem>>, vector<1x1x8x2xf32>,
      %927 = arith.index_cast %arg14 : i32 to index
      %c2_219 = arith.constant 2 : index
      %c0_220 = arith.constant 0 : index
      %c0_221 = arith.constant 0 : index
      %928 = vector.load %arg10[%927, %c2_219, %c0_220, %c0_221] : memref<8x16x8x2xf32, #tpu.memory_space<vmem>>, vector<1x1x8x2xf32>
      %929 = vector.shape_cast %928 : vector<1x1x8x2xf32> to vector<8x2xf32>
      %930 = vector.shape_cast %860 : vector<8x2xf32> to vector<1x1x8x2xf32>
      tpu.vector_store %arg10[%927, %c2_219, %c0_220, %c0_221], %930 {strides = array<i32>} : memref<8x16x8x2xf32, #tpu.memory_space<vmem>>, vector<1x1x8x2xf32>,
      %931 = arith.index_cast %arg14 : i32 to index
      %c3_222 = arith.constant 3 : index
      %c0_223 = arith.constant 0 : index
      %c0_224 = arith.constant 0 : index
      %932 = vector.load %arg10[%931, %c3_222, %c0_223, %c0_224] : memref<8x16x8x2xf32, #tpu.memory_space<vmem>>, vector<1x1x8x2xf32>
      %933 = vector.shape_cast %932 : vector<1x1x8x2xf32> to vector<8x2xf32>
      %934 = vector.shape_cast %866 : vector<8x2xf32> to vector<1x1x8x2xf32>
      tpu.vector_store %arg10[%931, %c3_222, %c0_223, %c0_224], %934 {strides = array<i32>} : memref<8x16x8x2xf32, #tpu.memory_space<vmem>>, vector<1x1x8x2xf32>,
      %935 = arith.index_cast %arg14 : i32 to index
      %c4_225 = arith.constant 4 : index
      %c0_226 = arith.constant 0 : index
      %c0_227 = arith.constant 0 : index
      %936 = vector.load %arg10[%935, %c4_225, %c0_226, %c0_227] : memref<8x16x8x2xf32, #tpu.memory_space<vmem>>, vector<1x1x8x2xf32>
      %937 = vector.shape_cast %936 : vector<1x1x8x2xf32> to vector<8x2xf32>
      %938 = vector.shape_cast %854 : vector<8x2xf32> to vector<1x1x8x2xf32>
      tpu.vector_store %arg10[%935, %c4_225, %c0_226, %c0_227], %938 {strides = array<i32>} : memref<8x16x8x2xf32, #tpu.memory_space<vmem>>, vector<1x1x8x2xf32>,
      %939 = arith.index_cast %arg14 : i32 to index
      %c5_228 = arith.constant 5 : index
      %c0_229 = arith.constant 0 : index
      %c0_230 = arith.constant 0 : index
      %940 = vector.load %arg10[%939, %c5_228, %c0_229, %c0_230] : memref<8x16x8x2xf32, #tpu.memory_space<vmem>>, vector<1x1x8x2xf32>
      %941 = vector.shape_cast %940 : vector<1x1x8x2xf32> to vector<8x2xf32>
      %942 = vector.shape_cast %872 : vector<8x2xf32> to vector<1x1x8x2xf32>
      tpu.vector_store %arg10[%939, %c5_228, %c0_229, %c0_230], %942 {strides = array<i32>} : memref<8x16x8x2xf32, #tpu.memory_space<vmem>>, vector<1x1x8x2xf32>,
      %943 = arith.index_cast %arg14 : i32 to index
      %c6_231 = arith.constant 6 : index
      %c0_232 = arith.constant 0 : index
      %c0_233 = arith.constant 0 : index
      %944 = vector.load %arg10[%943, %c6_231, %c0_232, %c0_233] : memref<8x16x8x2xf32, #tpu.memory_space<vmem>>, vector<1x1x8x2xf32>
      %945 = vector.shape_cast %944 : vector<1x1x8x2xf32> to vector<8x2xf32>
      %946 = vector.shape_cast %878 : vector<8x2xf32> to vector<1x1x8x2xf32>
      tpu.vector_store %arg10[%943, %c6_231, %c0_232, %c0_233], %946 {strides = array<i32>} : memref<8x16x8x2xf32, #tpu.memory_space<vmem>>, vector<1x1x8x2xf32>,
      %947 = arith.index_cast %arg14 : i32 to index
      %c7_234 = arith.constant 7 : index
      %c0_235 = arith.constant 0 : index
      %c0_236 = arith.constant 0 : index
      %948 = vector.load %arg10[%947, %c7_234, %c0_235, %c0_236] : memref<8x16x8x2xf32, #tpu.memory_space<vmem>>, vector<1x1x8x2xf32>
      %949 = vector.shape_cast %948 : vector<1x1x8x2xf32> to vector<8x2xf32>
      %950 = vector.shape_cast %884 : vector<8x2xf32> to vector<1x1x8x2xf32>
      tpu.vector_store %arg10[%947, %c7_234, %c0_235, %c0_236], %950 {strides = array<i32>} : memref<8x16x8x2xf32, #tpu.memory_space<vmem>>, vector<1x1x8x2xf32>,
      %951 = arith.index_cast %arg14 : i32 to index
      %c8_237 = arith.constant 8 : index
      %c0_238 = arith.constant 0 : index
      %c0_239 = arith.constant 0 : index
      %952 = vector.load %arg10[%951, %c8_237, %c0_238, %c0_239] : memref<8x16x8x2xf32, #tpu.memory_space<vmem>>, vector<1x1x8x2xf32>
      %953 = vector.shape_cast %952 : vector<1x1x8x2xf32> to vector<8x2xf32>
      %954 = vector.shape_cast %860 : vector<8x2xf32> to vector<1x1x8x2xf32>
      tpu.vector_store %arg10[%951, %c8_237, %c0_238, %c0_239], %954 {strides = array<i32>} : memref<8x16x8x2xf32, #tpu.memory_space<vmem>>, vector<1x1x8x2xf32>,
      %955 = arith.index_cast %arg14 : i32 to index
      %c9_240 = arith.constant 9 : index
      %c0_241 = arith.constant 0 : index
      %c0_242 = arith.constant 0 : index
      %956 = vector.load %arg10[%955, %c9_240, %c0_241, %c0_242] : memref<8x16x8x2xf32, #tpu.memory_space<vmem>>, vector<1x1x8x2xf32>
      %957 = vector.shape_cast %956 : vector<1x1x8x2xf32> to vector<8x2xf32>
      %958 = vector.shape_cast %878 : vector<8x2xf32> to vector<1x1x8x2xf32>
      tpu.vector_store %arg10[%955, %c9_240, %c0_241, %c0_242], %958 {strides = array<i32>} : memref<8x16x8x2xf32, #tpu.memory_space<vmem>>, vector<1x1x8x2xf32>,
      %959 = arith.index_cast %arg14 : i32 to index
      %c10_243 = arith.constant 10 : index
      %c0_244 = arith.constant 0 : index
      %c0_245 = arith.constant 0 : index
      %960 = vector.load %arg10[%959, %c10_243, %c0_244, %c0_245] : memref<8x16x8x2xf32, #tpu.memory_space<vmem>>, vector<1x1x8x2xf32>
      %961 = vector.shape_cast %960 : vector<1x1x8x2xf32> to vector<8x2xf32>
      %962 = vector.shape_cast %890 : vector<8x2xf32> to vector<1x1x8x2xf32>
      tpu.vector_store %arg10[%959, %c10_243, %c0_244, %c0_245], %962 {strides = array<i32>} : memref<8x16x8x2xf32, #tpu.memory_space<vmem>>, vector<1x1x8x2xf32>,
      %963 = arith.index_cast %arg14 : i32 to index
      %c11_246 = arith.constant 11 : index
      %c0_247 = arith.constant 0 : index
      %c0_248 = arith.constant 0 : index
      %964 = vector.load %arg10[%963, %c11_246, %c0_247, %c0_248] : memref<8x16x8x2xf32, #tpu.memory_space<vmem>>, vector<1x1x8x2xf32>
      %965 = vector.shape_cast %964 : vector<1x1x8x2xf32> to vector<8x2xf32>
      %966 = vector.shape_cast %896 : vector<8x2xf32> to vector<1x1x8x2xf32>
      tpu.vector_store %arg10[%963, %c11_246, %c0_247, %c0_248], %966 {strides = array<i32>} : memref<8x16x8x2xf32, #tpu.memory_space<vmem>>, vector<1x1x8x2xf32>,
      %967 = arith.index_cast %arg14 : i32 to index
      %c12_249 = arith.constant 12 : index
      %c0_250 = arith.constant 0 : index
      %c0_251 = arith.constant 0 : index
      %968 = vector.load %arg10[%967, %c12_249, %c0_250, %c0_251] : memref<8x16x8x2xf32, #tpu.memory_space<vmem>>, vector<1x1x8x2xf32>
      %969 = vector.shape_cast %968 : vector<1x1x8x2xf32> to vector<8x2xf32>
      %970 = vector.shape_cast %866 : vector<8x2xf32> to vector<1x1x8x2xf32>
      tpu.vector_store %arg10[%967, %c12_249, %c0_250, %c0_251], %970 {strides = array<i32>} : memref<8x16x8x2xf32, #tpu.memory_space<vmem>>, vector<1x1x8x2xf32>,
      %971 = arith.index_cast %arg14 : i32 to index
      %c13_252 = arith.constant 13 : index
      %c0_253 = arith.constant 0 : index
      %c0_254 = arith.constant 0 : index
      %972 = vector.load %arg10[%971, %c13_252, %c0_253, %c0_254] : memref<8x16x8x2xf32, #tpu.memory_space<vmem>>, vector<1x1x8x2xf32>
      %973 = vector.shape_cast %972 : vector<1x1x8x2xf32> to vector<8x2xf32>
      %974 = vector.shape_cast %884 : vector<8x2xf32> to vector<1x1x8x2xf32>
      tpu.vector_store %arg10[%971, %c13_252, %c0_253, %c0_254], %974 {strides = array<i32>} : memref<8x16x8x2xf32, #tpu.memory_space<vmem>>, vector<1x1x8x2xf32>,
      %975 = arith.index_cast %arg14 : i32 to index
      %c14_255 = arith.constant 14 : index
      %c0_256 = arith.constant 0 : index
      %c0_257 = arith.constant 0 : index
      %976 = vector.load %arg10[%975, %c14_255, %c0_256, %c0_257] : memref<8x16x8x2xf32, #tpu.memory_space<vmem>>, vector<1x1x8x2xf32>
      %977 = vector.shape_cast %976 : vector<1x1x8x2xf32> to vector<8x2xf32>
      %978 = vector.shape_cast %896 : vector<8x2xf32> to vector<1x1x8x2xf32>
      tpu.vector_store %arg10[%975, %c14_255, %c0_256, %c0_257], %978 {strides = array<i32>} : memref<8x16x8x2xf32, #tpu.memory_space<vmem>>, vector<1x1x8x2xf32>,
      %979 = arith.index_cast %arg14 : i32 to index
      %c15_258 = arith.constant 15 : index
      %c0_259 = arith.constant 0 : index
      %c0_260 = arith.constant 0 : index
      %980 = vector.load %arg10[%979, %c15_258, %c0_259, %c0_260] : memref<8x16x8x2xf32, #tpu.memory_space<vmem>>, vector<1x1x8x2xf32>
      %981 = vector.shape_cast %980 : vector<1x1x8x2xf32> to vector<8x2xf32>
      %982 = vector.shape_cast %902 : vector<8x2xf32> to vector<1x1x8x2xf32>
      tpu.vector_store %arg10[%979, %c15_258, %c0_259, %c0_260], %982 {strides = array<i32>} : memref<8x16x8x2xf32, #tpu.memory_space<vmem>>, vector<1x1x8x2xf32>,
      %983 = arith.index_cast %arg14 : i32 to index
      %c0_261 = arith.constant 0 : index
      %c0_262 = arith.constant 0 : index
      %c0_263 = arith.constant 0 : index
      %984 = vector.load %arg11[%983, %c0_261, %c0_262, %c0_263] : memref<8x8x8x2xf32, #tpu.memory_space<vmem>>, vector<1x1x8x2xf32>
      %985 = vector.shape_cast %984 : vector<1x1x8x2xf32> to vector<8x2xf32>
      %986 = vector.shape_cast %735 : vector<8x2xf32> to vector<1x1x8x2xf32>
      tpu.vector_store %arg11[%983, %c0_261, %c0_262, %c0_263], %986 {strides = array<i32>} : memref<8x8x8x2xf32, #tpu.memory_space<vmem>>, vector<1x1x8x2xf32>,
      %987 = arith.index_cast %arg14 : i32 to index
      %c1_264 = arith.constant 1 : index
      %c0_265 = arith.constant 0 : index
      %c0_266 = arith.constant 0 : index
      %988 = vector.load %arg11[%987, %c1_264, %c0_265, %c0_266] : memref<8x8x8x2xf32, #tpu.memory_space<vmem>>, vector<1x1x8x2xf32>
      %989 = vector.shape_cast %988 : vector<1x1x8x2xf32> to vector<8x2xf32>
      %990 = vector.shape_cast %740 : vector<8x2xf32> to vector<1x1x8x2xf32>
      tpu.vector_store %arg11[%987, %c1_264, %c0_265, %c0_266], %990 {strides = array<i32>} : memref<8x8x8x2xf32, #tpu.memory_space<vmem>>, vector<1x1x8x2xf32>,
      %991 = arith.index_cast %arg14 : i32 to index
      %c2_267 = arith.constant 2 : index
      %c0_268 = arith.constant 0 : index
      %c0_269 = arith.constant 0 : index
      %992 = vector.load %arg11[%991, %c2_267, %c0_268, %c0_269] : memref<8x8x8x2xf32, #tpu.memory_space<vmem>>, vector<1x1x8x2xf32>
      %993 = vector.shape_cast %992 : vector<1x1x8x2xf32> to vector<8x2xf32>
      %994 = vector.shape_cast %745 : vector<8x2xf32> to vector<1x1x8x2xf32>
      tpu.vector_store %arg11[%991, %c2_267, %c0_268, %c0_269], %994 {strides = array<i32>} : memref<8x8x8x2xf32, #tpu.memory_space<vmem>>, vector<1x1x8x2xf32>,
      %995 = arith.index_cast %arg14 : i32 to index
      %c3_270 = arith.constant 3 : index
      %c0_271 = arith.constant 0 : index
      %c0_272 = arith.constant 0 : index
      %996 = vector.load %arg11[%995, %c3_270, %c0_271, %c0_272] : memref<8x8x8x2xf32, #tpu.memory_space<vmem>>, vector<1x1x8x2xf32>
      %997 = vector.shape_cast %996 : vector<1x1x8x2xf32> to vector<8x2xf32>
      %998 = vector.shape_cast %750 : vector<8x2xf32> to vector<1x1x8x2xf32>
      tpu.vector_store %arg11[%995, %c3_270, %c0_271, %c0_272], %998 {strides = array<i32>} : memref<8x8x8x2xf32, #tpu.memory_space<vmem>>, vector<1x1x8x2xf32>,
      %999 = arith.index_cast %arg14 : i32 to index
      %c4_273 = arith.constant 4 : index
      %c0_274 = arith.constant 0 : index
      %c0_275 = arith.constant 0 : index
      %1000 = vector.load %arg11[%999, %c4_273, %c0_274, %c0_275] : memref<8x8x8x2xf32, #tpu.memory_space<vmem>>, vector<1x1x8x2xf32>
      %1001 = vector.shape_cast %1000 : vector<1x1x8x2xf32> to vector<8x2xf32>
      %1002 = vector.shape_cast %755 : vector<8x2xf32> to vector<1x1x8x2xf32>
      tpu.vector_store %arg11[%999, %c4_273, %c0_274, %c0_275], %1002 {strides = array<i32>} : memref<8x8x8x2xf32, #tpu.memory_space<vmem>>, vector<1x1x8x2xf32>,
      %1003 = arith.index_cast %arg14 : i32 to index
      %c5_276 = arith.constant 5 : index
      %c0_277 = arith.constant 0 : index
      %c0_278 = arith.constant 0 : index
      %1004 = vector.load %arg11[%1003, %c5_276, %c0_277, %c0_278] : memref<8x8x8x2xf32, #tpu.memory_space<vmem>>, vector<1x1x8x2xf32>
      %1005 = vector.shape_cast %1004 : vector<1x1x8x2xf32> to vector<8x2xf32>
      %1006 = vector.shape_cast %760 : vector<8x2xf32> to vector<1x1x8x2xf32>
      tpu.vector_store %arg11[%1003, %c5_276, %c0_277, %c0_278], %1006 {strides = array<i32>} : memref<8x8x8x2xf32, #tpu.memory_space<vmem>>, vector<1x1x8x2xf32>,
      %1007 = arith.index_cast %arg14 : i32 to index
      %c6_279 = arith.constant 6 : index
      %c0_280 = arith.constant 0 : index
      %c0_281 = arith.constant 0 : index
      %1008 = vector.load %arg11[%1007, %c6_279, %c0_280, %c0_281] : memref<8x8x8x2xf32, #tpu.memory_space<vmem>>, vector<1x1x8x2xf32>
      %1009 = vector.shape_cast %1008 : vector<1x1x8x2xf32> to vector<8x2xf32>
      %1010 = vector.shape_cast %765 : vector<8x2xf32> to vector<1x1x8x2xf32>
      tpu.vector_store %arg11[%1007, %c6_279, %c0_280, %c0_281], %1010 {strides = array<i32>} : memref<8x8x8x2xf32, #tpu.memory_space<vmem>>, vector<1x1x8x2xf32>,
      %1011 = arith.index_cast %arg14 : i32 to index
      %c7_282 = arith.constant 7 : index
      %c0_283 = arith.constant 0 : index
      %c0_284 = arith.constant 0 : index
      %1012 = vector.load %arg11[%1011, %c7_282, %c0_283, %c0_284] : memref<8x8x8x2xf32, #tpu.memory_space<vmem>>, vector<1x1x8x2xf32>
      %1013 = vector.shape_cast %1012 : vector<1x1x8x2xf32> to vector<8x2xf32>
      %1014 = vector.shape_cast %770 : vector<8x2xf32> to vector<1x1x8x2xf32>
      tpu.vector_store %arg11[%1011, %c7_282, %c0_283, %c0_284], %1014 {strides = array<i32>} : memref<8x8x8x2xf32, #tpu.memory_space<vmem>>, vector<1x1x8x2xf32>,
      scf.yield %784, %790, %796, %802, %848, %854, %860, %866, %872, %878, %884, %890, %896, %902 : vector<8x2xf32>, vector<8x2xf32>, vector<8x2xf32>, vector<8x2xf32>, vector<8x2xf32>, vector<8x2xf32>, vector<8x2xf32>, vector<8x2xf32>, vector<8x2xf32>, vector<8x2xf32>, vector<8x2xf32>, vector<8x2xf32>, vector<8x2xf32>, vector<8x2xf32>
    }
    %c8_i32_65 = arith.constant 8 : i32
    %c0_66 = arith.constant 0 : index
    %c0_67 = arith.constant 0 : index
    %c0_68 = arith.constant 0 : index
    %70 = vector.load %arg12[%c0_66, %c0_67, %c0_68] : memref<4x8x2xf32, #tpu.memory_space<vmem>>, vector<1x8x2xf32>
    %71 = vector.shape_cast %70 : vector<1x8x2xf32> to vector<8x2xf32>
    %72 = vector.shape_cast %69#0 : vector<8x2xf32> to vector<1x8x2xf32>
    tpu.vector_store %arg12[%c0_66, %c0_67, %c0_68], %72 {strides = array<i32>} : memref<4x8x2xf32, #tpu.memory_space<vmem>>, vector<1x8x2xf32>,
    %c1_69 = arith.constant 1 : index
    %c0_70 = arith.constant 0 : index
    %c0_71 = arith.constant 0 : index
    %73 = vector.load %arg12[%c1_69, %c0_70, %c0_71] : memref<4x8x2xf32, #tpu.memory_space<vmem>>, vector<1x8x2xf32>
    %74 = vector.shape_cast %73 : vector<1x8x2xf32> to vector<8x2xf32>
    %75 = vector.shape_cast %69#1 : vector<8x2xf32> to vector<1x8x2xf32>
    tpu.vector_store %arg12[%c1_69, %c0_70, %c0_71], %75 {strides = array<i32>} : memref<4x8x2xf32, #tpu.memory_space<vmem>>, vector<1x8x2xf32>,
    %c2_72 = arith.constant 2 : index
    %c0_73 = arith.constant 0 : index
    %c0_74 = arith.constant 0 : index
    %76 = vector.load %arg12[%c2_72, %c0_73, %c0_74] : memref<4x8x2xf32, #tpu.memory_space<vmem>>, vector<1x8x2xf32>
    %77 = vector.shape_cast %76 : vector<1x8x2xf32> to vector<8x2xf32>
    %78 = vector.shape_cast %69#2 : vector<8x2xf32> to vector<1x8x2xf32>
    tpu.vector_store %arg12[%c2_72, %c0_73, %c0_74], %78 {strides = array<i32>} : memref<4x8x2xf32, #tpu.memory_space<vmem>>, vector<1x8x2xf32>,
    %c3_75 = arith.constant 3 : index
    %c0_76 = arith.constant 0 : index
    %c0_77 = arith.constant 0 : index
    %79 = vector.load %arg12[%c3_75, %c0_76, %c0_77] : memref<4x8x2xf32, #tpu.memory_space<vmem>>, vector<1x8x2xf32>
    %80 = vector.shape_cast %79 : vector<1x8x2xf32> to vector<8x2xf32>
    %81 = vector.shape_cast %69#3 : vector<8x2xf32> to vector<1x8x2xf32>
    tpu.vector_store %arg12[%c3_75, %c0_76, %c0_77], %81 {strides = array<i32>} : memref<4x8x2xf32, #tpu.memory_space<vmem>>, vector<1x8x2xf32>,
    %c0_78 = arith.constant 0 : index
    %c0_79 = arith.constant 0 : index
    %c0_80 = arith.constant 0 : index
    %82 = vector.load %arg13[%c0_78, %c0_79, %c0_80] : memref<10x8x2xf32, #tpu.memory_space<vmem>>, vector<1x8x2xf32>
    %83 = vector.shape_cast %82 : vector<1x8x2xf32> to vector<8x2xf32>
    %84 = vector.shape_cast %69#4 : vector<8x2xf32> to vector<1x8x2xf32>
    tpu.vector_store %arg13[%c0_78, %c0_79, %c0_80], %84 {strides = array<i32>} : memref<10x8x2xf32, #tpu.memory_space<vmem>>, vector<1x8x2xf32>,
    %c1_81 = arith.constant 1 : index
    %c0_82 = arith.constant 0 : index
    %c0_83 = arith.constant 0 : index
    %85 = vector.load %arg13[%c1_81, %c0_82, %c0_83] : memref<10x8x2xf32, #tpu.memory_space<vmem>>, vector<1x8x2xf32>
    %86 = vector.shape_cast %85 : vector<1x8x2xf32> to vector<8x2xf32>
    %87 = vector.shape_cast %69#5 : vector<8x2xf32> to vector<1x8x2xf32>
    tpu.vector_store %arg13[%c1_81, %c0_82, %c0_83], %87 {strides = array<i32>} : memref<10x8x2xf32, #tpu.memory_space<vmem>>, vector<1x8x2xf32>,
    %c2_84 = arith.constant 2 : index
    %c0_85 = arith.constant 0 : index
    %c0_86 = arith.constant 0 : index
    %88 = vector.load %arg13[%c2_84, %c0_85, %c0_86] : memref<10x8x2xf32, #tpu.memory_space<vmem>>, vector<1x8x2xf32>
    %89 = vector.shape_cast %88 : vector<1x8x2xf32> to vector<8x2xf32>
    %90 = vector.shape_cast %69#6 : vector<8x2xf32> to vector<1x8x2xf32>
    tpu.vector_store %arg13[%c2_84, %c0_85, %c0_86], %90 {strides = array<i32>} : memref<10x8x2xf32, #tpu.memory_space<vmem>>, vector<1x8x2xf32>,
    %c3_87 = arith.constant 3 : index
    %c0_88 = arith.constant 0 : index
    %c0_89 = arith.constant 0 : index
    %91 = vector.load %arg13[%c3_87, %c0_88, %c0_89] : memref<10x8x2xf32, #tpu.memory_space<vmem>>, vector<1x8x2xf32>
    %92 = vector.shape_cast %91 : vector<1x8x2xf32> to vector<8x2xf32>
    %93 = vector.shape_cast %69#7 : vector<8x2xf32> to vector<1x8x2xf32>
    tpu.vector_store %arg13[%c3_87, %c0_88, %c0_89], %93 {strides = array<i32>} : memref<10x8x2xf32, #tpu.memory_space<vmem>>, vector<1x8x2xf32>,
    %c4_90 = arith.constant 4 : index
    %c0_91 = arith.constant 0 : index
    %c0_92 = arith.constant 0 : index
    %94 = vector.load %arg13[%c4_90, %c0_91, %c0_92] : memref<10x8x2xf32, #tpu.memory_space<vmem>>, vector<1x8x2xf32>
    %95 = vector.shape_cast %94 : vector<1x8x2xf32> to vector<8x2xf32>
    %96 = vector.shape_cast %69#8 : vector<8x2xf32> to vector<1x8x2xf32>
    tpu.vector_store %arg13[%c4_90, %c0_91, %c0_92], %96 {strides = array<i32>} : memref<10x8x2xf32, #tpu.memory_space<vmem>>, vector<1x8x2xf32>,
    %c5_93 = arith.constant 5 : index
    %c0_94 = arith.constant 0 : index
    %c0_95 = arith.constant 0 : index
    %97 = vector.load %arg13[%c5_93, %c0_94, %c0_95] : memref<10x8x2xf32, #tpu.memory_space<vmem>>, vector<1x8x2xf32>
    %98 = vector.shape_cast %97 : vector<1x8x2xf32> to vector<8x2xf32>
    %99 = vector.shape_cast %69#9 : vector<8x2xf32> to vector<1x8x2xf32>
    tpu.vector_store %arg13[%c5_93, %c0_94, %c0_95], %99 {strides = array<i32>} : memref<10x8x2xf32, #tpu.memory_space<vmem>>, vector<1x8x2xf32>,
    %c6_96 = arith.constant 6 : index
    %c0_97 = arith.constant 0 : index
    %c0_98 = arith.constant 0 : index
    %100 = vector.load %arg13[%c6_96, %c0_97, %c0_98] : memref<10x8x2xf32, #tpu.memory_space<vmem>>, vector<1x8x2xf32>
    %101 = vector.shape_cast %100 : vector<1x8x2xf32> to vector<8x2xf32>
    %102 = vector.shape_cast %69#10 : vector<8x2xf32> to vector<1x8x2xf32>
    tpu.vector_store %arg13[%c6_96, %c0_97, %c0_98], %102 {strides = array<i32>} : memref<10x8x2xf32, #tpu.memory_space<vmem>>, vector<1x8x2xf32>,
    %c7_99 = arith.constant 7 : index
    %c0_100 = arith.constant 0 : index
    %c0_101 = arith.constant 0 : index
    %103 = vector.load %arg13[%c7_99, %c0_100, %c0_101] : memref<10x8x2xf32, #tpu.memory_space<vmem>>, vector<1x8x2xf32>
    %104 = vector.shape_cast %103 : vector<1x8x2xf32> to vector<8x2xf32>
    %105 = vector.shape_cast %69#11 : vector<8x2xf32> to vector<1x8x2xf32>
    tpu.vector_store %arg13[%c7_99, %c0_100, %c0_101], %105 {strides = array<i32>} : memref<10x8x2xf32, #tpu.memory_space<vmem>>, vector<1x8x2xf32>,
    %c8_102 = arith.constant 8 : index
    %c0_103 = arith.constant 0 : index
    %c0_104 = arith.constant 0 : index
    %106 = vector.load %arg13[%c8_102, %c0_103, %c0_104] : memref<10x8x2xf32, #tpu.memory_space<vmem>>, vector<1x8x2xf32>
    %107 = vector.shape_cast %106 : vector<1x8x2xf32> to vector<8x2xf32>
    %108 = vector.shape_cast %69#12 : vector<8x2xf32> to vector<1x8x2xf32>
    tpu.vector_store %arg13[%c8_102, %c0_103, %c0_104], %108 {strides = array<i32>} : memref<10x8x2xf32, #tpu.memory_space<vmem>>, vector<1x8x2xf32>,
    %c9_105 = arith.constant 9 : index
    %c0_106 = arith.constant 0 : index
    %c0_107 = arith.constant 0 : index
    %109 = vector.load %arg13[%c9_105, %c0_106, %c0_107] : memref<10x8x2xf32, #tpu.memory_space<vmem>>, vector<1x8x2xf32>
    %110 = vector.shape_cast %109 : vector<1x8x2xf32> to vector<8x2xf32>
    %111 = vector.shape_cast %69#13 : vector<8x2xf32> to vector<1x8x2xf32>
    tpu.vector_store %arg13[%c9_105, %c0_106, %c0_107], %111 {strides = array<i32>} : memref<10x8x2xf32, #tpu.memory_space<vmem>>, vector<1x8x2xf32>,
    return
  }
  func.func @transform_0(%arg0: i32, %arg1: i32) -> (i32, i32, i32, i32) {
    %c0_i32 = arith.constant 0 : i32
    %c0_i32_0 = arith.constant 0 : i32
    %c0_i32_1 = arith.constant 0 : i32
    return %arg1, %c0_i32, %c0_i32_0, %arg0 : i32, i32, i32, i32
  }
  func.func @transform_1(%arg0: i32, %arg1: i32) -> i32 {
    %c0_i32 = arith.constant 0 : i32
    %c0_i32_0 = arith.constant 0 : i32
    return %c0_i32 : i32
  }
  func.func @transform_2(%arg0: i32, %arg1: i32) -> i32 {
    %c0_i32 = arith.constant 0 : i32
    %c0_i32_0 = arith.constant 0 : i32
    return %c0_i32 : i32
  }
  func.func @transform_3(%arg0: i32, %arg1: i32) -> i32 {
    %c0_i32 = arith.constant 0 : i32
    %c0_i32_0 = arith.constant 0 : i32
    return %c0_i32 : i32
  }
  func.func @transform_4(%arg0: i32, %arg1: i32) -> i32 {
    %c0_i32 = arith.constant 0 : i32
    %c0_i32_0 = arith.constant 0 : i32
    return %c0_i32 : i32
  }
  func.func @transform_5(%arg0: i32, %arg1: i32) -> i32 {
    %c0_i32 = arith.constant 0 : i32
    %c0_i32_0 = arith.constant 0 : i32
    return %c0_i32 : i32
  }
  func.func @transform_6(%arg0: i32, %arg1: i32) -> i32 {
    %c0_i32 = arith.constant 0 : i32
    %c0_i32_0 = arith.constant 0 : i32
    return %c0_i32 : i32
  }
  func.func @transform_7(%arg0: i32, %arg1: i32) -> (i32, i32, i32, i32) {
    %c0_i32 = arith.constant 0 : i32
    %c0_i32_0 = arith.constant 0 : i32
    %c0_i32_1 = arith.constant 0 : i32
    return %arg1, %c0_i32, %c0_i32_0, %arg0 : i32, i32, i32, i32
  }
  func.func @transform_8(%arg0: i32, %arg1: i32) -> (i32, i32, i32, i32) {
    %c0_i32 = arith.constant 0 : i32
    %c0_i32_0 = arith.constant 0 : i32
    %c0_i32_1 = arith.constant 0 : i32
    return %arg1, %c0_i32, %c0_i32_0, %arg0 : i32, i32, i32, i32
  }
  func.func @transform_9(%arg0: i32, %arg1: i32) -> (i32, i32, i32, i32) {
    %c0_i32 = arith.constant 0 : i32
    %c0_i32_0 = arith.constant 0 : i32
    %c0_i32_1 = arith.constant 0 : i32
    return %arg1, %c0_i32, %c0_i32_0, %arg0 : i32, i32, i32, i32
  }
}

</mosaic_0001>

<bundles_post_ra>
// kernel: tpu_custom_call.1
= control target key start
LH: loop header
LB: loop body
LE: loop exit
PB: predicated region body
PF: predicated region fallthrough
CT: control target
= control target key end

     0   :  { %s3424_s0 = inlined_call_operand.vmem [shape: f32[16,2,8,2], index: 0, kind: input, shape index: {}]   ;;  %s3425_s1 = inlined_call_operand.vmem [shape: f32[4], index: 1, kind: input, shape index: {}]   ;;  %s3426_s2 = inlined_call_operand.vmem [shape: f32[16], index: 2, kind: input, shape index: {}]   ;;  %s3427_s3 = inlined_call_operand.vmem [shape: f32[16], index: 3, kind: input, shape index: {}]   ;;  %s3428_s4 = inlined_call_operand.vmem [shape: f32[8], index: 4, kind: input, shape index: {}]   ;;  %s3429_s5 = inlined_call_operand.vmem [shape: f32[16], index: 5, kind: input, shape index: {}]   ;;  %s3430_s6 = inlined_call_operand.vmem [shape: f32[4], index: 6, kind: input, shape index: {}]   ;;  %s3431_s7 = inlined_call_operand.vmem [shape: f32[16,4,8,2], index: 7, kind: output, shape index: {0}]   ;;  %s3432_s8 = inlined_call_operand.vmem [shape: f32[16,16,8,2], index: 8, kind: output, shape index: {1}]   ;;  %s3433_s9 = inlined_call_operand.vmem [shape: f32[16,8,8,2], index: 9, kind: output, shape index: {2}]  }
   0x1   :  { %3439 = sst [smem:[#allocation46_spill]] %s3424_s0 }
   0x2   :  { %3440 = sst [smem:[#allocation47_spill]] %s3425_s1 }
   0x3   :  { %3441 = sst [smem:[#allocation48_spill]] %s3426_s2 }
   0x4   :  { %3442 = sst [smem:[#allocation49_spill]] %s3427_s3 }
   0x5   :  { %3443 = sst [smem:[#allocation50_spill]] %s3428_s4 }
   0x6   :  { %3444 = sst [smem:[#allocation51_spill]] %s3429_s5 }
   0x7   :  { %3445 = sst [smem:[#allocation52_spill]] %s3430_s6 }
   0x8   :  { %3446 = sst [smem:[#allocation53_spill]] %s3431_s7 }
   0x9   :  { %3447 = sst [smem:[#allocation54_spill]] %s3432_s8 }
   0xa   :  { %3448 = sst [smem:[#allocation55_spill]] %s3433_s9 }
   0xb   :  { %15 = vsyncpa [#allocation5], 0 }
   0xc   :  { %16 = vsyncpa [#allocation7], 0 }
   0xd   :  { %17 = vsyncpa [#allocation10], 0 }
   0xe   :  { %18 = vsyncpa [#allocation13], 0  ;;  %s2351_s30 = smov 0   ;;  %s2353_s10 = smov 0  }
   0xf   :  { %s2355_s11 = smov 0  }
  0x10 LB: > { %3449 = sst [smem:[#allocation18_spill]] %s2229_s10  ;;  %s1693_s15 = sadd.s32 4294967295, %s2233_s11   ;;  %s2233_s11 = sphi %s2355_s11, %s24_s11   ;;  %s2229_s10 = sphi %s2353_s10, %s3541_s10   ;;  %s2225_s30 = sphi %s2351_s30, %s3540_s30  }
  0x11   : > { %3450 = sst [smem:[#allocation19_spill]] %s2233_s11  ;;  %s3451_s2 = sld [smem:[#allocation48_spill]] }
  0x12   : > { %p1695_p0 = scmp.ge.s32.totalorder %s2233_s11, 1  ;;  %p279_p1 = scmp.lt.s32.totalorder %s2233_s11, 3 }
  0x13   : > { %p2372_p2 = scmp.eq.s32.totalorder %s1693_s15, 0  ;;  %s3454_s4 = sld [smem:[#allocation50_spill]] }
  0x14   : > { %p2376_p3 = pnand %p1695_p0, %p279_p1  ;;  %s33_s22 = sadd.s32 1, %s2229_s10 }
  0x15   : > { %s3452_s16 = scalar_select %p2372_p2, 1, 0 }
  0x16   : > { %s3453_s17 = scalar_select %p2376_p3, 1, 0 }
  0x17   : > { %s303_s14 = sshll.u32 %s3451_s2, 4  ;;  %p1854_p4 = pneg %p2376_p3  ;;  %s304_s14 = int_to_ptr.vmem [resolvable:$true] %s303_s14 }
  0x18   : > { %s3456_s1 = sld [smem:[#allocation47_spill]]  ;;  %p2395_p6 = scmp.ge.s32.totalorder %s33_s22, 2 }
  0x19   : > { %s325_s20 = sshll.u32 %s3454_s4, 4  ;;  %p2387_p5 = pnand %p2372_p2, %p1854_p4  ;;  %s326_s20 = int_to_ptr.vmem [resolvable:$true] %s325_s20 }
  0x1a   : > { %s3457_s26 = scalar_select %p2395_p6, 1, 0 }
  0x1b   : > { %s2045_s27 = scalar_lea.vmem %s304_s14, 16  ;;  %p2401_p8 = pneg %p2387_p5 }
  0x1c   : > { %p2046_p7 = scmp.ne.s32.totalorder %s304_s14, %s2045_s27  ;;  %p2053_p11 = scmp.lt.s32.totalorder %s304_s14, %s304_s14 }
  0x1d   : > { %p2054_p12 = scmp.lt.s32.totalorder %s2045_s27, %s2045_s27 }
  0x1e   : > { %s292_s25 = sshll.u32 %s3456_s1, 4  ;;  %p2048_p9 = pnand %p2401_p8, %p2046_p7  ;;  %s293_s25 = int_to_ptr.vmem [resolvable:$true] %s292_s25 }
  0x1f   : > { %p2055_p13 = por %p2054_p12, %p2053_p11 }
  0x20   : > { %p2049_p10 = pneg %p2048_p9 }
  0x22   : > { %p2056_p0 = pnand %p2055_p13, %p2049_p10 }
  0x24   : > { %2059 = shalt.err (!%p2056_p0)
}
  0x25   : > { %s2295_s29 = smov [#allocation6]   ;;  %s2060_s12 = scalar_lea.vmem %s326_s20, 16 }
  0x26   : > { %1860 = dma.vmem_to_smem (!%p2387_p5), %s304_s14, 16, %s2295_s29, [#allocation7]  }
  0x27   : > { %p2061_p1 = scmp.ne.s32.totalorder %s326_s20, %s2060_s12  ;;  %p2068_p3 = scmp.lt.s32.totalorder %s326_s20, %s326_s20 }
  0x28   : > { %p2069_p6 = scmp.lt.s32.totalorder %s2060_s12, %s2060_s12 }
  0x29   : > { %p2063_p4 = pnand %p2061_p1, %p2401_p8 }
  0x2a   : > { %p2070_p7 = por %p2069_p6, %p2068_p3 }
  0x2b   : > { %p2064_p2 = pneg %p2063_p4 }
  0x2d   : > { %p2071_p9 = pnand %p2070_p7, %p2064_p2 }
  0x2f   : > { %2074 = shalt.err (!%p2071_p9)
}
  0x30   : > { %s2296_s13 = smov [#allocation9]   ;;  %p3459_p10 = scmp.ne.s32.totalorder %s3457_s26, 0 }
  0x31   : > { %1866 = dma.vmem_to_smem (!%p2387_p5), %s326_s20, 16, %s2296_s13, [#allocation10]  }
  0x32   : > { %s3543_s22 = smov (%p3459_p10, %s33_s22), 0  ;;  %s2075_s14 = scalar_lea.vmem %s293_s25, 16 }
  0x33   : > { %3460 = sst [smem:[#allocation20_spill]] %s3543_s22  ;;  %p2076_p11 = scmp.ne.s32.totalorder %s293_s25, %s2075_s14 }
  0x34   : > { %p2083_p0 = scmp.lt.s32.totalorder %s293_s25, %s293_s25  ;;  %p2084_p1 = scmp.lt.s32.totalorder %s2075_s14, %s2075_s14 }
  0x35   : > { %p2078_p12 = pnand %p2076_p11, %p2401_p8 }
  0x36   : > { %p2085_p3 = por %p2084_p1, %p2083_p0 }
  0x37   : > { %p2079_p13 = pneg %p2078_p12 }
  0x39   : > { %p2086_p2 = pnand %p2085_p3, %p2079_p13 }
  0x3b   : > { %2089 = shalt.err (!%p2086_p2)
}
  0x3c   : > { %s2297_s15 = smov [#allocation4]   ;;  %s3461_s3 = sld [smem:[#allocation49_spill]] }
  0x3d   : > { %1857 = dma.vmem_to_smem (!%p2387_p5), %s293_s25, 16, %s2297_s15, [#allocation5]  }
  0x3e   : > { %s3462_s5 = sld [smem:[#allocation51_spill]] }
  0x42   : > { %s314_s20 = sshll.u32 %s3461_s3, 4  ;;  %s315_s20 = int_to_ptr.vmem [resolvable:$true] %s314_s20 }
  0x43   : > { %s2090_s27 = scalar_lea.vmem %s315_s20, 16  ;;  %p2098_p9 = scmp.lt.s32.totalorder %s315_s20, %s315_s20 }
  0x44   : > { %s336_s26 = sshll.u32 %s3462_s5, 4  ;;  %p2091_p6 = scmp.ne.s32.totalorder %s315_s20, %s2090_s27  ;;  %s337_s26 = int_to_ptr.vmem [resolvable:$true] %s336_s26 }
  0x45   : > { %p2099_p10 = scmp.lt.s32.totalorder %s2090_s27, %s2090_s27 }
  0x46   : > { %p2093_p4 = pnand %p2091_p6, %p2401_p8 }
  0x47   : > { %p2100_p11 = por %p2099_p10, %p2098_p9 }
  0x48   : > { %p2094_p7 = pneg %p2093_p4 }
  0x4a   : > { %p2101_p12 = pnand %p2100_p11, %p2094_p7 }
  0x4c   : > { %2104 = shalt.err (!%p2101_p12)
}
  0x4d   : > { %s2298_s25 = smov [#allocation8]   ;;  %s2105_s29 = scalar_lea.vmem %s337_s26, 16 }
  0x4e   : > { %1863 = dma.vmem_to_smem (!%p2387_p5), %s315_s20, 16, %s2298_s25, [#allocation7]  }
  0x4f   : > { %p2106_p13 = scmp.ne.s32.totalorder %s337_s26, %s2105_s29  ;;  %p2113_p3 = scmp.lt.s32.totalorder %s337_s26, %s337_s26 }
  0x50   : > { %p2114_p2 = scmp.lt.s32.totalorder %s2105_s29, %s2105_s29 }
  0x51   : > { %p2108_p0 = pnand %p2106_p13, %p2401_p8 }
  0x52   : > { %p2115_p6 = por %p2114_p2, %p2113_p3 }
  0x53   : > { %p2109_p1 = pneg %p2108_p0 }
  0x55   : > { %p2116_p4 = pnand %p2115_p6, %p2109_p1 }
  0x57   : > { %2119 = shalt.err (!%p2116_p4)
}
  0x58   : > { %s2299_s12 = smov [#allocation11]   ;;  %s3463_s6 = sld [smem:[#allocation52_spill]] }
  0x59   : > { %1869 = dma.vmem_to_smem (!%p2387_p5), %s337_s26, 16, %s2299_s12, [#allocation10]  }
  0x5e   : > { %s347_s15 = sshll.u32 %s3463_s6, 4  ;;  %s348_s15 = int_to_ptr.vmem [resolvable:$true] %s347_s15 }
  0x5f   : > { %s2120_s18 = scalar_lea.vmem %s348_s15, 16  ;;  %p2128_p11 = scmp.lt.s32.totalorder %s348_s15, %s348_s15 }
  0x60   : > { %p2121_p7 = scmp.ne.s32.totalorder %s348_s15, %s2120_s18  ;;  %p2129_p12 = scmp.lt.s32.totalorder %s2120_s18, %s2120_s18 }
  0x62   : > { %p2123_p9 = pnand %p2121_p7, %p2401_p8  ;;  %p2130_p13 = por %p2129_p12, %p2128_p11 }
  0x64   : > { %p2124_p10 = pneg %p2123_p9 }
  0x66   : > { %p2131_p0 = pnand %p2130_p13, %p2124_p10 }
  0x68   : > { %2134 = shalt.err (!%p2131_p0)
}
  0x69   : > { %s2300_s19 = smov [#allocation12]   ;;  %p3464_p1 = scmp.ne.s32.totalorder %s3453_s17, 0 }
  0x6a   : > { %1872 = dma.vmem_to_smem (!%p2387_p5), %s348_s15, 16, %s2300_s19, [#allocation13]  }
  0x6b   : > { %373 = sbr.rel (%p3464_p1) target bundleno = 345 (0x159), region = 48 }
  0x72   : > { %p3465_p3 = scmp.ne.s32.totalorder %s3452_s16, 0 }
  0x74   : > { %2208 = dma.done.wait (%p3465_p3), [#allocation5], 16  }
  0x75   : > { %2210 = vsyncadd (%p3465_p3), [#allocation5], 4294967280 }
  0x76   : > { %2212 = dma.done.wait (%p3465_p3), [#allocation7], 32  }
  0x77   : > { %2214 = vsyncadd (%p3465_p3), [#allocation7], 4294967264 }
  0x78   : > { %2216 = dma.done.wait (%p3465_p3), [#allocation10], 32  }
  0x79   : > { %2218 = vsyncadd (%p3465_p3), [#allocation10], 4294967264 }
  0x7a   : > { %2220 = dma.done.wait (%p3465_p3), [#allocation13], 16  }
  0x7b   : > { %2222 = vsyncadd (%p3465_p3), [#allocation13], 4294967280 }
  0x7c   : > { %399 = sfence }
  0x7d   : > { %s1710_s17 = sshll.u32 %s2225_s30, 3  ;;  %s2461_s21 = sld [smem:[#allocation8]] }
  0x7e   : > { %p457_p5 = scmp.lt.s32.totalorder %s1710_s17, 15  ;;  %s2463_s28 = sld [smem:[#allocation8 + $0x1]] }
  0x7f   : > { %s2465_s20 = sld [smem:[#allocation8 + $0x2]]  ;;  %s2467_s23 = sld [smem:[#allocation8 + $0x3]] }
  0x80   : > { %s3545_s17 = smov (!%p457_p5, %s1710_s17), 15  ;;  %s2469_s24 = sld [smem:[#allocation8 + $0x4]] }
  0x81   : > { %s2471_s26 = sld [smem:[#allocation8 + $0x5]]  ;;  %s1826_s27 = sshll.u32 %s3545_s17, 4 }
  0x82   : > { %s1827_s16 = sshll.u32 %s3545_s17, 5  ;;  %s3466_s0 = sld [smem:[#allocation46_spill]] }
  0x83   : > { %s3468_s7 = sld [smem:[#allocation53_spill]]  ;;  %s1828_s18 = sshll.u32 %s3545_s17, 7 }
  0x84   : > { %s1829_s19 = sshll.u32 %s3545_s17, 6  ;;  %s3470_s8 = sld [smem:[#allocation54_spill]] }
  0x85   : > { %s3472_s9 = sld [smem:[#allocation55_spill]]  ;;  %s2493_s25 = sld [smem:[#allocation8 + $0x6]] }
  0x86   : > { %s2497_s29 = sld [smem:[#allocation8 + $0x8]]  ;;  %s2501_s13 = sld [smem:[#allocation8 + $0xa]] }
  0x87   : > { %s2503_s17 = sld [smem:[#allocation8 + $0xb]]  ;;  %s2505_s1 = sld [smem:[#allocation8 + $0xc]] }
  0x88   : > { %s2476_s12 = scalar_lea.vmem %s3466_s0, %s1826_s27  ;;  %s2495_s27 = sld [smem:[#allocation8 + $0x7]] }
  0x89   : > { %3467 = sst [smem:[#allocation21_spill]] %s2476_s12  ;;  %s2481_s15 = scalar_lea.vmem %s3468_s7, %s1827_s16 }
  0x8a   : > { %3469 = sst [smem:[#allocation22_spill]] %s2481_s15  ;;  %s2486_s3 = scalar_lea.vmem %s3470_s8, %s1828_s18 }
  0x8b   : > { %3471 = sst [smem:[#allocation23_spill]] %s2486_s3  ;;  %s2491_s6 = scalar_lea.vmem %s3472_s9, %s1829_s19 }
  0x8c   : > { %3473 = sst [smem:[#allocation24_spill]] %s2491_s6  ;;  %s2499_s16 = sld [smem:[#allocation8 + $0x9]] }
  0x8d   : > { %s2507_s2 = sld [smem:[#allocation8 + $0xd]]  ;;  %s2509_s14 = sld [smem:[#allocation8 + $0xe]] }
  0x8e   : > { %s2511_s4 = sld [smem:[#allocation8 + $0xf]]  ;;  %s2513_s5 = sld [smem:[#allocation9]] }
  0x8f   : > { %s2515_s18 = sld [smem:[#allocation9 + $0x1]]  ;;  %s2517_s19 = sld [smem:[#allocation9 + $0x2]] }
  0x90   : > { %s2519_s0 = sld [smem:[#allocation9 + $0x3]]  ;;  %s2521_s7 = sld [smem:[#allocation9 + $0x4]] }
  0x91   : > { %s2523_s8 = sld [smem:[#allocation9 + $0x5]]  ;;  %s2525_s9 = sld [smem:[#allocation9 + $0x6]] }
  0x92   : > { %s2527_s22 = sld [smem:[#allocation9 + $0x7]]  ;;  %s2529_s10 = sld [smem:[#allocation11]] }
  0x93   : > { %s2531_s11 = sld [smem:[#allocation11 + $0x1]]  ;;  %s2533_s3 = sld [smem:[#allocation11 + $0x2]] }
  0x94   : > { %3474 = sst [smem:[#allocation25_spill]] %s2513_s5  ;;  %s2535_s15 = sld [smem:[#allocation11 + $0x3]] }
  0x95   : > { %3475 = sst [smem:[#allocation26_spill]] %s2515_s18  ;;  %s2537_s6 = sld [smem:[#allocation11 + $0x5]] }
  0x96   : > { %3476 = sst [smem:[#allocation27_spill]] %s2517_s19  ;;  %s2539_s12 = sld [smem:[#allocation11 + $0x6]] }
  0x97   : > { %3477 = sst [smem:[#allocation28_spill]] %s2519_s0  ;;  %s2541_s0 = sld [smem:[#allocation11 + $0x7]] }
  0x98   : > { %3478 = sst [smem:[#allocation29_spill]] %s2521_s7  ;;  %s2543_s7 = sld [smem:[#allocation11 + $0xa]] }
  0x99   : > { %3479 = sst [smem:[#allocation30_spill]] %s2523_s8  ;;  %s2545_s8 = sld [smem:[#allocation11 + $0xb]] }
  0x9a   : > { %3480 = sst [smem:[#allocation31_spill]] %s2525_s9  ;;  %s2547_s9 = sld [smem:[#allocation11 + $0xf]] }
  0x9b   : > { %3481 = sst [smem:[#allocation32_spill]] %s2527_s22  ;;  %s2549_s22 = sld [smem:[#allocation12]] }
  0x9c   : > { %3482 = sst [smem:[#allocation33_spill]] %s2529_s10  ;;  %s2551_s19 = sld [smem:[#allocation12 + $0x1]] }
  0x9d   : > { %3483 = sst [smem:[#allocation34_spill]] %s2531_s11  ;;  %s2553_s18 = sld [smem:[#allocation12 + $0x3]] }
  0x9e   : > { %3484 = sst [smem:[#allocation35_spill]] %s2533_s3  ;;  %p1755_p8 = scmp.ne.s32.totalorder %s2225_s30, 0 }
  0x9f   : > { %3485 = sst [smem:[#allocation36_spill]] %s2535_s15  ;;  %s537_s5 = sld [smem:[#allocation4]] (!%p1755_p8)  ;;  %vm539_vm0 = vcmask (!%p1755_p8), 15360  }
  0xa0   : > { %3486 = sst [smem:[#allocation37_spill]] %s2537_s6  ;;  %s1756_s6 = sld [smem:[#allocation4 + $0x1]] (!%p1755_p8) }
  0xa1   : > { %3487 = sst [smem:[#allocation38_spill]] %s2539_s12  ;;  %s1757_s12 = sld [smem:[#allocation4 + $0x2]] (!%p1755_p8) }
  0xa2   : > { %3488 = sst [smem:[#allocation39_spill]] %s2541_s0  ;;  %536 = sbr.rel (%p1755_p8) target bundleno = 179 (0xb3), region = 76 }
  0xa3   : > { %3489 = sst [smem:[#allocation40_spill]] %s2543_s7  ;;  %s1758_s15 = sld [smem:[#allocation4 + $0x3]] (!%p1755_p8) }
  0xa4   : > { %3490 = sst [smem:[#allocation41_spill]] %s2545_s8  ;;  %s553_s0 = sld [smem:[#allocation6]] (!%p1755_p8) }
  0xa5   : > { %3491 = sst [smem:[#allocation42_spill]] %s2547_s9  ;;  %s1759_s3 = sld [smem:[#allocation6 + $0x1]] (!%p1755_p8)  ;;  %v538_v0 = vstv (!%p1755_p8), %s537_s5 }
  0xa6   : > { %3492 = sst [smem:[#allocation43_spill]] %s2549_s22  ;;  %s1760_s7 = sld [smem:[#allocation6 + $0x2]] (!%p1755_p8)  ;;  %v542_v1 = vstv (!%p1755_p8), %s1756_s6  ;;  %540 = vst.msk [vmem:[#allocation2] sm:$0xff] (!%p1755_p8), %vm539_vm0, %v538_v0 }
  0xa7   : > { %3493 = sst [smem:[#allocation44_spill]] %s2551_s19  ;;  %s1761_s11 = sld [smem:[#allocation6 + $0x3]] (!%p1755_p8)  ;;  %544 = vst.msk [vmem:[#allocation2 + $0x8] sm:$0xff] (!%p1755_p8), %vm539_vm0, %v542_v1  ;;  %v546_v2 = vstv (!%p1755_p8), %s1757_s12 }
  0xa8   : > { %3494 = sst [smem:[#allocation45_spill]] %s2553_s18  ;;  %s1762_s8 = sld [smem:[#allocation6 + $0x5]] (!%p1755_p8)  ;;  %548 = vst.msk [vmem:[#allocation2 + $0x10] sm:$0xff] (!%p1755_p8), %vm539_vm0, %v546_v2 }
  0xa9   : > { %s1763_s9 = sld [smem:[#allocation6 + $0x6]]  ;;  %s1764_s10 = sld [smem:[#allocation6 + $0x7]]  ;;  %v550_v3 = vstv %s1758_s15 }
  0xaa   : > { %s1765_s22 = sld [smem:[#allocation6 + $0xa]]  ;;  %s1766_s19 = sld [smem:[#allocation6 + $0xb]]  ;;  %552 = vst.msk [vmem:[#allocation2 + $0x18] sm:$0xff] %vm539_vm0, %v550_v3  ;;  %v554_v4 = vstv %s553_s0 }
  0xab   : > { %s1767_s18 = sld [smem:[#allocation6 + $0xf]]  ;;  %v557_v5 = vstv %s1759_s3  ;;  %555 = vst.msk [vmem:[#allocation3] sm:$0xff] %vm539_vm0, %v554_v4 }
  0xac   : > { %559 = vst.msk [vmem:[#allocation3 + $0x8] sm:$0xff] %vm539_vm0, %v557_v5  ;;  %v561_v6 = vstv %s1760_s7 }
  0xad   : > { %v565_v7 = vstv %s1761_s11  ;;  %563 = vst.msk [vmem:[#allocation3 + $0x10] sm:$0xff] %vm539_vm0, %v561_v6 }
  0xae   : > { %567 = vst.msk [vmem:[#allocation3 + $0x18] sm:$0xff] %vm539_vm0, %v565_v7  ;;  %v569_v8 = vstv %s1762_s8 }
  0xaf   : > { %v573_v9 = vstv %s1763_s9  ;;  %571 = vst.msk [vmem:[#allocation3 + $0x20] sm:$0xff] %vm539_vm0, %v569_v8  ;;  %v577_v10 = vstv %s1764_s10 }
  0xb0   : > { %575 = vst.msk [vmem:[#allocation3 + $0x28] sm:$0xff] %vm539_vm0, %v573_v9  ;;  %v581_v11 = vstv %s1765_s22  ;;  %579 = vst.msk [vmem:[#allocation3 + $0x30] sm:$0xff] %vm539_vm0, %v577_v10  ;;  %v585_v12 = vstv %s1766_s19 }
  0xb1   : > { %583 = vst.msk [vmem:[#allocation3 + $0x38] sm:$0xff] %vm539_vm0, %v581_v11  ;;  %v589_v13 = vstv %s1767_s18  ;;  %587 = vst.msk [vmem:[#allocation3 + $0x40] sm:$0xff] %vm539_vm0, %v585_v12 }
  0xb2   : > { %591 = vst.msk [vmem:[#allocation3 + $0x48] sm:$0xff] %vm539_vm0, %v589_v13 }
  0xb3 PF: > { %v598_v17 = vld [vmem:[#allocation2 + $0x18] sm:$0xff]   ;;  %v599_v18 = vld [vmem:[#allocation3] sm:$0xff]   ;;  %v601_v19 = vld [vmem:[#allocation3 + $0x8] sm:$0xff]   ;;  %s2598_s0 = smov 0  }
  0xb4   : > { %v603_v20 = vld [vmem:[#allocation3 + $0x10] sm:$0xff]  }
  0xb5   : > { %v605_v21 = vld [vmem:[#allocation3 + $0x18] sm:$0xff]  }
  0xb6   : > { %v607_v22 = vld [vmem:[#allocation3 + $0x20] sm:$0xff]  }
  0xb7   : > { %v592_v14 = vld [vmem:[#allocation2] sm:$0xff]   ;;  %v609_v23 = vld [vmem:[#allocation3 + $0x28] sm:$0xff]   ;;  %v611_v24 = vld [vmem:[#allocation3 + $0x30] sm:$0xff]  }
  0xb8   : > { %v594_v15 = vld [vmem:[#allocation2 + $0x8] sm:$0xff]   ;;  %v613_v25 = vld [vmem:[#allocation3 + $0x38] sm:$0xff]   ;;  %v615_v26 = vld [vmem:[#allocation3 + $0x40] sm:$0xff]  }
  0xb9   : > { %v596_v16 = vld [vmem:[#allocation2 + $0x10] sm:$0xff]   ;;  %v617_v27 = vld [vmem:[#allocation3 + $0x48] sm:$0xff]  }
  0xba LB: >> { %2035 = vtanh.f32 %v2289_v14  ;;  %v642_v28 = vstv %s2461_s21  ;;  %v2639_v29 = vstv %s2463_s28  ;;  %v2642_v30 = vstv %s2465_s20  ;;  %s3495_s3 = sld [smem:[#allocation33_spill]]  ;;  %s3496_s6 = sld [smem:[#allocation34_spill]]  ;;  %s2293_s0 = sphi %s2598_s0, %s623_s0   ;;  %v2289_v14 = vphi %v592_v14, %v3538_v14   ;;  %v2285_v15 = vphi %v594_v15, %v3537_v15   ;;  %v2281_v16 = vphi %v596_v16, %v3536_v16   ;;  %v2277_v17 = vphi %v598_v17, %v3535_v17   ;;  %v2273_v18 = vphi %v599_v18, %v3534_v18   ;;  %v2269_v19 = vphi %v601_v19, %v3533_v19   ;;  %v2265_v20 = vphi %v603_v20, %v3532_v20   ;;  %v2261_v21 = vphi %v605_v21, %v3531_v21   ;;  %v2257_v22 = vphi %v607_v22, %v3530_v22   ;;  %v2253_v23 = vphi %v609_v23, %v3529_v23   ;;  %v2249_v24 = vphi %v611_v24, %v3528_v24   ;;  %v2245_v25 = vphi %v613_v25, %v3527_v25   ;;  %v2241_v26 = vphi %v615_v26, %v3526_v26   ;;  %v2237_v27 = vphi %v617_v27, %v3525_v27  }
  0xbb   : >> { %2037 = vtanh.f32 %v2285_v15  ;;  %v643_v31 = vmul.f32 %v2289_v14, %v642_v28  ;;  %v646_v32 = vmul.f32 %v2285_v15, %v2639_v29  ;;  %v649_v33 = vmul.f32 %v2281_v16, %v2642_v30  ;;  %s3497_s7 = sld [smem:[#allocation35_spill]]  ;;  %s3498_s8 = sld [smem:[#allocation36_spill]] }
  0xbc   : >> { %2039 = vtanh.f32 %v2281_v16  ;;  %v2649_v34 = vstv %s2467_s23  ;;  %v2652_v35 = vstv %s2469_s24  ;;  %v659_v36 = vstv %s2471_s26  ;;  %s3499_s9 = sld [smem:[#allocation37_spill]]  ;;  %s3500_s30 = sld [smem:[#allocation38_spill]] }
  0xbd   : >> { %2041 = vtanh.f32 %v2277_v17  ;;  %v647_v37 = vadd.f32 %v646_v32, %v643_v31  ;;  %v652_v38 = vmul.f32 %v2277_v17, %v2649_v34  ;;  %v657_v39 = vmul.f32 %v2289_v14, %v2652_v35  ;;  %s3501_s10 = sld [smem:[#allocation39_spill]]  ;;  %s3502_s11 = sld [smem:[#allocation40_spill]] }
  0xbe   : >> { %v660_v40 = vmul.f32 %v2285_v15, %v659_v36  ;;  %v2660_v41 = vstv %s2493_s25  ;;  %v2663_v42 = vstv %s2495_s27  ;;  %v2666_v43 = vstv %s2497_s29  ;;  %s3503_s22 = sld [smem:[#allocation41_spill]]  ;;  %s3504_s12 = sld [smem:[#allocation42_spill]] }
  0xbf   : >> { %v650_v44 = vadd.f32 %v649_v33, %v647_v37  ;;  %v663_v45 = vmul.f32 %v2281_v16, %v2660_v41  ;;  %v666_v46 = vmul.f32 %v2277_v17, %v2663_v42  ;;  %v671_v47 = vmul.f32 %v2289_v14, %v2666_v43  ;;  %s3505_s15 = sld [smem:[#allocation25_spill]]  ;;  %s3506_s5 = sld [smem:[#allocation26_spill]] }
  0xc0   : >> { %v661_v48 = vadd.f32 %v660_v40, %v657_v39  ;;  %v2672_v49 = vstv %s2499_s16  ;;  %v676_v50 = vstv %s2501_s13  ;;  %v2676_v51 = vstv %s2503_s17  ;;  %s3507_s18 = sld [smem:[#allocation27_spill]]  ;;  %s3508_s19 = sld [smem:[#allocation28_spill]] }
  0xc1   : >> { %v653_v52 = vadd.f32 %v652_v38, %v650_v44  ;;  %v674_v53 = vmul.f32 %v2285_v15, %v2672_v49  ;;  %v677_v54 = vmul.f32 %v2281_v16, %v676_v50  ;;  %v680_v55 = vmul.f32 %v2277_v17, %v2676_v51 }
  0xc2   : >> { %v664_v56 = vadd.f32 %v663_v45, %v661_v48  ;;  %v2681_v57 = vstv %s2505_s1  ;;  %v2684_v58 = vstv %s2507_s2  ;;  %v2687_v59 = vstv %s2509_s14 }
  0xc3   : >> { %v675_v60 = vadd.f32 %v674_v53, %v671_v47  ;;  %v685_v61 = vmul.f32 %v2289_v14, %v2681_v57  ;;  %v688_v62 = vmul.f32 %v2285_v15, %v2684_v58  ;;  %v691_v63 = vmul.f32 %v2281_v16, %v2687_v59 }
  0xc4   : >> { %v2036_v0 = vpop.eup %2035  ;;  %v667_v1 = vadd.f32 %v666_v46, %v664_v56  ;;  %v693_v2 = vstv %s2511_s4  ;;  %v716_v3 = vmul.f32 %v2269_v19, %v2639_v29  ;;  %v718_v4 = vmul.f32 %v2265_v20, %v2642_v30 }
  0xc5   : >> { %v2038_v5 = vpop.eup %2037  ;;  %v654_v6 = vmul.f32 0.1, %v2036_v0  ;;  %v678_v7 = vadd.f32 %v677_v54, %v675_v60  ;;  %v689_v8 = vadd.f32 %v688_v62, %v685_v61  ;;  %v694_v9 = vmul.f32 %v2277_v17, %v693_v2 }
  0xc6   : >> { %v2040_v10 = vpop.eup %2039  ;;  %v668_v11 = vmul.f32 0.1, %v2038_v5  ;;  %v698_v12 = vmul.f32 %v2036_v0, %v2036_v0  ;;  %v702_v13 = vmul.f32 %v2038_v5, %v2038_v5  ;;  %v720_v14 = vmul.f32 %v2261_v21, %v2649_v34 }
  0xc7   : >> { %v2042_v15 = vpop.eup %2041  ;;  %v2699_v16 = vadd.f32 %v654_v6, %v653_v52  ;;  %v681_v31 = vadd.f32 %v680_v55, %v678_v7  ;;  %v682_v32 = vmul.f32 0.1, %v2040_v10  ;;  %v692_v33 = vadd.f32 %v691_v63, %v689_v8 }
  0xc8   : >> { %v2701_v37 = vadd.f32 %v668_v11, %v667_v1  ;;  %v696_v38 = vmul.f32 0.1, %v2042_v15  ;;  %v699_v39 = vsub.f32 1.0, %v698_v12  ;;  %v703_v17 = vsub.f32 1.0, %v702_v13 }
  0xc9   : >> { %v2703_v40 = vadd.f32 %v682_v32, %v681_v31  ;;  %v695_v44 = vadd.f32 %v694_v9, %v692_v33  ;;  %v706_v45 = vmul.f32 %v2040_v10, %v2040_v10  ;;  %v710_v46 = vmul.f32 %v2042_v15, %v2042_v15 }
  0xca   : >> { %v700_v47 = vmul.f32 0.1, %v699_v39  ;;  %v704_v48 = vmul.f32 0.1, %v703_v17  ;;  %v724_v52 = vmul.f32 %v2257_v22, %v2639_v29  ;;  %v726_v53 = vmul.f32 %v2253_v23, %v2642_v30 }
  0xcb   : >> { %v2709_v54 = vadd.f32 %v696_v38, %v695_v44  ;;  %v707_v55 = vsub.f32 1.0, %v706_v45  ;;  %v711_v56 = vsub.f32 1.0, %v710_v46  ;;  %v728_v60 = vmul.f32 %v2249_v24, %v2649_v34 }
  0xcc   : >> { %v2715_v61 = vadd.f32 %v700_v47, %v642_v28  ;;  %v2719_v62 = vadd.f32 %v704_v48, %v659_v36  ;;  %v732_v63 = vmul.f32 %v2253_v23, %v2639_v29  ;;  %v734_v0 = vmul.f32 %v2245_v25, %v2642_v30 }
  0xcd   : >> { %v708_v1 = vmul.f32 0.1, %v707_v55  ;;  %v712_v5 = vmul.f32 0.1, %v711_v56  ;;  %v736_v6 = vmul.f32 %v2241_v26, %v2649_v34  ;;  %v740_v7 = vmul.f32 %v2249_v24, %v2639_v29 }
  0xce   : >> { %v714_v28 = vmul.f32 %v2273_v18, %v2715_v61  ;;  %v722_v36 = vmul.f32 %v2269_v19, %v2715_v61  ;;  %v730_v8 = vmul.f32 %v2265_v20, %v2715_v61  ;;  %v738_v9 = vmul.f32 %v2261_v21, %v2715_v61 }
  0xcf   : >> { %v2737_v10 = vadd.f32 %v708_v1, %v676_v50  ;;  %v2739_v11 = vadd.f32 %v712_v5, %v693_v2  ;;  %v742_v12 = vmul.f32 %v2241_v26, %v2642_v30  ;;  %v744_v13 = vmul.f32 %v2237_v27, %v2649_v34 }
  0xd0   : >> { %v717_v15 = vadd.f32 %v716_v3, %v714_v28  ;;  %v725_v31 = vadd.f32 %v724_v52, %v722_v36  ;;  %v733_v32 = vadd.f32 %v732_v63, %v730_v8  ;;  %v741_v33 = vadd.f32 %v740_v7, %v738_v9 }
  0xd1   : >> { %v746_v38 = vmul.f32 %v2273_v18, %v2652_v35  ;;  %v748_v39 = vmul.f32 %v2269_v19, %v2719_v62  ;;  %v750_v50 = vmul.f32 %v2265_v20, %v2660_v41  ;;  %v752_v2 = vmul.f32 %v2261_v21, %v2663_v42 }
  0xd2   : >> { %v719_v17 = vadd.f32 %v718_v4, %v717_v15  ;;  %v727_v44 = vadd.f32 %v726_v53, %v725_v31  ;;  %v735_v45 = vadd.f32 %v734_v0, %v733_v32  ;;  %v743_v46 = vadd.f32 %v742_v12, %v741_v33 }
  0xd3   : >> { %v749_v3 = vadd.f32 %v748_v39, %v746_v38  ;;  %v754_v47 = vmul.f32 %v2269_v19, %v2652_v35  ;;  %v756_v48 = vmul.f32 %v2257_v22, %v2719_v62  ;;  %v758_v52 = vmul.f32 %v2253_v23, %v2660_v41 }
  0xd4   : >> { %v2759_v55 = vadd.f32 %v720_v14, %v719_v17  ;;  %v2761_v56 = vadd.f32 %v728_v60, %v727_v44  ;;  %v2763_v63 = vadd.f32 %v736_v6, %v735_v45  ;;  %v2765_v4 = vadd.f32 %v744_v13, %v743_v46 }
  0xd5   : >> { %v751_v53 = vadd.f32 %v750_v50, %v749_v3  ;;  %v757_v0 = vadd.f32 %v756_v48, %v754_v47  ;;  %v760_v1 = vmul.f32 %v2249_v24, %v2663_v42  ;;  %v762_v5 = vmul.f32 %v2265_v20, %v2652_v35 }
  0xd6   : >> { %v764_v7 = vmul.f32 %v2253_v23, %v2719_v62  ;;  %v766_v14 = vmul.f32 %v2245_v25, %v2660_v41  ;;  %v768_v60 = vmul.f32 %v2241_v26, %v2663_v42  ;;  %v770_v6 = vmul.f32 %v2261_v21, %v2652_v35 }
  0xd7   : >> { %v2779_v28 = vadd.f32 %v752_v2, %v751_v53  ;;  %v759_v36 = vadd.f32 %v758_v52, %v757_v0  ;;  %v772_v8 = vmul.f32 %v2249_v24, %v2719_v62  ;;  %v774_v9 = vmul.f32 %v2241_v26, %v2660_v41 }
  0xd8   : >> { %v765_v12 = vadd.f32 %v764_v7, %v762_v5  ;;  %v776_v13 = vmul.f32 %v2237_v27, %v2663_v42  ;;  %v778_v15 = vmul.f32 %v2273_v18, %v2666_v43  ;;  %v780_v31 = vmul.f32 %v2269_v19, %v2672_v49 }
  0xd9   : >> { %v2791_v32 = vadd.f32 %v760_v1, %v759_v36  ;;  %v773_v33 = vadd.f32 %v772_v8, %v770_v6  ;;  %v782_v38 = vmul.f32 %v2265_v20, %v2737_v10  ;;  %v784_v39 = vmul.f32 %v2261_v21, %v2676_v51 }
  0xda   : >> { %v767_v50 = vadd.f32 %v766_v14, %v765_v12  ;;  %v781_v2 = vadd.f32 %v780_v31, %v778_v15  ;;  %v786_v17 = vmul.f32 %v2269_v19, %v2666_v43  ;;  %v788_v44 = vmul.f32 %v2257_v22, %v2672_v49 }
  0xdb   : >> { %v775_v45 = vadd.f32 %v774_v9, %v773_v33  ;;  %v790_v46 = vmul.f32 %v2253_v23, %v2737_v10  ;;  %v792_v3 = vmul.f32 %v2249_v24, %v2676_v51  ;;  %v794_v47 = vmul.f32 %v2265_v20, %v2666_v43 }
  0xdc   : >> { %v2807_v48 = vadd.f32 %v768_v60, %v767_v50  ;;  %v783_v52 = vadd.f32 %v782_v38, %v781_v2  ;;  %v789_v53 = vadd.f32 %v788_v44, %v786_v17  ;;  %v796_v0 = vmul.f32 %v2253_v23, %v2672_v49 }
  0xdd   : >> { %v2811_v1 = vadd.f32 %v776_v13, %v775_v45  ;;  %v798_v5 = vmul.f32 %v2245_v25, %v2737_v10  ;;  %v800_v7 = vmul.f32 %v2241_v26, %v2676_v51  ;;  %v802_v14 = vmul.f32 %v2261_v21, %v2666_v43 }
  0xde   : >> { %v2819_v6 = vadd.f32 %v784_v39, %v783_v52  ;;  %v791_v60 = vadd.f32 %v790_v46, %v789_v53  ;;  %v797_v36 = vadd.f32 %v796_v0, %v794_v47  ;;  %v804_v8 = vmul.f32 %v2249_v24, %v2672_v49 }
  0xdf   : >> { %v806_v9 = vmul.f32 %v2241_v26, %v2737_v10  ;;  %v808_v12 = vmul.f32 %v2237_v27, %v2676_v51  ;;  %v810_v13 = vmul.f32 %v2273_v18, %v2681_v57  ;;  %v812_v15 = vmul.f32 %v2269_v19, %v2684_v58 }
  0xe0   : >> { %v2831_v31 = vadd.f32 %v792_v3, %v791_v60  ;;  %v799_v33 = vadd.f32 %v798_v5, %v797_v36  ;;  %v805_v38 = vadd.f32 %v804_v8, %v802_v14  ;;  %v814_v39 = vmul.f32 %v2265_v20, %v2687_v59 }
  0xe1   : >> { %v813_v50 = vadd.f32 %v812_v15, %v810_v13  ;;  %v816_v2 = vmul.f32 %v2261_v21, %v2739_v11  ;;  %v818_v17 = vmul.f32 %v2269_v19, %v2681_v57  ;;  %v820_v18 = vmul.f32 %v2257_v22, %v2684_v58 }
  0xe2   : >> { %v2841_v44 = vadd.f32 %v800_v7, %v799_v33  ;;  %v807_v45 = vadd.f32 %v806_v9, %v805_v38  ;;  %v822_v46 = vmul.f32 %v2253_v23, %v2687_v59  ;;  %v824_v3 = vmul.f32 %v2249_v24, %v2739_v11 }
  0xe3   : >> { %v815_v47 = vadd.f32 %v814_v39, %v813_v50  ;;  %v821_v52 = vadd.f32 %v820_v18, %v818_v17  ;;  %v826_v53 = vmul.f32 %v2265_v20, %v2681_v57  ;;  %v828_v19 = vmul.f32 %v2253_v23, %v2684_v58 }
  0xe4   : >> { %v2851_v0 = vadd.f32 %v808_v12, %v807_v45  ;;  %v830_v22 = vmul.f32 %v2245_v25, %v2687_v59  ;;  %v832_v5 = vmul.f32 %v2241_v26, %v2739_v11  ;;  %v834_v7 = vmul.f32 %v2261_v21, %v2681_v57 }
  0xe5   : >> { %v2859_v14 = vadd.f32 %v816_v2, %v815_v47  ;;  %v823_v60 = vadd.f32 %v822_v46, %v821_v52  ;;  %v829_v36 = vadd.f32 %v828_v19, %v826_v53  ;;  %v836_v20 = vmul.f32 %v2249_v24, %v2684_v58 }
  0xe6   : >> { %v838_v23 = vmul.f32 %v2241_v26, %v2687_v59  ;;  %v840_v25 = vmul.f32 %v2237_v27, %v2739_v11  ;;  %v842_v8 = vmul.f32 %v2759_v55, %v2715_v61  ;;  %v844_v21 = vmul.f32 %v2761_v56, %v2639_v29 }
  0xe7   : >> { %v2871_v9 = vadd.f32 %v824_v3, %v823_v60  ;;  %v831_v12 = vadd.f32 %v830_v22, %v829_v36  ;;  %v837_v13 = vadd.f32 %v836_v20, %v834_v7  ;;  %v846_v24 = vmul.f32 %v2763_v63, %v2642_v30 }
  0xe8   : >> { %v845_v15 = vadd.f32 %v844_v21, %v842_v8  ;;  %v848_v26 = vmul.f32 %v2765_v4, %v2649_v34  ;;  %v850_v33 = vstv %s3495_s3  ;;  %v852_v27 = vmul.f32 %v2759_v55, %v2652_v35  ;;  %s3509_s3 = sld [smem:[#allocation29_spill]] }
  0xe9   : >> { %v2880_v61 = vadd.f32 %v832_v5, %v831_v12  ;;  %v839_v38 = vadd.f32 %v838_v23, %v837_v13  ;;  %v854_v29 = vmul.f32 %v2761_v56, %v2719_v62  ;;  %v856_v39 = vmul.f32 %v2763_v63, %v2660_v41 }
  0xea   : >> { %v847_v50 = vadd.f32 %v846_v24, %v845_v15  ;;  %v858_v30 = vmul.f32 %v2765_v4, %v2663_v42  ;;  %v860_v2 = vstv %s3496_s6  ;;  %v862_v34 = vmul.f32 %v2759_v55, %v2666_v43  ;;  %s3510_s6 = sld [smem:[#allocation30_spill]] }
  0xeb   : >> { %v2891_v17 = vadd.f32 %v840_v25, %v839_v38  ;;  %v855_v18 = vadd.f32 %v854_v29, %v852_v27  ;;  %v864_v45 = vmul.f32 %v2761_v56, %v2672_v49  ;;  %v866_v46 = vmul.f32 %v2763_v63, %v2737_v10 }
  0xec   : >> { %v849_v3 = vadd.f32 %v848_v26, %v847_v50  ;;  %v868_v47 = vmul.f32 %v2765_v4, %v2676_v51  ;;  %v870_v52 = vstv %s3497_s7  ;;  %v872_v53 = vmul.f32 %v2759_v55, %v2681_v57  ;;  %s3511_s7 = sld [smem:[#allocation31_spill]] }
  0xed   : >> { %v857_v19 = vadd.f32 %v856_v39, %v855_v18  ;;  %v865_v22 = vadd.f32 %v864_v45, %v862_v34  ;;  %v874_v5 = vmul.f32 %v2761_v56, %v2684_v58  ;;  %v876_v7 = vmul.f32 %v2763_v63, %v2687_v59 }
  0xee   : >> { %v2906_v60 = vadd.f32 %v850_v33, %v849_v3  ;;  %v878_v36 = vmul.f32 %v2765_v4, %v2739_v11  ;;  %v880_v20 = vstv %s3498_s8  ;;  %v882_v23 = vmul.f32 %v2779_v28, %v2652_v35  ;;  %s3512_s8 = sld [smem:[#allocation32_spill]] }
  0xef   : >> { %v859_v25 = vadd.f32 %v858_v30, %v857_v19  ;;  %v867_v55 = vadd.f32 %v866_v46, %v865_v22  ;;  %v875_v8 = vadd.f32 %v874_v5, %v872_v53  ;;  %v884_v21 = vmul.f32 %v2791_v32, %v2719_v62 }
  0xf0   : >> { %v886_v56 = vmul.f32 %v2807_v48, %v2660_v41  ;;  %v888_v63 = vmul.f32 %v2811_v1, %v2663_v42  ;;  %v890_v12 = vstv %s3499_s9  ;;  %v892_v4 = vmul.f32 %v2779_v28, %v2666_v43  ;;  %s3513_s9 = sld [smem:[#allocation43_spill]] }
  0xf1   : >> { %v2922_v13 = vadd.f32 %v860_v2, %v859_v25  ;;  %v869_v35 = vadd.f32 %v868_v47, %v867_v55  ;;  %v877_v24 = vadd.f32 %v876_v7, %v875_v8  ;;  %v885_v15 = vadd.f32 %v884_v21, %v882_v23 }
  0xf2   : >> { %v894_v26 = vmul.f32 %v2791_v32, %v2672_v49  ;;  %v896_v62 = vmul.f32 %v2807_v48, %v2737_v10  ;;  %v898_v41 = vmul.f32 %v2811_v1, %v2676_v51  ;;  %v900_v42 = vstv %s3500_s30  ;;  %s3514_s30 = sld [smem:[#allocation44_spill]] }
  0xf3   : >> { %v2931_v33 = vadd.f32 %v870_v52, %v869_v35  ;;  %v879_v27 = vadd.f32 %v878_v36, %v877_v24  ;;  %v887_v38 = vadd.f32 %v886_v56, %v885_v15  ;;  %v902_v29 = vmul.f32 %v2779_v28, %v2681_v57 }
  0xf4   : >> { %v895_v39 = vadd.f32 %v894_v26, %v892_v4  ;;  %v904_v50 = vmul.f32 %v2791_v32, %v2684_v58  ;;  %v906_v30 = vmul.f32 %v2807_v48, %v2687_v59  ;;  %v908_v2 = vmul.f32 %v2811_v1, %v2739_v11 }
  0xf5   : >> { %v2941_v34 = vadd.f32 %v880_v20, %v879_v27  ;;  %v889_v18 = vadd.f32 %v888_v63, %v887_v38  ;;  %v910_v45 = vstv %s3501_s10  ;;  %v912_v46 = vmul.f32 %v2819_v6, %v2666_v43  ;;  %s3515_s10 = sld [smem:[#allocation45_spill]] }
  0xf6   : >> { %v897_v3 = vadd.f32 %v896_v62, %v895_v39  ;;  %v905_v28 = vadd.f32 %v904_v50, %v902_v29  ;;  %v914_v47 = vmul.f32 %v2831_v31, %v2672_v49  ;;  %v916_v32 = vmul.f32 %v2841_v44, %v2737_v10 }
  0xf7   : >> { %v2950_v48 = vadd.f32 %v890_v12, %v889_v18  ;;  %v918_v1 = vmul.f32 %v2851_v0, %v2676_v51  ;;  %v920_v52 = vstv %s3502_s11  ;;  %v922_v53 = vmul.f32 %v2819_v6, %v2681_v57  ;;  %s3516_s11 = sld [smem:[#allocation21_spill]] }
  0xf8   : >> { %v899_v19 = vadd.f32 %v898_v41, %v897_v3  ;;  %v907_v43 = vadd.f32 %v906_v30, %v905_v28  ;;  %v915_v22 = vadd.f32 %v914_v47, %v912_v46  ;;  %v924_v5 = vmul.f32 %v2831_v31, %v2684_v58 }
  0xf9   : >> { %v926_v49 = vmul.f32 %v2841_v44, %v2687_v59  ;;  %v928_v10 = vmul.f32 %v2851_v0, %v2739_v11  ;;  %v930_v7 = vstv %s3503_s22  ;;  %v932_v51 = vmul.f32 %v2859_v14, %v2681_v57  ;;  %s1768_s22 = sshll.u32 %s2293_s0, 4 }
  0xfa   : >> { %v2966_v6 = vadd.f32 %v900_v42, %v899_v19  ;;  %v909_v36 = vadd.f32 %v908_v2, %v907_v43  ;;  %v917_v20 = vadd.f32 %v916_v32, %v915_v22  ;;  %v925_v23 = vadd.f32 %v924_v5, %v922_v53 }
  0xfb   : >> { %v934_v31 = vmul.f32 %v2871_v9, %v2684_v58  ;;  %v936_v44 = vmul.f32 %v2880_v61, %v2687_v59  ;;  %v938_v0 = vmul.f32 %v2891_v17, %v2739_v11  ;;  %v940_v25 = vstv %s3504_s12 }
  0xfc   : >> { %v2975_v57 = vadd.f32 %v910_v45, %v909_v36  ;;  %v919_v14 = vadd.f32 %v918_v1, %v917_v20  ;;  %v927_v55 = vadd.f32 %v926_v49, %v925_v23  ;;  %v2978_v8 = vstv %s3505_s15  ;;  %s3517_s15 = sld [smem:[#allocation24_spill]] }
  0xfd   : >> { %v935_v21 = vadd.f32 %v934_v31, %v932_v51  ;;  %v943_v58 = vmul.f32 %v2978_v8, %v2699_v16  ;;  %v2983_v9 = vstv %s3506_s5  ;;  %v2986_v59 = vstv %s3507_s18  ;;  %s1104_s12 = scalar_lea.vmem %s3516_s11, %s1768_s22  ;;  %s1809_s5 = sshll.u32 %s2293_s0, 6 }
  0xfe   : >> { %v2988_v11 = vadd.f32 %v920_v52, %v919_v14  ;;  %v929_v61 = vadd.f32 %v928_v10, %v927_v55  ;;  %v946_v17 = vmul.f32 %v2983_v9, %v2701_v37  ;;  %v949_v56 = vmul.f32 %v2986_v59, %v2703_v40 }
  0xff   : >> { %v937_v63 = vadd.f32 %v936_v44, %v935_v21  ;;  %v2995_v12 = vstv %s3508_s19  ;;  %v2998_v4 = vstv %s3509_s3  ;;  %v3001_v35 = vstv %s3510_s6  ;;  %s1771_s19 = sshll.u32 %s2293_s0, 5  ;;  %s3518_s3 = sld [smem:[#allocation22_spill]] }
 0x100   : >> { %v3003_v24 = vadd.f32 %v930_v7, %v929_v61  ;;  %v947_v15 = vadd.f32 %v946_v17, %v943_v58  ;;  %v952_v26 = vmul.f32 %v2995_v12, %v2709_v54  ;;  %v955_v62 = vmul.f32 %v2998_v4, %v2699_v16 }
 0x101   : >> { %v939_v41 = vadd.f32 %v938_v0, %v937_v63  ;;  %v958_v42 = vmul.f32 %v3001_v35, %v2701_v37  ;;  %v3012_v27 = vstv %s3511_s7  ;;  %v3015_v38 = vstv %s3512_s8  ;;  %s3521_s7 = sld [smem:[#allocation23_spill]]  ;;  %s1778_s8 = sshll.u32 %s2293_s0, 7 }
 0x102   : >> { %v950_v29 = vadd.f32 %v949_v56, %v947_v15  ;;  %v961_v39 = vmul.f32 %v3012_v27, %v2703_v40  ;;  %v964_v50 = vmul.f32 %v3015_v38, %v2709_v54  ;;  %v966_v30 = vmul.f32 %v2978_v8, %v2906_v60  ;;  %s3157_s18 = scalar_lea.vmem %s3517_s15, %s1809_s5  ;;  %s623_s0 = sadd.s32 1, %s2293_s0  }
 0x103   : >> { %v3023_v2 = vadd.f32 %v940_v25, %v939_v41  ;;  %v959_v18 = vadd.f32 %v958_v42, %v955_v62  ;;  %v968_v45 = vmul.f32 %v2983_v9, %v2922_v13  ;;  %v970_v46 = vmul.f32 %v2986_v59, %v2931_v33  ;;  %p3353_p2 = scmp.ge.s32.totalorder %s623_s0, 8  }
 0x104   : >> { %v3029_v3 = vadd.f32 %v952_v26, %v950_v29  ;;  %v972_v28 = vmul.f32 %v2995_v12, %v2941_v34  ;;  %v974_v47 = vmul.f32 %v2998_v4, %v2906_v60  ;;  %v976_v32 = vmul.f32 %v3001_v35, %v2922_v13 }
 0x105   : >> { %v962_v1 = vadd.f32 %v961_v39, %v959_v18  ;;  %v969_v52 = vadd.f32 %v968_v45, %v966_v30  ;;  %v978_v53 = vmul.f32 %v3012_v27, %v2931_v33  ;;  %v980_v19 = vmul.f32 %v3015_v38, %v2941_v34  ;;  %s3205_s6 = scalar_lea.vmem %s3518_s3, %s1771_s19 }
 0x106   : >> { %v977_v43 = vadd.f32 %v976_v32, %v974_v47  ;;  %v982_v22 = vmul.f32 %v2978_v8, %v2922_v13  ;;  %v984_v5 = vmul.f32 %v2983_v9, %v2950_v48  ;;  %v986_v49 = vmul.f32 %v2986_v59, %v2966_v6 }
 0x107   : >> { %v3047_v10 = vadd.f32 %v964_v50, %v962_v1  ;;  %v971_v7 = vadd.f32 %v970_v46, %v969_v52  ;;  %v988_v51 = vmul.f32 %v2995_v12, %v2975_v57  ;;  %v990_v36 = vmul.f32 %v2998_v4, %v2922_v13 }
 0x108   : >> { %v979_v20 = vadd.f32 %v978_v53, %v977_v43  ;;  %v985_v23 = vadd.f32 %v984_v5, %v982_v22  ;;  %v992_v31 = vmul.f32 %v3001_v35, %v2950_v48  ;;  %v994_v44 = vmul.f32 %v3012_v27, %v2966_v6 }
 0x109   : >> { %v3057_v0 = vadd.f32 %v972_v28, %v971_v7  ;;  %v996_v25 = vmul.f32 %v3015_v38, %v2975_v57  ;;  %v998_v14 = vmul.f32 %v2978_v8, %v2931_v33  ;;  %v1000_v55 = vmul.f32 %v2983_v9, %v2966_v6 }
 0x10a   : >> { %v3065_v21 = vadd.f32 %v980_v19, %v979_v20  ;;  %v987_v58 = vadd.f32 %v986_v49, %v985_v23  ;;  %v993_v61 = vadd.f32 %v992_v31, %v990_v36  ;;  %v1002_v17 = vmul.f32 %v2986_v59, %v2988_v11 }
 0x10b   : >> { %v1001_v56 = vadd.f32 %v1000_v55, %v998_v14  ;;  %v1004_v63 = vmul.f32 %v2995_v12, %v3003_v24  ;;  %v1006_v15 = vmul.f32 %v2998_v4, %v2931_v33  ;;  %v1008_v26 = vmul.f32 %v3001_v35, %v2966_v6 }
 0x10c   : >> { %v3075_v62 = vadd.f32 %v988_v51, %v987_v58  ;;  %v995_v41 = vadd.f32 %v994_v44, %v993_v61  ;;  %v1010_v42 = vmul.f32 %v3012_v27, %v2988_v11  ;;  %v1012_v29 = vmul.f32 %v3015_v38, %v3003_v24 }
 0x10d   : >> { %v1003_v39 = vadd.f32 %v1002_v17, %v1001_v56  ;;  %v1009_v50 = vadd.f32 %v1008_v26, %v1006_v15  ;;  %v1014_v30 = vmul.f32 %v2978_v8, %v2941_v34  ;;  %v1016_v18 = vmul.f32 %v2983_v9, %v2975_v57 }
 0x10e   : >> { %v3085_v45 = vadd.f32 %v996_v25, %v995_v41  ;;  %v1018_v46 = vmul.f32 %v2986_v59, %v3003_v24  ;;  %v1020_v28 = vmul.f32 %v2995_v12, %v3023_v2  ;;  %v1022_v47 = vmul.f32 %v2998_v4, %v2941_v34 }
 0x10f   : >> { %v3093_v32 = vadd.f32 %v1004_v63, %v1003_v39  ;;  %v1011_v1 = vadd.f32 %v1010_v42, %v1009_v50  ;;  %v1017_v52 = vadd.f32 %v1016_v18, %v1014_v30  ;;  %v1024_v53 = vmul.f32 %v3001_v35, %v2975_v57 }
 0x110   : >> { %v1026_v19 = vmul.f32 %v3012_v27, %v3003_v24  ;;  %v1028_v43 = vmul.f32 %v3015_v38, %v3023_v2  ;;  %v1030_v22 = vmul.f32 %v3057_v0, %v2978_v8  ;;  %v1032_v5 = vmul.f32 %v3075_v62, %v2983_v9 }
 0x111   : >> { %v3105_v49 = vadd.f32 %v1012_v29, %v1011_v1  ;;  %v1019_v7 = vadd.f32 %v1018_v46, %v1017_v52  ;;  %v1025_v51 = vadd.f32 %v1024_v53, %v1022_v47  ;;  %v1034_v36 = vmul.f32 %v3093_v32, %v2986_v59 }
 0x112   : >> { %v1033_v20 = vadd.f32 %v1032_v5, %v1030_v22  ;;  %v1040_v23 = vmul.f32 %v3065_v21, %v2978_v8  ;;  %v1042_v31 = vmul.f32 %v3085_v45, %v2983_v9  ;;  %v1050_v61 = vmul.f32 %v3065_v21, %v2998_v4 }
 0x113   : >> { %v3113_v44 = vadd.f32 %v1020_v28, %v1019_v7  ;;  %v1027_v25 = vadd.f32 %v1026_v19, %v1025_v51  ;;  %v1044_v14 = vmul.f32 %v3105_v49, %v2986_v59  ;;  %v1052_v17 = vmul.f32 %v3085_v45, %v3001_v35  ;;  %v1105_v19 = vld [vmem:[%s1104_s12] sm:$0xff] }
 0x114   : >> { %v1035_v55 = vadd.f32 %v1034_v36, %v1033_v20  ;;  %v1043_v58 = vadd.f32 %v1042_v31, %v1040_v23  ;;  %v1054_v56 = vmul.f32 %v3105_v49, %v3012_v27  ;;  %v1038_v26 = vstv %s3513_s9  ;;  %s3278_s9 = scalar_lea.vmem %s3521_s7, %s1778_s8 }
 0x115   : >> { %v3121_v8 = vadd.f32 %v1028_v43, %v1027_v25  ;;  %v1036_v9 = vmul.f32 %v3113_v44, %v2995_v12  ;;  %v1053_v15 = vadd.f32 %v1052_v17, %v1050_v61  ;;  %v1048_v35 = vstv %s3514_s30  ;;  %v1770_v43 = vld [vmem:[%s1104_s12 + $0x8] sm:$0xff] }
 0x116   : >> { %v1045_v63 = vadd.f32 %v1044_v14, %v1043_v58  ;;  %v1058_v39 = vstv %s3515_s10  ;;  %v1106_v51 = vsub.f32 %v1105_v19, %v3029_v3  ;;  %v1110_v36 = vsub.f32 %v1770_v43, %v3047_v10 }
 0x117   : >> { %v1037_v59 = vadd.f32 %v1036_v9, %v1035_v55  ;;  %v1046_v41 = vmul.f32 %v3121_v8, %v2995_v12  ;;  %v1056_v4 = vmul.f32 %v3121_v8, %v3015_v38  ;;  %v1055_v42 = vadd.f32 %v1054_v56, %v1053_v15 }
 0x118   : >> { %vm1215_vm1 = vcmask 15360  }
 0x119   : >> { %v1047_v29 = vadd.f32 %v1046_v41, %v1045_v63  ;;  %v3134_v50 = vadd.f32 %v1038_v26, %v1037_v59  ;;  %v1057_v30 = vadd.f32 %v1056_v4, %v1055_v42 }
 0x11b   : >> { %v3136_v27 = vadd.f32 %v1048_v35, %v1047_v29  ;;  %v3138_v18 = vadd.f32 %v1058_v39, %v1057_v30 }
 0x11d   : >> { %v1061_v46 = vmul.f32 %v3136_v27, %v3136_v27  ;;  %v1060_v12 = vmul.f32 %v3138_v18, %v3134_v50  ;;  %v1068_v52 = vsub.f32 0.0, %v3136_v27 }
 0x11f   : >> { %v1062_v38 = vsub.f32 %v1060_v12, %v1061_v46 }
 0x121   : >> { %2043 = vrcp.f32 %v1062_v38 }
 0x12b   : >> { %v2044_v28 = vpop.eup %2043 }
 0x12c   : >> { %v1064_v47 = vmul.f32 %v2044_v28, %v1062_v38 }
 0x12e   : >> { %v1065_v1 = vsub.f32 2.0, %v1064_v47 }
 0x130   : >> { %v1066_v53 = vmul.f32 %v2044_v28, %v1065_v1 }
 0x132   : >> { %v1067_v22 = vmul.f32 %v1066_v53, %v3138_v18  ;;  %v1069_v5 = vmul.f32 %v1068_v52, %v1066_v53  ;;  %v1070_v7 = vmul.f32 %v1066_v53, %v3134_v50 }
 0x134   : >> { %v1071_v20 = vmul.f32 %v1067_v22, %v3057_v0  ;;  %v1073_v23 = vmul.f32 %v1069_v5, %v3065_v21  ;;  %v1075_v31 = vmul.f32 %v1069_v5, %v3057_v0  ;;  %v1077_v25 = vmul.f32 %v1070_v7, %v3065_v21 }
 0x135   : >> { %v1079_v14 = vmul.f32 %v1067_v22, %v3075_v62  ;;  %v1081_v3 = vmul.f32 %v1069_v5, %v3085_v45  ;;  %v1083_v10 = vmul.f32 %v1069_v5, %v3075_v62  ;;  %v1085_v55 = vmul.f32 %v1070_v7, %v3085_v45 }
 0x136   : >> { %v3163_v58 = vadd.f32 %v1073_v23, %v1071_v20  ;;  %v3165_v61 = vadd.f32 %v1077_v25, %v1075_v31  ;;  %v1087_v0 = vmul.f32 %v1067_v22, %v3093_v32  ;;  %v1089_v21 = vmul.f32 %v1069_v5, %v3105_v49 }
 0x137   : >> { %v3169_v17 = vadd.f32 %v1081_v3, %v1079_v14  ;;  %v3171_v9 = vadd.f32 %v1085_v55, %v1083_v10  ;;  %v1091_v56 = vmul.f32 %v1069_v5, %v3093_v32  ;;  %v1093_v62 = vmul.f32 %v1070_v7, %v3105_v49 }
 0x138   : >> { %v1111_v45 = vmul.f32 %v1106_v51, %v3163_v58  ;;  %v1113_v63 = vmul.f32 %v1110_v36, %v3165_v61  ;;  %1276 = vst.msk [vmem:[%s3157_s18] sm:$0xff] %vm1215_vm1, %v3163_v58  ;;  %1811 = vst.msk [vmem:[%s3157_s18 + $0x8] sm:$0xff] %vm1215_vm1, %v3165_v61  ;;  %v3184_v15 = vadd.f32 %v1089_v21, %v1087_v0 }
 0x139   : >> { %v1095_v32 = vmul.f32 %v1067_v22, %v3113_v44  ;;  %v1116_v49 = vmul.f32 %v1106_v51, %v3169_v17  ;;  %v1118_v59 = vmul.f32 %v1110_v36, %v3171_v9  ;;  %1813 = vst.msk [vmem:[%s3157_s18 + $0x10] sm:$0xff] %vm1215_vm1, %v3169_v17  ;;  %1815 = vst.msk [vmem:[%s3157_s18 + $0x18] sm:$0xff] %vm1215_vm1, %v3171_v9 }
 0x13a   : >> { %v3195_v26 = vadd.f32 %v1093_v62, %v1091_v56  ;;  %v1097_v41 = vmul.f32 %v1069_v5, %v3121_v8  ;;  %v1114_v4 = vadd.f32 %v1113_v63, %v1111_v45  ;;  %v1121_v35 = vmul.f32 %v1106_v51, %v3184_v15  ;;  %1817 = vst.msk [vmem:[%s3157_s18 + $0x20] sm:$0xff] %vm1215_vm1, %v3184_v15 }
 0x13b   : >> { %v1099_v42 = vmul.f32 %v1069_v5, %v3113_v44  ;;  %v1101_v29 = vmul.f32 %v1070_v7, %v3121_v8  ;;  %v1119_v39 = vadd.f32 %v1118_v59, %v1116_v49  ;;  %v1131_v12 = vmul.f32 %v3163_v58, %v3134_v50 }
 0x13c   : >> { %v1123_v30 = vmul.f32 %v1110_v36, %v3195_v26  ;;  %1819 = vst.msk [vmem:[%s3157_s18 + $0x28] sm:$0xff] %vm1215_vm1, %v3195_v26  ;;  %v3211_v46 = vadd.f32 %v1097_v41, %v1095_v32  ;;  %v3216_v14 = vadd.f32 %v1114_v4, %v2699_v16   ;;  %v1133_v38 = vmul.f32 %v3165_v61, %v3136_v27 }
 0x13d   : >> { %v3218_v8 = vadd.f32 %v1101_v29, %v1099_v42  ;;  %v1147_v28 = vmul.f32 %v3163_v58, %v3136_v27  ;;  %v3225_v47 = vadd.f32 %v1119_v39, %v2701_v37   ;;  %v1149_v16 = vmul.f32 %v3165_v61, %v3138_v18 }
 0x13e   : >> { %v3519_v44 = vmov %v3216_v14  ;;  %v1124_v1 = vadd.f32 %v1123_v30, %v1121_v35  ;;  %v1126_v52 = vmul.f32 %v1106_v51, %v3211_v46  ;;  %1821 = vst.msk [vmem:[%s3157_s18 + $0x30] sm:$0xff] %vm1215_vm1, %v3211_v46  ;;  %v1134_v37 = vadd.f32 %v1133_v38, %v1131_v12 }
 0x13f   : >> { %1216 = vst.msk [vmem:[%s3205_s6] sm:$0xff] %vm1215_vm1, %v3519_v44  ;;  %v1128_v53 = vmul.f32 %v1110_v36, %v3218_v8  ;;  %1823 = vst.msk [vmem:[%s3157_s18 + $0x38] sm:$0xff] %vm1215_vm1, %v3218_v8  ;;  %v1135_v19 = vmul.f32 %v3169_v17, %v3134_v50  ;;  %v1137_v43 = vmul.f32 %v3171_v9, %v3136_v27 }
 0x140   : >> { %1773 = vst.msk [vmem:[%s3205_s6 + $0x8] sm:$0xff] %vm1215_vm1, %v3225_v47  ;;  %v3248_v22 = vadd.f32 %v1124_v1, %v2703_v40   ;;  %v1150_v7 = vadd.f32 %v1149_v16, %v1147_v28  ;;  %v1151_v51 = vmul.f32 %v3169_v17, %v3136_v27  ;;  %v1153_v36 = vmul.f32 %v3171_v9, %v3138_v18 }
 0x141   : >> { %v1129_v20 = vadd.f32 %v1128_v53, %v1126_v52  ;;  %v1163_v23 = vmul.f32 %v1134_v37, %v3163_v58  ;;  %v1138_v31 = vadd.f32 %v1137_v43, %v1135_v19  ;;  %v1139_v25 = vmul.f32 %v3184_v15, %v3134_v50  ;;  %1299 = vst.msk [vmem:[#allocation2] sm:$0xff] (%p3353_p2), %vm1215_vm1, %v3519_v44 }
 0x142   : >> { %v3520_v5 = vmov %v3248_v22  ;;  %v1165_v40 = vmul.f32 %v1150_v7, %v3165_v61  ;;  %v1154_v14 = vadd.f32 %v1153_v36, %v1151_v51  ;;  %v1141_v3 = vmul.f32 %v3195_v26, %v3136_v27  ;;  %1300 = vst.msk [vmem:[#allocation2 + $0x8] sm:$0xff] (%p3353_p2), %vm1215_vm1, %v3225_v47 }
 0x143   : >> { %1775 = vst.msk [vmem:[%s3205_s6 + $0x10] sm:$0xff] %vm1215_vm1, %v3520_v5  ;;  %v1155_v10 = vmul.f32 %v3184_v15, %v3136_v27  ;;  %v3267_v55 = vadd.f32 %v1129_v20, %v2709_v54   ;;  %v1168_v0 = vmul.f32 %v1138_v31, %v3163_v58  ;;  %v1157_v21 = vmul.f32 %v3195_v26, %v3138_v18 }
 0x144   : >> { %v1143_v56 = vmul.f32 %v3211_v46, %v3134_v50  ;;  %v1166_v62 = vadd.f32 %v1165_v40, %v1163_v23  ;;  %v1170_v45 = vmul.f32 %v1154_v14, %v3165_v61  ;;  %v1142_v63 = vadd.f32 %v1141_v3, %v1139_v25  ;;  %1301 = vst.msk [vmem:[#allocation2 + $0x10] sm:$0xff] (%p3353_p2), %vm1215_vm1, %v3520_v5 }
 0x145   : >> { %v1145_v32 = vmul.f32 %v3218_v8, %v3136_v27  ;;  %1777 = vst.msk [vmem:[%s3205_s6 + $0x18] sm:$0xff] %vm1215_vm1, %v3267_v55  ;;  %v1158_v54 = vadd.f32 %v1157_v21, %v1155_v10  ;;  %v1159_v49 = vmul.f32 %v3211_v46, %v3136_v27  ;;  %v1161_v50 = vmul.f32 %v3218_v8, %v3138_v18 }
 0x146   : >> { %v1183_v59 = vmul.f32 %v1138_v31, %v3169_v17  ;;  %v3289_v18 = vsub.f32 %v2906_v60, %v1166_v62   ;;  %v1171_v4 = vadd.f32 %v1170_v45, %v1168_v0  ;;  %v1173_v35 = vmul.f32 %v1142_v63, %v3163_v58  ;;  %1302 = vst.msk [vmem:[#allocation2 + $0x18] sm:$0xff] (%p3353_p2), %vm1215_vm1, %v3267_v55 }
 0x147   : >> { %v1146_v42 = vadd.f32 %v1145_v32, %v1143_v56  ;;  %v1175_v29 = vmul.f32 %v1158_v54, %v3165_v61  ;;  %v1162_v39 = vadd.f32 %v1161_v50, %v1159_v49  ;;  %v1185_v30 = vmul.f32 %v1154_v14, %v3171_v9 }
 0x148   : >> { %v3522_v41 = vmov %v3289_v18  ;;  %v1188_v27 = vmul.f32 %v1142_v63, %v3169_v17  ;;  %v3299_v19 = vsub.f32 %v2922_v13, %v1171_v4   ;;  %v1190_v12 = vmul.f32 %v1158_v54, %v3171_v9 }
 0x149   : >> { %1228 = vst.msk [vmem:[%s3278_s9] sm:$0xff] %vm1215_vm1, %v3522_v41  ;;  %v1178_v18 = vmul.f32 %v1146_v42, %v3163_v58  ;;  %v1193_v38 = vmul.f32 %v1146_v42, %v3169_v17  ;;  %v1176_v28 = vadd.f32 %v1175_v29, %v1173_v35  ;;  %v1180_v1 = vmul.f32 %v1162_v39, %v3165_v61 }
 0x14a   : >> { %v3523_v60 = vmov %v3299_v19  ;;  %v1186_v52 = vadd.f32 %v1185_v30, %v1183_v59  ;;  %v1195_v16 = vmul.f32 %v1162_v39, %v3171_v9  ;;  %v1191_v13 = vadd.f32 %v1190_v12, %v1188_v27  ;;  %1303 = vst.msk [vmem:[#allocation3] sm:$0xff] (%p3353_p2), %vm1215_vm1, %v3522_v41 }
 0x14b   : >> { %1780 = vst.msk [vmem:[%s3278_s9 + $0x8] sm:$0xff] %vm1215_vm1, %v3523_v60  ;;  %1786 = vst.msk [vmem:[%s3278_s9 + $0x20] sm:$0xff] %vm1215_vm1, %v3523_v60  ;;  %v1198_v58 = vmul.f32 %v1142_v63, %v3184_v15  ;;  %v1200_v17 = vmul.f32 %v1158_v54, %v3195_v26  ;;  %v1203_v61 = vmul.f32 %v1146_v42, %v3184_v15  ;;  %v3538_v14 = vmov %v3519_v44 }
 0x14c   : >> { %v1177_v53 = vsub.f32 %v2931_v33, %v1176_v28   ;;  %v1181_v9 = vadd.f32 %v1180_v1, %v1178_v18  ;;  %v1187_v37 = vsub.f32 %v2950_v48, %v1186_v52   ;;  %v1196_v19 = vadd.f32 %v1195_v16, %v1193_v38  ;;  %1304 = vst.msk [vmem:[#allocation3 + $0x8] sm:$0xff] (%p3353_p2), %vm1215_vm1, %v3523_v60 }
 0x14d   : >> { %v1192_v43 = vsub.f32 %v2966_v6, %v1191_v13   ;;  %v1201_v22 = vadd.f32 %v1200_v17, %v1198_v58  ;;  %v1205_v7 = vmul.f32 %v1162_v39, %v3195_v26  ;;  %v1208_v51 = vmul.f32 %v1146_v42, %v3211_v46 }
 0x14e   : >> { %1782 = vst.msk [vmem:[%s3278_s9 + $0x10] sm:$0xff] %vm1215_vm1, %v1177_v53  ;;  %1794 = vst.msk [vmem:[%s3278_s9 + $0x40] sm:$0xff] %vm1215_vm1, %v1177_v53  ;;  %v1182_v33 = vsub.f32 %v2941_v34, %v1181_v9   ;;  %v1197_v48 = vsub.f32 %v2975_v57, %v1196_v19   ;;  %v1210_v6 = vmul.f32 %v1162_v39, %v3218_v8  ;;  %v3532_v20 = vmov %v1177_v53  ;;  %622 = sbr.rel (!%p3353_p2) target bundleno = 186 (0xba), region = 192 }
 0x14f   : >> { %1788 = vst.msk [vmem:[%s3278_s9 + $0x28] sm:$0xff] %vm1215_vm1, %v1187_v37  ;;  %1790 = vst.msk [vmem:[%s3278_s9 + $0x30] sm:$0xff] %vm1215_vm1, %v1192_v43  ;;  %v1202_v46 = vsub.f32 %v2988_v11, %v1201_v22   ;;  %v1206_v15 = vadd.f32 %v1205_v7, %v1203_v61  ;;  %v3529_v23 = vmov %v1192_v43  ;;  %v3530_v22 = vmov %v1187_v37 }
 0x150   : >> { %1796 = vst.msk [vmem:[%s3278_s9 + $0x48] sm:$0xff] %vm1215_vm1, %v1192_v43  ;;  %1784 = vst.msk [vmem:[%s3278_s9 + $0x18] sm:$0xff] %vm1215_vm1, %v1182_v33  ;;  %v1211_v34 = vadd.f32 %v1210_v6, %v1208_v51  ;;  %v3531_v21 = vmov %v1182_v33  ;;  %v3533_v19 = vmov %v3523_v60  ;;  %v3534_v18 = vmov %v3522_v41 }
 0x151   : >> { %1802 = vst.msk [vmem:[%s3278_s9 + $0x60] sm:$0xff] %vm1215_vm1, %v1182_v33  ;;  %1792 = vst.msk [vmem:[%s3278_s9 + $0x38] sm:$0xff] %vm1215_vm1, %v1197_v48  ;;  %v1207_v57 = vsub.f32 %v3003_v24, %v1206_v15   ;;  %v3527_v25 = vmov %v1202_v46  ;;  %v3528_v24 = vmov %v1197_v48  ;;  %v3535_v17 = vmov %v3267_v55 }
 0x152   : >> { %1804 = vst.msk [vmem:[%s3278_s9 + $0x68] sm:$0xff] %vm1215_vm1, %v1197_v48  ;;  %1798 = vst.msk [vmem:[%s3278_s9 + $0x50] sm:$0xff] %vm1215_vm1, %v1202_v46  ;;  %v1212_v8 = vsub.f32 %v3023_v2, %v1211_v34   ;;  %v3536_v16 = vmov %v3520_v5  ;;  %v3537_v15 = vmov %v3225_v47 }
 0x153   : >> { %1800 = vst.msk [vmem:[%s3278_s9 + $0x58] sm:$0xff] %vm1215_vm1, %v1207_v57  ;;  %1806 = vst.msk [vmem:[%s3278_s9 + $0x70] sm:$0xff] %vm1215_vm1, %v1207_v57  ;;  %v3526_v26 = vmov %v1207_v57 }
 0x154   : >> { %1808 = vst.msk [vmem:[%s3278_s9 + $0x78] sm:$0xff] %vm1215_vm1, %v1212_v8  ;;  %v3525_v27 = vmov %v1212_v8  ;;  %1305 = vst.msk [vmem:[#allocation3 + $0x10] sm:$0xff] (%p3353_p2), %vm1215_vm1, %v1177_v53 }
 0x155   : > { %1306 = vst.msk [vmem:[#allocation3 + $0x18] sm:$0xff] %vm1215_vm1, %v1182_v33  ;;  %1307 = vst.msk [vmem:[#allocation3 + $0x20] sm:$0xff] %vm1215_vm1, %v1187_v37 }
 0x156   : > { %1308 = vst.msk [vmem:[#allocation3 + $0x28] sm:$0xff] %vm1215_vm1, %v1192_v43  ;;  %1309 = vst.msk [vmem:[#allocation3 + $0x30] sm:$0xff] %vm1215_vm1, %v1197_v48 }
 0x157   : > { %1310 = vst.msk [vmem:[#allocation3 + $0x38] sm:$0xff] %vm1215_vm1, %v1202_v46  ;;  %1311 = vst.msk [vmem:[#allocation3 + $0x40] sm:$0xff] %vm1215_vm1, %v1207_v57 }
 0x158   : > { %1312 = vst.msk [vmem:[#allocation3 + $0x48] sm:$0xff] %vm1215_vm1, %v1212_v8 }
 0x159 PF: > { %s3539_s21 = sld [smem:[#allocation19_spill]]  ;;  %s3540_s30 = sld [smem:[#allocation18_spill]] }
 0x15a   : > { %s3541_s10 = sld [smem:[#allocation20_spill]] }
 0x15f   : > { %s24_s11 = sadd.s32 1, %s3539_s21  }
 0x160   : > { %p21_p6 = scmp.ge.s32.totalorder %s24_s11, 4  }
 0x162   :  { %23 = sbr.rel (!%p21_p6) target bundleno = 16 (0x10), region = 203 }
 0x169   :  { %1393 = vsyncpa [#allocation5], 1 }
 0x16a   :  { %1395 = vsyncpa [#allocation5 + $0x1], 1 }
 0x16b   :  { %1396 = vsyncpa [#allocation7], 1 }
 0x16c   :  { %1397 = vsyncpa [#allocation10], 1 }
 0x16d   :  { %1398 = vsyncpa [#allocation13], 1 }

</bundles_post_ra>
